<compile_context>
chip_gen: v6e
topology: v6e:2x2x1
jax: 0.10.0
libtpu: 0.0.40
codegen_flags: <defaults>
</compile_context>

<pallas_src>
import functools

import jax
import jax.numpy as jnp
from jax.experimental import pallas as pl
from jax.experimental.pallas import tpu as pltpu

EPS = 1e-5


# --------------------------------------------------------------------------- #
# Pallas kernels                                                               #
# --------------------------------------------------------------------------- #
def _instancenorm_stats_kernel(x_ref, scale_ref, shift_ref, *, inv_hw):
    """Streaming per-(sample, channel) InstanceNorm statistics.

    Grid = (N, channel_blocks, hw_tiles); the last axis ('arbitrary')
    accumulates sum / sum-of-squares into the resident output blocks and
    finalizes them into (rstd, -mean*rstd) so the main pass applies
    `x * scale + shift` directly (one fewer VPU op per element).
    """
    t = pl.program_id(2)

    @pl.when(t == 0)
    def _init():
        scale_ref[...] = jnp.zeros_like(scale_ref)
        shift_ref[...] = jnp.zeros_like(shift_ref)

    x = x_ref[0]                                             # (cblk, T) f32
    scale_ref[0] += jnp.sum(x, axis=1, keepdims=True)        # running sum
    shift_ref[0] += jnp.sum(x * x, axis=1, keepdims=True)    # running sum of squares

    @pl.when(t == pl.num_programs(2) - 1)
    def _finalize():
        # NOTE: single-pass E[x^2]-E[x]^2 in f32 can lose precision when
        # |mean| >> std (clamped at 0); fine for activation-scale inputs.
        m = scale_ref[0] * inv_hw
        var = jnp.maximum(shift_ref[0] * inv_hw - m * m, 0.0)   # biased variance
        r = jax.lax.rsqrt(var + EPS)
        scale_ref[0] = r
        shift_ref[0] = -m * r


def _actv_tile(z_ref, awt_ref, bs_ref, rows):
    """relu( W-resize(z) + b_shared ) laid out lane-dense as (Ch, rows*W).

    z_ref block is (1, Ch, rows, w): the mlp_shared pre-activation already
    H-resized (still at low width w).  The W-direction bilinear resize is one
    small (Ch, w)@(w, W) MXU matmul per row; row results are concatenated
    along lanes so the heavy gamma/beta matmul stays one 2-D (2Cn, Ch)@(Ch, T).
    """
    awt = awt_ref[...]            # (w, W) bf16
    bs = bs_ref[...]              # (Ch, 1) f32
    pieces = []
    for r in range(rows):         # static unroll; rows = T / W is small
        zr = z_ref[0, :, r, :]    # (Ch, w) bf16
        a = jnp.dot(zr, awt, preferred_element_type=jnp.float32) + bs
        pieces.append(jnp.maximum(a, 0.0))
    actv = pieces[0] if rows == 1 else jnp.concatenate(pieces, axis=1)
    return actv.astype(jnp.bfloat16)                         # (Ch, rows*W)


def _modulate(x, scale, shift, actv, wgb_ref, bgb_ref, cnp, out_dtype):
    """x_norm * (1+gamma) + beta + 0.1*x with (1+gamma) folded into the bias."""
    x_n = x * scale + shift
    gb = jnp.dot(wgb_ref[...], actv,
                 preferred_element_type=jnp.float32) + bgb_ref[...]   # (2Cnp, T)
    gamma1 = gb[:cnp, :]          # = 1 + gamma  (the +1 is folded into bgb)
    beta = gb[cnp:, :]
    return (x_n * gamma1 + beta + 0.1 * x).astype(out_dtype)


def _sel_main_kernel(scale_ref, shift_ref, x_ref, z_ref, awt_ref, bs_ref,
                     wgb_ref, bgb_ref, o_ref, *, cnp, rows):
    """Two-pass variant: normalize with precomputed stats + MLP + modulation."""
    x = x_ref[0]                                             # (Cnp, T) f32
    actv = _actv_tile(z_ref, awt_ref, bs_ref, rows)
    o_ref[0] = _modulate(x, scale_ref[0], shift_ref[0], actv,
                         wgb_ref, bgb_ref, cnp, o_ref.dtype)


def _sel_fused_kernel(x_ref, z_ref, awt_ref, bs_ref, wgb_ref, bgb_ref, o_ref,
                      *, cnp, rows, inv_hw):
    """Single-pass variant (whole sample resident): x read from HBM once."""
    x = x_ref[0]                                             # (Cnp, HW) f32
    m = jnp.sum(x, axis=1, keepdims=True) * inv_hw           # zero-padded rows/chs
    ex2 = jnp.sum(x * x, axis=1, keepdims=True) * inv_hw     # contribute nothing
    var = jnp.maximum(ex2 - m * m, 0.0)
    r = jax.lax.rsqrt(var + EPS)
    actv = _actv_tile(z_ref, awt_ref, bs_ref, rows)
    o_ref[0] = _modulate(x, r, -m * r, actv, wgb_ref, bgb_ref, cnp, o_ref.dtype)


# --------------------------------------------------------------------------- #
# Wrapper glue                                                                 #
# --------------------------------------------------------------------------- #
def _bilinear_matrix(out_size, in_size):
    """Interpolation matrix A (out_size, in_size) matching F.interpolate
    mode='bilinear', align_corners=True along one axis (rows sum to 1)."""
    if out_size == 1 or in_size == 1:
        src = jnp.zeros((out_size,), dtype=jnp.float32)
    else:
        src = jnp.arange(out_size, dtype=jnp.float32) * (in_size - 1) / (out_size - 1)
    i0 = jnp.clip(jnp.floor(src).astype(jnp.int32), 0, in_size - 1)
    i1 = jnp.clip(i0 + 1, 0, in_size - 1)
    w1 = src - i0.astype(jnp.float32)
    w0 = 1.0 - w1
    return (w0[:, None] * jax.nn.one_hot(i0, in_size, dtype=jnp.float32)
            + w1[:, None] * jax.nn.one_hot(i1, in_size, dtype=jnp.float32))


def _round_up(v, m):
    return -(-v // m) * m


def _choose_rows(hp, w_out, max_tile_hw, budget_px):
    """Rows per spatial tile R: R | Hp, R % 8 == 0, (R*W) % 128 == 0.

    Picks the largest such R with R*W <= min(max_tile_hw, budget_px); the
    whole-sample block (R = Hp) is used only when no smaller legal tiling
    exists (avoids the old full-HW VMEM blow-up on v7x for typical shapes).
    """
    cap = max(min(max_tile_hw, budget_px), 128)
    cands = [d for d in range(8, hp + 1, 8)
             if hp % d == 0 and (d * w_out) % 128 == 0]
    pick = None
    for d in cands:                       # ascending -> keeps the largest <= cap
        if d * w_out <= cap:
            pick = d
    if pick is None:
        # TODO(synk): for exotic W with no 128-multiple row tile, pad W in the
        # wrapper instead of falling back to a whole-sample block.
        pick = cands[0] if cands else hp
    return pick


def _choose_stats_cblock(cnp, n):
    """Channel block for the stats pass: expose >=2 parallel work items for
    megacore (v7x) when N is small; no-op on single-core chips."""
    if n >= 2 or cnp < 16 or cnp % 16 != 0:
        return cnp
    return cnp // 2


def sel_forward(x_nchw, hm_nchw, params, *, max_tile_hw=4096,
                vmem_budget_bytes=24 * 1024 * 1024, out_dtype=jnp.float32):
    """x_nchw: (N, norm_nc, H, W); hm_nchw: (N, label_nc, h, w)."""
    N, Cn, H, W = x_nchw.shape
    _, Cl, h, w = hm_nchw.shape
    HW_true = H * W
    ws, bs, wg, bg, wb, bb = params       # PyTorch 1x1-conv convention
    Ch = ws.shape[0]

    # --- pad channels / rows to multiples of 8 (full sublanes, legal tiles) ---
    Cnp = _round_up(Cn, 8)
    Hp = _round_up(H, 8)
    pad_c = Cnp - Cn
    pad_h = Hp - H
    x_p = x_nchw.astype(jnp.float32)
    if pad_c or pad_h:
        x_p = jnp.pad(x_p, ((0, 0), (0, pad_c), (0, pad_h), (0, 0)))
    HWp = Hp * W
    x_flat = x_p.reshape(N, Cnp, HWp)     # NCHW -> (N, C, HW): free reshape

    # --- mlp_shared commuted in front of the bilinear resize (both linear,
    #     interpolation rows sum to 1), then H-resize at LOW width: nothing
    #     full-resolution ever hits HBM for the heatmap path. ---
    z_small = jnp.einsum('oc,nchw->nohw', ws.astype(jnp.float32),
                         hm_nchw.astype(jnp.float32))            # (N, Ch, h, w)
    Ah = _bilinear_matrix(H, h)                                  # (H, h)
    if pad_h:
        Ah = jnp.pad(Ah, ((0, pad_h), (0, 0)))
    z_h = jnp.einsum('Hh,nchw->ncHw', Ah, z_small).astype(jnp.bfloat16)  # (N,Ch,Hp,w)
    awt = _bilinear_matrix(W, w).T.astype(jnp.bfloat16)          # (w, W)

    # --- weight prep: fused gamma/beta matmul, (1+gamma) folded into bias ---
    bs_c = bs.reshape(Ch, 1).astype(jnp.float32)
    wg_p = jnp.pad(wg, ((0, pad_c), (0, 0)))
    wb_p = jnp.pad(wb, ((0, pad_c), (0, 0)))
    wgb = jnp.concatenate([wg_p, wb_p], axis=0).astype(jnp.bfloat16)     # (2Cnp, Ch)
    bg1_p = jnp.pad(bg + 1.0, ((0, pad_c),))
    bb_p = jnp.pad(bb, ((0, pad_c),))
    bgb = jnp.concatenate([bg1_p, bb_p]).reshape(2 * Cnp, 1).astype(jnp.float32)

    # --- tile selection: VMEM-budget-clamped row blocks of the lane axis ---
    out_bytes = jnp.dtype(out_dtype).itemsize
    weight_bytes = 2 * (wgb.size * 2 + bgb.size * 4 + bs_c.size * 4 + awt.size * 2)
    per_px = 2 * Cnp * (4 + out_bytes) + 12 * Cnp + 6 * Ch      # dbuf I/O + temps
    budget_px = max(int((vmem_budget_bytes - weight_bytes) // per_px), 128)
    R = _choose_rows(Hp, W, max_tile_hw, budget_px)
    T = R * W
    num_blocks = Hp // R
    inv_hw = 1.0 / HW_true

    est = per_px * T + weight_bytes + 4 * Ch * R * w
    vmem_limit = None
    if est > 8 * 1024 * 1024:             # v5e default scoped VMEM is 16 MiB
        # cap well below v7x's 64 MiB physical VMEM; prefer shrinking T instead
        vmem_limit = int(min(max(2 * est, 16 * 1024 * 1024), 40 * 1024 * 1024))
    main_cparams = pltpu.CompilerParams(
        dimension_semantics=("parallel", "parallel"),
        vmem_limit_bytes=vmem_limit)

    # Constant-index weight/bias blocks: Pallas only DMAs them once.
    # (pl.Buffered(1) would halve their VMEM reservation; omitted for
    #  lowering portability since the blocks are small.)
    x_spec = pl.BlockSpec((1, Cnp, T), lambda n, t: (n, 0, t))
    z_spec = pl.BlockSpec((1, Ch, R, w), lambda n, t: (n, 0, t, 0))
    awt_spec = pl.BlockSpec((w, W), lambda n, t: (0, 0))
    bs_spec = pl.BlockSpec((Ch, 1), lambda n, t: (0, 0))
    wgb_spec = pl.BlockSpec((2 * Cnp, Ch), lambda n, t: (0, 0))
    bgb_spec = pl.BlockSpec((2 * Cnp, 1), lambda n, t: (0, 0))
    out_spec = pl.BlockSpec((1, Cnp, T), lambda n, t: (n, 0, t))
    out_shape = jax.ShapeDtypeStruct((N, Cnp, HWp), out_dtype)
    grid = (N, num_blocks)

    if num_blocks == 1:
        # --- fused single pass: stats + normalize + MLP, x read once ---
        out_flat = pl.pallas_call(
            functools.partial(_sel_fused_kernel, cnp=Cnp, rows=R, inv_hw=inv_hw),
            out_shape=out_shape,
            grid_spec=pltpu.PrefetchScalarGridSpec(
                num_scalar_prefetch=0, grid=grid,
                in_specs=[x_spec, z_spec, awt_spec, bs_spec, wgb_spec, bgb_spec],
                out_specs=out_spec),
            compiler_params=main_cparams,
        )(x_flat, z_h, awt, bs_c, wgb, bgb)
    else:
        # TODO(synk): for mid-size samples that fit VMEM but span several tiles,
        # an emit_pipeline-based single-read variant would also remove the
        # second HBM read of x.
        cblk = _choose_stats_cblock(Cnp, N)
        scale, shift = pl.pallas_call(
            functools.partial(_instancenorm_stats_kernel, inv_hw=inv_hw),
            out_shape=(jax.ShapeDtypeStruct((N, Cnp, 1), jnp.float32),
                       jax.ShapeDtypeStruct((N, Cnp, 1), jnp.float32)),
            grid_spec=pltpu.PrefetchScalarGridSpec(
                num_scalar_prefetch=0,
                grid=(N, Cnp // cblk, num_blocks),
                in_specs=[pl.BlockSpec((1, cblk, T), lambda n, c, t: (n, c, t))],
                out_specs=[pl.BlockSpec((1, cblk, 1), lambda n, c, t: (n, c, 0)),
                           pl.BlockSpec((1, cblk, 1), lambda n, c, t: (n, c, 0))]),
            compiler_params=pltpu.CompilerParams(
                dimension_semantics=("parallel", "parallel", "arbitrary"),
                vmem_limit_bytes=vmem_limit),
        )(x_flat)

        sc_spec = pl.BlockSpec((1, Cnp, 1), lambda n, t: (n, 0, 0))
        out_flat = pl.pallas_call(
            functools.partial(_sel_main_kernel, cnp=Cnp, rows=R),
            out_shape=out_shape,
            grid_spec=pltpu.PrefetchScalarGridSpec(
                num_scalar_prefetch=0, grid=grid,
                in_specs=[sc_spec, sc_spec, x_spec, z_spec, awt_spec, bs_spec,
                          wgb_spec, bgb_spec],
                out_specs=out_spec),
            compiler_params=main_cparams,
        )(scale, shift, x_flat, z_h, awt, bs_c, wgb, bgb)

    out = out_flat.reshape(N, Cnp, Hp, W)
    if pad_c or pad_h:
        out = out[:, :Cn, :H, :]
    return out


# --------------------------------------------------------------------------- #
# Reference + synthetic params + entry point                                   #
# --------------------------------------------------------------------------- #
def sel_reference(x_nchw, hm_nchw, params):
    """Pure-JAX reference matching the PyTorch module (f32 throughout)."""
    ws, bs, wg, bg, wb, bb = params
    _, _, H, W = x_nchw.shape
    h, w = hm_nchw.shape[2], hm_nchw.shape[3]
    mean = jnp.mean(x_nchw, axis=(2, 3), keepdims=True)
    var = jnp.mean((x_nchw - mean) ** 2, axis=(2, 3), keepdims=True)
    x_n = (x_nchw - mean) * jax.lax.rsqrt(var + EPS)
    Ah = _bilinear_matrix(H, h)
    Aw = _bilinear_matrix(W, w)
    hm_r = jnp.einsum('Hh,nchw,Ww->ncHW', Ah, hm_nchw, Aw)
    actv = jnp.maximum(
        jnp.einsum('oc,nchw->nohw', ws, hm_r) + bs[None, :, None, None], 0.0)
    gamma = jnp.einsum('oc,nchw->nohw', wg, actv) + bg[None, :, None, None]
    beta = jnp.einsum('oc,nchw->nohw', wb, actv) + bb[None, :, None, None]
    return x_n * (1.0 + gamma) + beta + 0.1 * x_nchw


def init_params(key, norm_nc, label_nc, hidden_nc):
    """Deterministic synthetic weights in PyTorch 1x1-Conv2d convention:
    W (out_channels, in_channels), b (out_channels,)."""
    k1, k2, k3, k4, k5, k6 = jax.random.split(key, 6)
    ws = jax.random.normal(k1, (hidden_nc, label_nc), jnp.float32) * 0.1
    bs = jax.random.normal(k2, (hidden_nc,), jnp.float32) * 0.1
    wg = jax.random.normal(k3, (norm_nc, hidden_nc), jnp.float32) * 0.1
    bg = jax.random.normal(k4, (norm_nc,), jnp.float32) * 0.1
    wb = jax.random.normal(k5, (norm_nc, hidden_nc), jnp.float32) * 0.1
    bb = jax.random.normal(k6, (norm_nc,), jnp.float32) * 0.1
    return (ws, bs, wg, bg, wb, bb)


if __name__ == "__main__":
    norm_nc, label_nc, hidden_nc = 4, 4, 32
    N, H, W = 2, 16, 16
    h_hm, w_hm = 8, 8

    key = jax.random.PRNGKey(0)
    kx, khm, kp = jax.random.split(key, 3)
    x = jax.random.normal(kx, (N, norm_nc, H, W), jnp.float32)
    hm = jax.random.normal(khm, (N, label_nc, h_hm, w_hm), jnp.float32)
    params = init_params(kp, norm_nc, label_nc, hidden_nc)

    ref = sel_reference(x, hm, params)

    # Path 1: fused single pass (whole sample in one tile, stats in-kernel).
    out_fused = sel_forward(x, hm, params)
    jax.block_until_ready(out_fused)
    assert out_fused.shape == (N, norm_nc, H, W)
    err_fused = float(jnp.max(jnp.abs(out_fused - ref)))
    assert err_fused < 5e-2, f"fused path max abs error too large: {err_fused}"

    # Path 2: two-pass (streaming stats + row-block main pass); max_tile_hw=128
    # forces 2 spatial tiles per sample at toy size to exercise this path.
    out_tiled = sel_forward(x, hm, params, max_tile_hw=128)
    jax.block_until_ready(out_tiled)
    err_tiled = float(jnp.max(jnp.abs(out_tiled - ref)))
    assert err_tiled < 5e-2, f"tiled path max abs error too large: {err_tiled}"

    print("KERNEL_OK")
</pallas_src>

<mosaic_0001>
module attributes {stable_mosaic.version = 11 : i64} {
  func.func @_sel_fused_kernel(%arg0: i32, %arg1: i32, %arg2: memref<1x8x256xf32, #tpu.memory_space<vmem>>, %arg3: memref<1x32x16x8xbf16, #tpu.memory_space<vmem>>, %arg4: memref<8x16xbf16, #tpu.memory_space<vmem>>, %arg5: memref<32x1xf32, #tpu.memory_space<vmem>>, %arg6: memref<16x32xbf16, #tpu.memory_space<vmem>>, %arg7: memref<16x1xf32, #tpu.memory_space<vmem>>, %arg8: memref<1x8x256xf32, #tpu.memory_space<vmem>>) attributes {dimension_semantics = [#tpu.dimension_semantics<parallel>, #tpu.dimension_semantics<parallel>], iteration_bounds = array<i64: 2, 1>, scalar_prefetch = 0 : i64, scratch_operands = 0 : i64, tpu.core_type = #tpu.core_type<tc>, window_params = [{transform_indices = @transform_0, window_bounds = array<i64: 1, 8, 256>}, {transform_indices = @transform_1, window_bounds = array<i64: 1, 32, 16, 8>}, {pipeline_mode = #tpu.pipeline_mode<synchronous>, transform_indices = @transform_2, window_bounds = array<i64: 8, 16>}, {pipeline_mode = #tpu.pipeline_mode<synchronous>, transform_indices = @transform_3, window_bounds = array<i64: 32, 1>}, {pipeline_mode = #tpu.pipeline_mode<synchronous>, transform_indices = @transform_4, window_bounds = array<i64: 16, 32>}, {pipeline_mode = #tpu.pipeline_mode<synchronous>, transform_indices = @transform_5, window_bounds = array<i64: 16, 1>}, {transform_indices = @transform_6, window_bounds = array<i64: 1, 8, 256>}]} {
    %c0 = arith.constant 0 : index
    %c0_0 = arith.constant 0 : index
    %c0_1 = arith.constant 0 : index
    %0 = vector.load %arg2[%c0, %c0_0, %c0_1] : memref<1x8x256xf32, #tpu.memory_space<vmem>>, vector<1x8x256xf32>
    %1 = vector.shape_cast %0 : vector<1x8x256xf32> to vector<8x256xf32>
    %cst = arith.constant dense<0.000000e+00> : vector<8xf32>
    %2 = vector.multi_reduction <add>, %1, %cst [1] : vector<8x256xf32> to vector<8xf32>
    %3 = vector.shape_cast %2 : vector<8xf32> to vector<8x1xf32>
    %cst_2 = arith.constant 3.906250e-03 : f32
    %4 = vector.broadcast %cst_2 : f32 to vector<8x1xf32>
    %5 = arith.mulf %3, %4 : vector<8x1xf32>
    %6 = arith.mulf %1, %1 : vector<8x256xf32>
    %cst_3 = arith.constant dense<0.000000e+00> : vector<8xf32>
    %7 = vector.multi_reduction <add>, %6, %cst_3 [1] : vector<8x256xf32> to vector<8xf32>
    %8 = vector.shape_cast %7 : vector<8xf32> to vector<8x1xf32>
    %cst_4 = arith.constant 3.906250e-03 : f32
    %9 = vector.broadcast %cst_4 : f32 to vector<8x1xf32>
    %10 = arith.mulf %8, %9 : vector<8x1xf32>
    %11 = arith.mulf %5, %5 : vector<8x1xf32>
    %12 = arith.subf %10, %11 : vector<8x1xf32>
    %cst_5 = arith.constant 0.000000e+00 : f32
    %13 = vector.broadcast %cst_5 : f32 to vector<8x1xf32>
    %14 = arith.maximumf %12, %13 : vector<8x1xf32>
    %cst_6 = arith.constant 9.99999974E-6 : f32
    %15 = vector.broadcast %cst_6 : f32 to vector<8x1xf32>
    %16 = arith.addf %14, %15 : vector<8x1xf32>
    %17 = math.rsqrt %16 : vector<8x1xf32>
    %c0_7 = arith.constant 0 : index
    %c0_8 = arith.constant 0 : index
    %18 = vector.load %arg4[%c0_7, %c0_8] : memref<8x16xbf16, #tpu.memory_space<vmem>>, vector<8x16xbf16>
    %c0_9 = arith.constant 0 : index
    %c0_10 = arith.constant 0 : index
    %19 = vector.load %arg5[%c0_9, %c0_10] : memref<32x1xf32, #tpu.memory_space<vmem>>, vector<32x1xf32>
    %c0_11 = arith.constant 0 : index
    %c0_12 = arith.constant 0 : index
    %c0_13 = arith.constant 0 : index
    %c0_14 = arith.constant 0 : index
    %20 = vector.load %arg3[%c0_11, %c0_12, %c0_13, %c0_14] : memref<1x32x16x8xbf16, #tpu.memory_space<vmem>>, vector<1x32x1x8xbf16>
    %21 = vector.shape_cast %20 : vector<1x32x1x8xbf16> to vector<32x8xbf16>
    %cst_15 = arith.constant dense<0.000000e+00> : vector<32x16xf32>
    %22 = tpu.matmul %21, %18, %cst_15 {dimension_numbers = #tpu.dot_dimension_numbers<[1], [0], [0], [1], [0, 0, 1, 1], [], []>} : vector<32x8xbf16>, vector<8x16xbf16>, vector<32x16xf32> -> vector<32x16xf32>
    %23 = vector.broadcast %19 : vector<32x1xf32> to vector<32x16xf32>
    %24 = arith.addf %22, %23 : vector<32x16xf32>
    %cst_16 = arith.constant 0.000000e+00 : f32
    %25 = vector.broadcast %cst_16 : f32 to vector<32x16xf32>
    %26 = arith.maximumf %24, %25 : vector<32x16xf32>
    %c0_17 = arith.constant 0 : index
    %c0_18 = arith.constant 0 : index
    %c1 = arith.constant 1 : index
    %c0_19 = arith.constant 0 : index
    %27 = vector.load %arg3[%c0_17, %c0_18, %c1, %c0_19] : memref<1x32x16x8xbf16, #tpu.memory_space<vmem>>, vector<1x32x1x8xbf16>
    %28 = vector.shape_cast %27 : vector<1x32x1x8xbf16> to vector<32x8xbf16>
    %cst_20 = arith.constant dense<0.000000e+00> : vector<32x16xf32>
    %29 = tpu.matmul %28, %18, %cst_20 {dimension_numbers = #tpu.dot_dimension_numbers<[1], [0], [0], [1], [0, 0, 1, 1], [], []>} : vector<32x8xbf16>, vector<8x16xbf16>, vector<32x16xf32> -> vector<32x16xf32>
    %30 = vector.broadcast %19 : vector<32x1xf32> to vector<32x16xf32>
    %31 = arith.addf %29, %30 : vector<32x16xf32>
    %cst_21 = arith.constant 0.000000e+00 : f32
    %32 = vector.broadcast %cst_21 : f32 to vector<32x16xf32>
    %33 = arith.maximumf %31, %32 : vector<32x16xf32>
    %c0_22 = arith.constant 0 : index
    %c0_23 = arith.constant 0 : index
    %c2 = arith.constant 2 : index
    %c0_24 = arith.constant 0 : index
    %34 = vector.load %arg3[%c0_22, %c0_23, %c2, %c0_24] : memref<1x32x16x8xbf16, #tpu.memory_space<vmem>>, vector<1x32x1x8xbf16>
    %35 = vector.shape_cast %34 : vector<1x32x1x8xbf16> to vector<32x8xbf16>
    %cst_25 = arith.constant dense<0.000000e+00> : vector<32x16xf32>
    %36 = tpu.matmul %35, %18, %cst_25 {dimension_numbers = #tpu.dot_dimension_numbers<[1], [0], [0], [1], [0, 0, 1, 1], [], []>} : vector<32x8xbf16>, vector<8x16xbf16>, vector<32x16xf32> -> vector<32x16xf32>
    %37 = vector.broadcast %19 : vector<32x1xf32> to vector<32x16xf32>
    %38 = arith.addf %36, %37 : vector<32x16xf32>
    %cst_26 = arith.constant 0.000000e+00 : f32
    %39 = vector.broadcast %cst_26 : f32 to vector<32x16xf32>
    %40 = arith.maximumf %38, %39 : vector<32x16xf32>
    %c0_27 = arith.constant 0 : index
    %c0_28 = arith.constant 0 : index
    %c3 = arith.constant 3 : index
    %c0_29 = arith.constant 0 : index
    %41 = vector.load %arg3[%c0_27, %c0_28, %c3, %c0_29] : memref<1x32x16x8xbf16, #tpu.memory_space<vmem>>, vector<1x32x1x8xbf16>
    %42 = vector.shape_cast %41 : vector<1x32x1x8xbf16> to vector<32x8xbf16>
    %cst_30 = arith.constant dense<0.000000e+00> : vector<32x16xf32>
    %43 = tpu.matmul %42, %18, %cst_30 {dimension_numbers = #tpu.dot_dimension_numbers<[1], [0], [0], [1], [0, 0, 1, 1], [], []>} : vector<32x8xbf16>, vector<8x16xbf16>, vector<32x16xf32> -> vector<32x16xf32>
    %44 = vector.broadcast %19 : vector<32x1xf32> to vector<32x16xf32>
    %45 = arith.addf %43, %44 : vector<32x16xf32>
    %cst_31 = arith.constant 0.000000e+00 : f32
    %46 = vector.broadcast %cst_31 : f32 to vector<32x16xf32>
    %47 = arith.maximumf %45, %46 : vector<32x16xf32>
    %c0_32 = arith.constant 0 : index
    %c0_33 = arith.constant 0 : index
    %c4 = arith.constant 4 : index
    %c0_34 = arith.constant 0 : index
    %48 = vector.load %arg3[%c0_32, %c0_33, %c4, %c0_34] : memref<1x32x16x8xbf16, #tpu.memory_space<vmem>>, vector<1x32x1x8xbf16>
    %49 = vector.shape_cast %48 : vector<1x32x1x8xbf16> to vector<32x8xbf16>
    %cst_35 = arith.constant dense<0.000000e+00> : vector<32x16xf32>
    %50 = tpu.matmul %49, %18, %cst_35 {dimension_numbers = #tpu.dot_dimension_numbers<[1], [0], [0], [1], [0, 0, 1, 1], [], []>} : vector<32x8xbf16>, vector<8x16xbf16>, vector<32x16xf32> -> vector<32x16xf32>
    %51 = vector.broadcast %19 : vector<32x1xf32> to vector<32x16xf32>
    %52 = arith.addf %50, %51 : vector<32x16xf32>
    %cst_36 = arith.constant 0.000000e+00 : f32
    %53 = vector.broadcast %cst_36 : f32 to vector<32x16xf32>
    %54 = arith.maximumf %52, %53 : vector<32x16xf32>
    %c0_37 = arith.constant 0 : index
    %c0_38 = arith.constant 0 : index
    %c5 = arith.constant 5 : index
    %c0_39 = arith.constant 0 : index
    %55 = vector.load %arg3[%c0_37, %c0_38, %c5, %c0_39] : memref<1x32x16x8xbf16, #tpu.memory_space<vmem>>, vector<1x32x1x8xbf16>
    %56 = vector.shape_cast %55 : vector<1x32x1x8xbf16> to vector<32x8xbf16>
    %cst_40 = arith.constant dense<0.000000e+00> : vector<32x16xf32>
    %57 = tpu.matmul %56, %18, %cst_40 {dimension_numbers = #tpu.dot_dimension_numbers<[1], [0], [0], [1], [0, 0, 1, 1], [], []>} : vector<32x8xbf16>, vector<8x16xbf16>, vector<32x16xf32> -> vector<32x16xf32>
    %58 = vector.broadcast %19 : vector<32x1xf32> to vector<32x16xf32>
    %59 = arith.addf %57, %58 : vector<32x16xf32>
    %cst_41 = arith.constant 0.000000e+00 : f32
    %60 = vector.broadcast %cst_41 : f32 to vector<32x16xf32>
    %61 = arith.maximumf %59, %60 : vector<32x16xf32>
    %c0_42 = arith.constant 0 : index
    %c0_43 = arith.constant 0 : index
    %c6 = arith.constant 6 : index
    %c0_44 = arith.constant 0 : index
    %62 = vector.load %arg3[%c0_42, %c0_43, %c6, %c0_44] : memref<1x32x16x8xbf16, #tpu.memory_space<vmem>>, vector<1x32x1x8xbf16>
    %63 = vector.shape_cast %62 : vector<1x32x1x8xbf16> to vector<32x8xbf16>
    %cst_45 = arith.constant dense<0.000000e+00> : vector<32x16xf32>
    %64 = tpu.matmul %63, %18, %cst_45 {dimension_numbers = #tpu.dot_dimension_numbers<[1], [0], [0], [1], [0, 0, 1, 1], [], []>} : vector<32x8xbf16>, vector<8x16xbf16>, vector<32x16xf32> -> vector<32x16xf32>
    %65 = vector.broadcast %19 : vector<32x1xf32> to vector<32x16xf32>
    %66 = arith.addf %64, %65 : vector<32x16xf32>
    %cst_46 = arith.constant 0.000000e+00 : f32
    %67 = vector.broadcast %cst_46 : f32 to vector<32x16xf32>
    %68 = arith.maximumf %66, %67 : vector<32x16xf32>
    %c0_47 = arith.constant 0 : index
    %c0_48 = arith.constant 0 : index
    %c7 = arith.constant 7 : index
    %c0_49 = arith.constant 0 : index
    %69 = vector.load %arg3[%c0_47, %c0_48, %c7, %c0_49] : memref<1x32x16x8xbf16, #tpu.memory_space<vmem>>, vector<1x32x1x8xbf16>
    %70 = vector.shape_cast %69 : vector<1x32x1x8xbf16> to vector<32x8xbf16>
    %cst_50 = arith.constant dense<0.000000e+00> : vector<32x16xf32>
    %71 = tpu.matmul %70, %18, %cst_50 {dimension_numbers = #tpu.dot_dimension_numbers<[1], [0], [0], [1], [0, 0, 1, 1], [], []>} : vector<32x8xbf16>, vector<8x16xbf16>, vector<32x16xf32> -> vector<32x16xf32>
    %72 = vector.broadcast %19 : vector<32x1xf32> to vector<32x16xf32>
    %73 = arith.addf %71, %72 : vector<32x16xf32>
    %cst_51 = arith.constant 0.000000e+00 : f32
    %74 = vector.broadcast %cst_51 : f32 to vector<32x16xf32>
    %75 = arith.maximumf %73, %74 : vector<32x16xf32>
    %c0_52 = arith.constant 0 : index
    %c0_53 = arith.constant 0 : index
    %c8 = arith.constant 8 : index
    %c0_54 = arith.constant 0 : index
    %76 = vector.load %arg3[%c0_52, %c0_53, %c8, %c0_54] : memref<1x32x16x8xbf16, #tpu.memory_space<vmem>>, vector<1x32x1x8xbf16>
    %77 = vector.shape_cast %76 : vector<1x32x1x8xbf16> to vector<32x8xbf16>
    %cst_55 = arith.constant dense<0.000000e+00> : vector<32x16xf32>
    %78 = tpu.matmul %77, %18, %cst_55 {dimension_numbers = #tpu.dot_dimension_numbers<[1], [0], [0], [1], [0, 0, 1, 1], [], []>} : vector<32x8xbf16>, vector<8x16xbf16>, vector<32x16xf32> -> vector<32x16xf32>
    %79 = vector.broadcast %19 : vector<32x1xf32> to vector<32x16xf32>
    %80 = arith.addf %78, %79 : vector<32x16xf32>
    %cst_56 = arith.constant 0.000000e+00 : f32
    %81 = vector.broadcast %cst_56 : f32 to vector<32x16xf32>
    %82 = arith.maximumf %80, %81 : vector<32x16xf32>
    %c0_57 = arith.constant 0 : index
    %c0_58 = arith.constant 0 : index
    %c9 = arith.constant 9 : index
    %c0_59 = arith.constant 0 : index
    %83 = vector.load %arg3[%c0_57, %c0_58, %c9, %c0_59] : memref<1x32x16x8xbf16, #tpu.memory_space<vmem>>, vector<1x32x1x8xbf16>
    %84 = vector.shape_cast %83 : vector<1x32x1x8xbf16> to vector<32x8xbf16>
    %cst_60 = arith.constant dense<0.000000e+00> : vector<32x16xf32>
    %85 = tpu.matmul %84, %18, %cst_60 {dimension_numbers = #tpu.dot_dimension_numbers<[1], [0], [0], [1], [0, 0, 1, 1], [], []>} : vector<32x8xbf16>, vector<8x16xbf16>, vector<32x16xf32> -> vector<32x16xf32>
    %86 = vector.broadcast %19 : vector<32x1xf32> to vector<32x16xf32>
    %87 = arith.addf %85, %86 : vector<32x16xf32>
    %cst_61 = arith.constant 0.000000e+00 : f32
    %88 = vector.broadcast %cst_61 : f32 to vector<32x16xf32>
    %89 = arith.maximumf %87, %88 : vector<32x16xf32>
    %c0_62 = arith.constant 0 : index
    %c0_63 = arith.constant 0 : index
    %c10 = arith.constant 10 : index
    %c0_64 = arith.constant 0 : index
    %90 = vector.load %arg3[%c0_62, %c0_63, %c10, %c0_64] : memref<1x32x16x8xbf16, #tpu.memory_space<vmem>>, vector<1x32x1x8xbf16>
    %91 = vector.shape_cast %90 : vector<1x32x1x8xbf16> to vector<32x8xbf16>
    %cst_65 = arith.constant dense<0.000000e+00> : vector<32x16xf32>
    %92 = tpu.matmul %91, %18, %cst_65 {dimension_numbers = #tpu.dot_dimension_numbers<[1], [0], [0], [1], [0, 0, 1, 1], [], []>} : vector<32x8xbf16>, vector<8x16xbf16>, vector<32x16xf32> -> vector<32x16xf32>
    %93 = vector.broadcast %19 : vector<32x1xf32> to vector<32x16xf32>
    %94 = arith.addf %92, %93 : vector<32x16xf32>
    %cst_66 = arith.constant 0.000000e+00 : f32
    %95 = vector.broadcast %cst_66 : f32 to vector<32x16xf32>
    %96 = arith.maximumf %94, %95 : vector<32x16xf32>
    %c0_67 = arith.constant 0 : index
    %c0_68 = arith.constant 0 : index
    %c11 = arith.constant 11 : index
    %c0_69 = arith.constant 0 : index
    %97 = vector.load %arg3[%c0_67, %c0_68, %c11, %c0_69] : memref<1x32x16x8xbf16, #tpu.memory_space<vmem>>, vector<1x32x1x8xbf16>
    %98 = vector.shape_cast %97 : vector<1x32x1x8xbf16> to vector<32x8xbf16>
    %cst_70 = arith.constant dense<0.000000e+00> : vector<32x16xf32>
    %99 = tpu.matmul %98, %18, %cst_70 {dimension_numbers = #tpu.dot_dimension_numbers<[1], [0], [0], [1], [0, 0, 1, 1], [], []>} : vector<32x8xbf16>, vector<8x16xbf16>, vector<32x16xf32> -> vector<32x16xf32>
    %100 = vector.broadcast %19 : vector<32x1xf32> to vector<32x16xf32>
    %101 = arith.addf %99, %100 : vector<32x16xf32>
    %cst_71 = arith.constant 0.000000e+00 : f32
    %102 = vector.broadcast %cst_71 : f32 to vector<32x16xf32>
    %103 = arith.maximumf %101, %102 : vector<32x16xf32>
    %c0_72 = arith.constant 0 : index
    %c0_73 = arith.constant 0 : index
    %c12 = arith.constant 12 : index
    %c0_74 = arith.constant 0 : index
    %104 = vector.load %arg3[%c0_72, %c0_73, %c12, %c0_74] : memref<1x32x16x8xbf16, #tpu.memory_space<vmem>>, vector<1x32x1x8xbf16>
    %105 = vector.shape_cast %104 : vector<1x32x1x8xbf16> to vector<32x8xbf16>
    %cst_75 = arith.constant dense<0.000000e+00> : vector<32x16xf32>
    %106 = tpu.matmul %105, %18, %cst_75 {dimension_numbers = #tpu.dot_dimension_numbers<[1], [0], [0], [1], [0, 0, 1, 1], [], []>} : vector<32x8xbf16>, vector<8x16xbf16>, vector<32x16xf32> -> vector<32x16xf32>
    %107 = vector.broadcast %19 : vector<32x1xf32> to vector<32x16xf32>
    %108 = arith.addf %106, %107 : vector<32x16xf32>
    %cst_76 = arith.constant 0.000000e+00 : f32
    %109 = vector.broadcast %cst_76 : f32 to vector<32x16xf32>
    %110 = arith.maximumf %108, %109 : vector<32x16xf32>
    %c0_77 = arith.constant 0 : index
    %c0_78 = arith.constant 0 : index
    %c13 = arith.constant 13 : index
    %c0_79 = arith.constant 0 : index
    %111 = vector.load %arg3[%c0_77, %c0_78, %c13, %c0_79] : memref<1x32x16x8xbf16, #tpu.memory_space<vmem>>, vector<1x32x1x8xbf16>
    %112 = vector.shape_cast %111 : vector<1x32x1x8xbf16> to vector<32x8xbf16>
    %cst_80 = arith.constant dense<0.000000e+00> : vector<32x16xf32>
    %113 = tpu.matmul %112, %18, %cst_80 {dimension_numbers = #tpu.dot_dimension_numbers<[1], [0], [0], [1], [0, 0, 1, 1], [], []>} : vector<32x8xbf16>, vector<8x16xbf16>, vector<32x16xf32> -> vector<32x16xf32>
    %114 = vector.broadcast %19 : vector<32x1xf32> to vector<32x16xf32>
    %115 = arith.addf %113, %114 : vector<32x16xf32>
    %cst_81 = arith.constant 0.000000e+00 : f32
    %116 = vector.broadcast %cst_81 : f32 to vector<32x16xf32>
    %117 = arith.maximumf %115, %116 : vector<32x16xf32>
    %c0_82 = arith.constant 0 : index
    %c0_83 = arith.constant 0 : index
    %c14 = arith.constant 14 : index
    %c0_84 = arith.constant 0 : index
    %118 = vector.load %arg3[%c0_82, %c0_83, %c14, %c0_84] : memref<1x32x16x8xbf16, #tpu.memory_space<vmem>>, vector<1x32x1x8xbf16>
    %119 = vector.shape_cast %118 : vector<1x32x1x8xbf16> to vector<32x8xbf16>
    %cst_85 = arith.constant dense<0.000000e+00> : vector<32x16xf32>
    %120 = tpu.matmul %119, %18, %cst_85 {dimension_numbers = #tpu.dot_dimension_numbers<[1], [0], [0], [1], [0, 0, 1, 1], [], []>} : vector<32x8xbf16>, vector<8x16xbf16>, vector<32x16xf32> -> vector<32x16xf32>
    %121 = vector.broadcast %19 : vector<32x1xf32> to vector<32x16xf32>
    %122 = arith.addf %120, %121 : vector<32x16xf32>
    %cst_86 = arith.constant 0.000000e+00 : f32
    %123 = vector.broadcast %cst_86 : f32 to vector<32x16xf32>
    %124 = arith.maximumf %122, %123 : vector<32x16xf32>
    %c0_87 = arith.constant 0 : index
    %c0_88 = arith.constant 0 : index
    %c15 = arith.constant 15 : index
    %c0_89 = arith.constant 0 : index
    %125 = vector.load %arg3[%c0_87, %c0_88, %c15, %c0_89] : memref<1x32x16x8xbf16, #tpu.memory_space<vmem>>, vector<1x32x1x8xbf16>
    %126 = vector.shape_cast %125 : vector<1x32x1x8xbf16> to vector<32x8xbf16>
    %cst_90 = arith.constant dense<0.000000e+00> : vector<32x16xf32>
    %127 = tpu.matmul %126, %18, %cst_90 {dimension_numbers = #tpu.dot_dimension_numbers<[1], [0], [0], [1], [0, 0, 1, 1], [], []>} : vector<32x8xbf16>, vector<8x16xbf16>, vector<32x16xf32> -> vector<32x16xf32>
    %128 = vector.broadcast %19 : vector<32x1xf32> to vector<32x16xf32>
    %129 = arith.addf %127, %128 : vector<32x16xf32>
    %cst_91 = arith.constant 0.000000e+00 : f32
    %130 = vector.broadcast %cst_91 : f32 to vector<32x16xf32>
    %131 = arith.maximumf %129, %130 : vector<32x16xf32>
    %132 = tpu.concatenate %26, %33, %40, %47, %54, %61, %68, %75, %82, %89, %96, %103, %110, %117, %124, %131 in 1 : vector<32x16xf32>, vector<32x16xf32>, vector<32x16xf32>, vector<32x16xf32>, vector<32x16xf32>, vector<32x16xf32>, vector<32x16xf32>, vector<32x16xf32>, vector<32x16xf32>, vector<32x16xf32>, vector<32x16xf32>, vector<32x16xf32>, vector<32x16xf32>, vector<32x16xf32>, vector<32x16xf32>, vector<32x16xf32> -> vector<32x256xf32>
    %133 = arith.truncf %132 : vector<32x256xf32> to vector<32x256xbf16>
    %cst_92 = arith.constant 0.000000e+00 : f32
    %134 = vector.broadcast %cst_92 : f32 to vector<8x1xf32>
    %135 = arith.subf %134, %5 : vector<8x1xf32>
    %136 = arith.mulf %135, %17 : vector<8x1xf32>
    %137 = vector.broadcast %17 : vector<8x1xf32> to vector<8x256xf32>
    %138 = arith.mulf %1, %137 : vector<8x256xf32>
    %139 = vector.broadcast %136 : vector<8x1xf32> to vector<8x256xf32>
    %140 = arith.addf %138, %139 : vector<8x256xf32>
    %c0_93 = arith.constant 0 : index
    %c0_94 = arith.constant 0 : index
    %141 = vector.load %arg6[%c0_93, %c0_94] : memref<16x32xbf16, #tpu.memory_space<vmem>>, vector<16x32xbf16>
    %cst_95 = arith.constant dense<0.000000e+00> : vector<16x256xf32>
    %142 = tpu.matmul %141, %133, %cst_95 {dimension_numbers = #tpu.dot_dimension_numbers<[1], [0], [0], [1], [0, 0, 1, 1], [], []>} : vector<16x32xbf16>, vector<32x256xbf16>, vector<16x256xf32> -> vector<16x256xf32>
    %c0_96 = arith.constant 0 : index
    %c0_97 = arith.constant 0 : index
    %143 = vector.load %arg7[%c0_96, %c0_97] : memref<16x1xf32, #tpu.memory_space<vmem>>, vector<16x1xf32>
    %144 = vector.broadcast %143 : vector<16x1xf32> to vector<16x256xf32>
    %145 = arith.addf %142, %144 : vector<16x256xf32>
    %146 = vector.extract_strided_slice %145 {offsets = [0, 0], sizes = [8, 256], strides = [1, 1]} : vector<16x256xf32> to vector<8x256xf32>
    %147 = vector.extract_strided_slice %145 {offsets = [8, 0], sizes = [8, 256], strides = [1, 1]} : vector<16x256xf32> to vector<8x256xf32>
    %148 = arith.mulf %140, %146 : vector<8x256xf32>
    %149 = arith.addf %148, %147 : vector<8x256xf32>
    %cst_98 = arith.constant 1.000000e-01 : f32
    %150 = vector.broadcast %cst_98 : f32 to vector<8x256xf32>
    %151 = arith.mulf %150, %1 : vector<8x256xf32>
    %152 = arith.addf %149, %151 : vector<8x256xf32>
    %c0_99 = arith.constant 0 : index
    %c0_100 = arith.constant 0 : index
    %c0_101 = arith.constant 0 : index
    %153 = vector.load %arg8[%c0_99, %c0_100, %c0_101] : memref<1x8x256xf32, #tpu.memory_space<vmem>>, vector<1x8x256xf32>
    %154 = vector.shape_cast %153 : vector<1x8x256xf32> to vector<8x256xf32>
    %155 = vector.shape_cast %152 : vector<8x256xf32> to vector<1x8x256xf32>
    tpu.vector_store %arg8[%c0_99, %c0_100, %c0_101], %155 {strides = array<i32>} : memref<1x8x256xf32, #tpu.memory_space<vmem>>, vector<1x8x256xf32>,
    return
  }
  func.func @transform_0(%arg0: i32, %arg1: i32) -> (i32, i32, i32) {
    %c0_i32 = arith.constant 0 : i32
    %c0_i32_0 = arith.constant 0 : i32
    return %arg0, %c0_i32, %arg1 : i32, i32, i32
  }
  func.func @transform_1(%arg0: i32, %arg1: i32) -> (i32, i32, i32, i32) {
    %c0_i32 = arith.constant 0 : i32
    %c0_i32_0 = arith.constant 0 : i32
    %c0_i32_1 = arith.constant 0 : i32
    return %arg0, %c0_i32, %arg1, %c0_i32_0 : i32, i32, i32, i32
  }
  func.func @transform_2(%arg0: i32, %arg1: i32) -> (i32, i32) {
    %c0_i32 = arith.constant 0 : i32
    %c0_i32_0 = arith.constant 0 : i32
    %c0_i32_1 = arith.constant 0 : i32
    return %c0_i32, %c0_i32_0 : i32, i32
  }
  func.func @transform_3(%arg0: i32, %arg1: i32) -> (i32, i32) {
    %c0_i32 = arith.constant 0 : i32
    %c0_i32_0 = arith.constant 0 : i32
    %c0_i32_1 = arith.constant 0 : i32
    return %c0_i32, %c0_i32_0 : i32, i32
  }
  func.func @transform_4(%arg0: i32, %arg1: i32) -> (i32, i32) {
    %c0_i32 = arith.constant 0 : i32
    %c0_i32_0 = arith.constant 0 : i32
    %c0_i32_1 = arith.constant 0 : i32
    return %c0_i32, %c0_i32_0 : i32, i32
  }
  func.func @transform_5(%arg0: i32, %arg1: i32) -> (i32, i32) {
    %c0_i32 = arith.constant 0 : i32
    %c0_i32_0 = arith.constant 0 : i32
    %c0_i32_1 = arith.constant 0 : i32
    return %c0_i32, %c0_i32_0 : i32, i32
  }
  func.func @transform_6(%arg0: i32, %arg1: i32) -> (i32, i32, i32) {
    %c0_i32 = arith.constant 0 : i32
    %c0_i32_0 = arith.constant 0 : i32
    return %arg0, %c0_i32, %arg1 : i32, i32, i32
  }
}

</mosaic_0001>

<bundles_post_ra>
// kernel: tpu_custom_call.1
= control target key start
LH: loop header
LB: loop body
LE: loop exit
PB: predicated region body
PF: predicated region fallthrough
CT: control target
= control target key end

     0   :  { %11 = vsyncpa [#allocation3], 0  ;;  %s7106_s0 = inlined_call_operand.vmem [shape: f32[2,8,256], index: 0, kind: input, shape index: {}]   ;;  %s7107_s1 = inlined_call_operand.vmem [shape: bf16[2,32,16,8], index: 1, kind: input, shape index: {}]   ;;  %s7108_s2 = inlined_call_operand.vmem [shape: bf16[8,16], index: 2, kind: input, shape index: {}]   ;;  %s7109_s3 = inlined_call_operand.vmem [shape: f32[32,1], index: 3, kind: input, shape index: {}]   ;;  %s7110_s4 = inlined_call_operand.vmem [shape: bf16[16,32], index: 4, kind: input, shape index: {}]   ;;  %s7111_s5 = inlined_call_operand.vmem [shape: f32[16,1], index: 5, kind: input, shape index: {}]   ;;  %s7112_s6 = inlined_call_operand.hbm [shape: f32[2,8,256], index: 6, kind: output, shape index: {}]  }
   0x1   :  { %13 = vsyncpa [#allocation3 + $0x1], 0  ;;  %s5063_s21 = smov 0   ;;  %s5065_s22 = smov 0  }
   0x2   :  { %s5067_s23 = smov 0   ;;  %s5069_s24 = smov 0  }
   0x3   :  { %s5071_s25 = smov 0   ;;  %s5073_s26 = smov 0  }
   0x4 LB: > { %s4007_s27 = sadd.s32 4294967295, %s5017_s26   ;;  %s4008_s28 = sadd.s32 4294967294, %s5017_s26   ;;  %s5017_s26 = sphi %s5073_s26, %s19_s26   ;;  %s5013_s25 = sphi %s5071_s25, %s7119_s25   ;;  %s5009_s24 = sphi %s5069_s24, %s7118_s24   ;;  %s5005_s23 = sphi %s5067_s23, %s7117_s23   ;;  %s5001_s22 = sphi %s5065_s22, %s7116_s22   ;;  %s4997_s21 = sphi %s5063_s21, %s7115_s21  }
   0x5   : > { %s31_s29 = sadd.s32 1, %s5013_s25  ;;  %s180_s30 = sadd.s32 1, %s5005_s23 }
   0x6   : > { %p33_p0 = scmp.ge.s32.totalorder %s31_s29, 2  ;;  %p190_p1 = scmp.ne.s32.totalorder %s5005_s23, %s5001_s22 }
   0x7   : > { %p191_p2 = scmp.eq.s32.totalorder %s4007_s27, 1  ;;  %p196_p3 = scmp.ne.s32.totalorder %s5001_s22, %s4997_s21 }
   0x8   : > { %s7121_s29 = smov (%p33_p0, %s31_s29), 0  ;;  %p197_p5 = scmp.eq.s32.totalorder %s4008_s28, 1 }
   0x9   : > { %p5103_p4 = por %p191_p2, %p190_p1  ;;  %s175_s8 = ssub.s32 %s5013_s25, %s7121_s29 }
   0xa   : > { %p4011_p6 = scmp.ge.s32.totalorder %s5017_s26, 1  ;;  %p178_p7 = scmp.eq.s32.totalorder %s175_s8, 0 }
   0xb   : > { %p5110_p8 = por %p197_p5, %p196_p3  ;;  %p253_p9 = scmp.lt.s32.totalorder %s5017_s26, 3 }
   0xc   : > { %s5116_s10 = scalar_select %p178_p7, %s5005_s23, %s180_s30  }
   0xd   : > { %p254_p10 = pnand %p4011_p6, %p253_p9 }
   0xe   : > { %p297_p11 = scmp.lt.s32.totalorder (!%p254_p10), %s5009_s24, 1  ;;  %s5021_s18 = smov (!%p254_p10), 32  }
   0xf   : > { %257 = sbr.rel (%p254_p10) target bundleno = 882 (0x372), region = 44  ;;  %s5022_s19 = smov (!%p254_p10), 48  }
  0x10   : > { %s5023_s20 = smov (!%p254_p10), 64   ;;  %s5024_s27 = smov (!%p254_p10), 80  }
  0x11   : > { %s5025_s28 = smov (!%p254_p10), 96   ;;  %s5026_s30 = smov (!%p254_p10), 112  }
  0x14   : > { %v5121_v0 = vld [vmem:[%s7108_s2] sm:$0xf]  ;;  %vm592_vm0 = vcmask 1043456   ;;  %s5135_s13 = scalar_select %p297_p11, %s5009_s24, 1  ;;  %vm521_vm1 = vcmask 1041409   ;;  %vm524_vm2 = vcmask 1042434  }
  0x15   : > { %4459 = vmatprep.subr.msk.bf16.mxu0 %vm592_vm0, %v5121_v0  ;;  %4460 = vmatprep.subr.msk.bf16.mxu1 %vm592_vm0, %v5121_v0  ;;  %v5130_v1 = vsel %vm592_vm0, %v5121_v0, 0  ;;  %vm527_vm3 = vcmask 1043459   ;;  %vm530_vm4 = vcmask 1044484   ;;  %vm533_vm5 = vcmask 1045509  }
  0x16   : > { %4364 = vmatpush3.bf16.msra.mxu0 %v5130_v1  ;;  %4370 = vmatpush3.bf16.msra.mxu1 %v5130_v1  ;;  %s4313_s14 = sshll.u32 %s5135_s13, 8  ;;  %vm536_vm6 = vcmask 1046534   ;;  %vm539_vm7 = vcmask 1047559   ;;  %vm585_vm8 = vcmask 64512   ;;  %s4312_s8 = sshll.u32 %s5135_s13, 4  ;;  %vm3748_vm9 = vcmask 130048  }
  0x17   : > { %4461 = vmatprep.subr.msk.bf16.mxu0 %vm592_vm0, %v5121_v0  ;;  %4462 = vmatprep.subr.msk.bf16.mxu1 %vm592_vm0, %v5121_v0  ;;  %s5145_s17 = scalar_lea.vmem %s7107_s1, %s4313_s14  ;;  %s304_s14 = scalar_lea.vmem %s7106_s0, %s4312_s8  ;;  %vm3753_vm10 = vcmask 261120   ;;  %vm3758_vm11 = vcmask 392192   ;;  %vm3763_vm12 = vcmask 523264   ;;  %vm3768_vm13 = vcmask 654336  }
  0x18   : > { %v4680_v2 = vld [vmem:[%s5145_s17] ss:$0 sps:$4 sm:$0x11]   ;;  %v5149_v3 = vld [vmem:[%s5145_s17 + $0x8] ss:$0 sps:$4 sm:$0x11]  }
  0x19   : > { %v4682_v4 = vld [vmem:[%s5145_s17 + $0x10] ss:$0 sps:$4 sm:$0x11]   ;;  %v4683_v5 = vld [vmem:[%s5145_s17 + $0x18] ss:$0 sps:$4 sm:$0x11]   ;;  %v489_v11 = vunpack.c.l.b16 %v5149_v3  ;;  %v488_v19 = vunpack.c.l.b16 %v4680_v2 }
  0x1a   : > { %v4684_v6 = vld [vmem:[%s5145_s17 + $0x20] ss:$0 sps:$4 sm:$0x11]   ;;  %v4685_v7 = vld [vmem:[%s5145_s17 + $0x28] ss:$0 sps:$4 sm:$0x11]   ;;  %v490_v12 = vunpack.c.l.b16 %v4682_v4  ;;  %v491_v15 = vunpack.c.l.b16 %v4683_v5 }
  0x1b   : > { %v5156_v8 = vld [vmem:[%s5145_s17 + $0x30] ss:$0 sps:$4 sm:$0x11]   ;;  %v4687_v9 = vld [vmem:[%s5145_s17 + $0x38] ss:$0 sps:$4 sm:$0x11]   ;;  %v492_v16 = vunpack.c.l.b16 %v4684_v6  ;;  %v493_v20 = vunpack.c.l.b16 %v4685_v7 }
  0x1c   : > { %v5160_v10 = vld [vmem:[%s5145_s17 + $0x40] ss:$0 sps:$4 sm:$0x11]   ;;  %v5164_v13 = vld [vmem:[%s5145_s17 + $0x48] ss:$0 sps:$4 sm:$0x11]   ;;  %v494_v21 = vunpack.c.l.b16 %v5156_v8  ;;  %v495_v24 = vunpack.c.l.b16 %v4687_v9 }
  0x1d   : > { %v4690_v14 = vld [vmem:[%s5145_s17 + $0x50] ss:$0 sps:$4 sm:$0x11]   ;;  %v4691_v17 = vld [vmem:[%s5145_s17 + $0x58] ss:$0 sps:$4 sm:$0x11]   ;;  %v496_v25 = vunpack.c.l.b16 %v5160_v10  ;;  %v497_v26 = vunpack.c.l.b16 %v5164_v13 }
  0x1e   : > { %v4692_v18 = vld [vmem:[%s5145_s17 + $0x60] ss:$0 sps:$4 sm:$0x11]   ;;  %v4693_v22 = vld [vmem:[%s5145_s17 + $0x68] ss:$0 sps:$4 sm:$0x11]   ;;  %v498_v27 = vunpack.c.l.b16 %v4690_v14  ;;  %v499_v29 = vunpack.c.l.b16 %v4691_v17 }
  0x1f   : > { %v5172_v23 = vld [vmem:[%s5145_s17 + $0x70] ss:$0 sps:$4 sm:$0x11]   ;;  %v4695_v28 = vld [vmem:[%s5145_s17 + $0x78] ss:$0 sps:$4 sm:$0x11]   ;;  %v500_v30 = vunpack.c.l.b16 %v4692_v18  ;;  %v501_v33 = vunpack.c.l.b16 %v4693_v22 }
  0x20   : > { %v520_v31 = vrot.slane %v489_v11, 7  ;;  %v523_v32 = vrot.slane %v490_v12, 6  ;;  %v502_v34 = vunpack.c.l.b16 %v5172_v23  ;;  %v526_v35 = vrot.slane %v491_v15, 5 }
  0x21   : > { %v529_v36 = vrot.slane %v492_v16, 4  ;;  %v503_v37 = vunpack.c.l.b16 %v4695_v28  ;;  %v532_v39 = vrot.slane %v493_v20, 3  ;;  %v535_v40 = vrot.slane %v494_v21, 2 }
  0x22   : > { %v522_v38 = vsel %vm521_vm1, %v520_v31, %v488_v19  ;;  %v538_v42 = vrot.slane %v495_v24, 1  ;;  %v541_v43 = vrot.slane %v497_v26, 7  ;;  %v543_v44 = vrot.slane %v498_v27, 6 }
  0x23   : > { %v525_v41 = vsel %vm524_vm2, %v523_v32, %v522_v38  ;;  %v545_v46 = vrot.slane %v499_v29, 5  ;;  %v547_v47 = vrot.slane %v500_v30, 4  ;;  %v549_v48 = vrot.slane %v501_v33, 3  ;;  %v5221_v32 = vld [vmem:[%s5145_s17 + $0xb0] ss:$0 sps:$4 sm:$0x11]  }
  0x24   : > { %v528_v45 = vsel %vm527_vm3, %v526_v35, %v525_v41  ;;  %v542_v50 = vsel %vm521_vm1, %v541_v43, %v496_v25  ;;  %v551_v51 = vrot.slane %v502_v34, 2  ;;  %v553_v52 = vrot.slane %v503_v37, 1  ;;  %v5228_v35 = vld [vmem:[%s5145_s17 + $0xc0] ss:$0 sps:$4 sm:$0x11]  }
  0x25   : > { %v531_v49 = vsel %vm530_vm4, %v529_v36, %v528_v45  ;;  %v544_v54 = vsel %vm524_vm2, %v543_v44, %v542_v50  ;;  %v649_v55 = vrot.slane %v488_v19, 1  ;;  %v651_v56 = vrot.slane %v490_v12, 7  ;;  %v5195_v12 = vld [vmem:[%s5145_s17 + $0x80] ss:$0 sps:$4 sm:$0x11]  }
  0x26   : > { %v534_v53 = vsel %vm533_vm5, %v532_v39, %v531_v49  ;;  %v546_v58 = vsel %vm527_vm3, %v545_v46, %v544_v54  ;;  %v653_v59 = vrot.slane %v491_v15, 6  ;;  %v655_v60 = vrot.slane %v492_v16, 5  ;;  %v5200_v16 = vld [vmem:[%s5145_s17 + $0x88] ss:$0 sps:$4 sm:$0x11]  }
  0x27   : > { %v537_v57 = vsel %vm536_vm6, %v535_v40, %v534_v53  ;;  %v548_v62 = vsel %vm530_vm4, %v547_v47, %v546_v58  ;;  %v650_v63 = vsel %vm521_vm1, %v489_v11, %v649_v55  ;;  %v657_v2 = vrot.slane %v493_v20, 4  ;;  %v5231_v36 = vld [vmem:[%s5145_s17 + $0xc8] ss:$0 sps:$4 sm:$0x11]  }
  0x28   : > { %v540_v61 = vsel %vm539_vm7, %v538_v42, %v537_v57  ;;  %v550_v3 = vsel %vm533_vm5, %v549_v48, %v548_v62  ;;  %v652_v4 = vsel %vm524_vm2, %v651_v56, %v650_v63  ;;  %v659_v5 = vrot.slane %v494_v21, 3  ;;  %v5205_v21 = vld [vmem:[%s5145_s17 + $0x90] ss:$0 sps:$4 sm:$0x11]  }
  0x29   : > { %v661_v6 = vrot.slane %v495_v24, 2  ;;  %v552_v7 = vsel %vm536_vm6, %v551_v51, %v550_v3  ;;  %v654_v8 = vsel %vm527_vm3, %v653_v59, %v652_v4  ;;  %v663_v9 = vrot.slane %v496_v25, 1  ;;  %v4706_v41 = vld [vmem:[%s5145_s17 + $0xd0] ss:$0 sps:$4 sm:$0x11]  }
  0x2a   : > { %v665_v10 = vrot.slane %v498_v27, 7  ;;  %v554_v13 = vsel %vm539_vm7, %v553_v52, %v552_v7  ;;  %v656_v11 = vsel %vm530_vm4, %v655_v60, %v654_v8  ;;  %v667_v14 = vrot.slane %v499_v29, 6  ;;  %v4699_v27 = vld [vmem:[%s5145_s17 + $0x98] ss:$0 sps:$4 sm:$0x11]  }
  0x2b   : > { %v669_v15 = vrot.slane %v500_v30, 5  ;;  %v583_v17 = vpack.c.b16 %v554_v13, %v540_v61  ;;  %v658_v18 = vsel %vm533_vm5, %v657_v2, %v656_v11  ;;  %v664_v19 = vsel %vm521_vm1, %v497_v26, %v663_v9  ;;  %v5213_v29 = vld [vmem:[%s5145_s17 + $0xa0] ss:$0 sps:$4 sm:$0x11]  }
  0x2c   : > { %v671_v20 = vrot.slane %v501_v33, 4  ;;  %v660_v22 = vsel %vm536_vm6, %v659_v5, %v658_v18  ;;  %v666_v23 = vsel %vm524_vm2, %v665_v10, %v664_v19  ;;  %v673_v24 = vrot.slane %v502_v34, 3  ;;  %v5216_v26 = vld [vmem:[%s5145_s17 + $0xa8] ss:$0 sps:$4 sm:$0x11]  }
  0x2d   : > { %v675_v25 = vrot.slane %v503_v37, 2  ;;  %4365 = vmatprep.mubr.msk.bf16.mxu0 %vm585_vm8, %v583_v17  ;;  %v668_v28 = vsel %vm527_vm3, %v667_v14, %v666_v23  ;;  %v662_v30 = vsel %vm539_vm7, %v661_v6, %v660_v22  ;;  %v5224_v33 = vld [vmem:[%s5145_s17 + $0xb8] ss:$0 sps:$4 sm:$0x11]   ;;  %v504_v37 = vunpack.c.l.b16 %v5195_v12 }
  0x2e   : > { %v670_v31 = vsel %vm530_vm4, %v669_v15, %v668_v28  ;;  %v505_v38 = vunpack.c.l.b16 %v5200_v16  ;;  %v506_v39 = vunpack.c.l.b16 %v5205_v21  ;;  %v5239_v42 = vld [vmem:[%s5145_s17 + $0xd8] ss:$0 sps:$4 sm:$0x11]   ;;  %v507_v43 = vunpack.c.l.b16 %v4699_v27  ;;  %v4708_v47 = vld [vmem:[%s5145_s17 + $0xe0] ss:$0 sps:$4 sm:$0x11]  }
  0x2f   : > { %v672_v34 = vsel %vm533_vm5, %v671_v20, %v670_v31  ;;  %v508_v44 = vunpack.c.l.b16 %v5213_v29  ;;  %v509_v45 = vunpack.c.l.b16 %v5216_v26  ;;  %v5246_v48 = vld [vmem:[%s5145_s17 + $0xe8] ss:$0 sps:$4 sm:$0x11]   ;;  %v510_v49 = vunpack.c.l.b16 %v5221_v32  ;;  %v5252_v53 = vld [vmem:[%s5145_s17 + $0xf0] ss:$0 sps:$4 sm:$0x11]  }
  0x30   : > { %v674_v40 = vsel %vm536_vm6, %v673_v24, %v672_v34  ;;  %v511_v50 = vunpack.c.l.b16 %v5224_v33  ;;  %v512_v51 = vunpack.c.l.b16 %v5228_v35  ;;  %v5255_v54 = vld [vmem:[%s5145_s17 + $0xf8] ss:$0 sps:$4 sm:$0x11]   ;;  %v513_v55 = vunpack.c.l.b16 %v5231_v36  ;;  %v5279_v36 = vld [vmem:[%s5145_s17] ss:$0 sps:$4 sm:$0x22]  }
  0x31   : > { %v676_v46 = vsel %vm539_vm7, %v675_v25, %v674_v40  ;;  %v514_v56 = vunpack.c.l.b16 %v4706_v41  ;;  %v515_v57 = vunpack.c.l.b16 %v5239_v42  ;;  %v516_v58 = vunpack.c.l.b16 %v4708_v47  ;;  %v5284_v41 = vld [vmem:[%s5145_s17 + $0x8] ss:$0 sps:$4 sm:$0x22]  }
  0x32   : > { %v705_v52 = vpack.c.b16 %v676_v46, %v662_v30  ;;  %v517_v59 = vunpack.c.l.b16 %v5246_v48  ;;  %v555_v60 = vrot.slane %v505_v38, 7  ;;  %v557_v61 = vrot.slane %v506_v39, 6  ;;  %v5289_v46 = vld [vmem:[%s5145_s17 + $0x10] ss:$0 sps:$4 sm:$0x22]  }
  0x33   : > { %v518_v62 = vunpack.c.l.b16 %v5252_v53  ;;  %v519_v63 = vunpack.c.l.b16 %v5255_v54  ;;  %v559_v2 = vrot.slane %v507_v43, 5  ;;  %v561_v3 = vrot.slane %v508_v44, 4 }
  0x34   : > { %4371 = vmatprep.mubr.msk.bf16.mxu1 %vm585_vm8, %v705_v52  ;;  %v556_v4 = vsel %vm521_vm1, %v555_v60, %v504_v37  ;;  %v563_v5 = vrot.slane %v509_v45, 3  ;;  %v565_v6 = vrot.slane %v510_v49, 2  ;;  %v567_v7 = vrot.slane %v511_v50, 1  ;;  %v5306_v60 = vld [vmem:[%s5145_s17 + $0x30] ss:$0 sps:$4 sm:$0x22]  }
  0x35   : > { %v558_v8 = vsel %vm524_vm2, %v557_v61, %v556_v4  ;;  %v569_v9 = vrot.slane %v513_v55, 7  ;;  %v571_v10 = vrot.slane %v514_v56, 6  ;;  %v573_v12 = vrot.slane %v515_v57, 5  ;;  %v5312_v61 = vld [vmem:[%s5145_s17 + $0x38] ss:$0 sps:$4 sm:$0x22]  }
  0x36   : > { %v560_v13 = vsel %vm527_vm3, %v559_v2, %v558_v8  ;;  %v575_v11 = vrot.slane %v516_v58, 4  ;;  %v577_v14 = vrot.slane %v517_v59, 3  ;;  %v579_v15 = vrot.slane %v518_v62, 2  ;;  %v5321_v4 = vld [vmem:[%s5145_s17 + $0x48] ss:$0 sps:$4 sm:$0x22]  }
  0x37   : > { %v562_v16 = vsel %vm530_vm4, %v561_v3, %v560_v13  ;;  %v570_v17 = vsel %vm521_vm1, %v569_v9, %v512_v51  ;;  %v581_v18 = vrot.slane %v519_v63, 1  ;;  %v677_v19 = vrot.slane %v504_v37, 1 }
  0x38   : > { %v564_v20 = vsel %vm533_vm5, %v563_v5, %v562_v16  ;;  %v572_v21 = vsel %vm524_vm2, %v571_v10, %v570_v17  ;;  %v679_v22 = vrot.slane %v506_v39, 7  ;;  %v681_v23 = vrot.slane %v507_v43, 6  ;;  %v5324_v5 = vld [vmem:[%s5145_s17 + $0x50] ss:$0 sps:$4 sm:$0x22]  }
  0x39   : > { %v566_v24 = vsel %vm536_vm6, %v565_v6, %v564_v20  ;;  %v574_v25 = vsel %vm527_vm3, %v573_v12, %v572_v21  ;;  %v678_v27 = vsel %vm521_vm1, %v505_v38, %v677_v19  ;;  %v683_v28 = vrot.slane %v508_v44, 5  ;;  %v5333_v10 = vld [vmem:[%s5145_s17 + $0x58] ss:$0 sps:$4 sm:$0x22]  }
  0x3a   : > { %v568_v29 = vsel %vm539_vm7, %v567_v7, %v566_v24  ;;  %v576_v26 = vsel %vm530_vm4, %v575_v11, %v574_v25  ;;  %v680_v30 = vsel %vm524_vm2, %v679_v22, %v678_v27  ;;  %v685_v31 = vrot.slane %v509_v45, 4  ;;  %v5336_v12 = vld [vmem:[%s5145_s17 + $0x60] ss:$0 sps:$4 sm:$0x22]  }
  0x3b   : > { %v578_v32 = vsel %vm533_vm5, %v577_v14, %v576_v26  ;;  %v682_v33 = vsel %vm527_vm3, %v681_v23, %v680_v30  ;;  %v687_v34 = vrot.slane %v510_v49, 3  ;;  %v689_v35 = vrot.slane %v511_v50, 2  ;;  %v5343_v16 = vld [vmem:[%s5145_s17 + $0x68] ss:$0 sps:$4 sm:$0x22]  }
  0x3c   : > { %v580_v37 = vsel %vm536_vm6, %v579_v15, %v578_v32  ;;  %v684_v38 = vsel %vm530_vm4, %v683_v28, %v682_v33  ;;  %v691_v39 = vrot.slane %v512_v51, 1  ;;  %v693_v40 = vrot.slane %v514_v56, 7  ;;  %v5294_v51 = vld [vmem:[%s5145_s17 + $0x18] ss:$0 sps:$4 sm:$0x22]  }
  0x3d   : > { %v582_v42 = vsel %vm539_vm7, %v581_v18, %v580_v37  ;;  %v686_v43 = vsel %vm533_vm5, %v685_v31, %v684_v38  ;;  %v695_v44 = vrot.slane %v515_v57, 6  ;;  %v697_v45 = vrot.slane %v516_v58, 5  ;;  %v5298_v56 = vld [vmem:[%s5145_s17 + $0x20] ss:$0 sps:$4 sm:$0x22]  }
  0x3e   : > { %v584_v47 = vpack.c.b16 %v582_v42, %v568_v29  ;;  %v688_v48 = vsel %vm536_vm6, %v687_v34, %v686_v43  ;;  %v692_v49 = vsel %vm521_vm1, %v513_v55, %v691_v39  ;;  %v699_v50 = vrot.slane %v517_v59, 4  ;;  %v5303_v58 = vld [vmem:[%s5145_s17 + $0x28] ss:$0 sps:$4 sm:$0x22]  }
  0x3f   : > { %v694_v52 = vsel %vm524_vm2, %v693_v40, %v692_v49  ;;  %v701_v53 = vrot.slane %v518_v62, 3  ;;  %v703_v54 = vrot.slane %v519_v63, 2  ;;  %v690_v55 = vsel %vm539_vm7, %v689_v35, %v688_v48  ;;  %v5315_v62 = vld [vmem:[%s5145_s17 + $0x40] ss:$0 sps:$4 sm:$0x22]  }
  0x40   : > { %4366 = vmatmul.mubr.msk.bf16.vlgmr.msra.gmra.mxu0 %vm585_vm8, %v584_v47  ;;  %v696_v57 = vsel %vm527_vm3, %v695_v44, %v694_v52  ;;  %v894_v63 = vunpack.c.l.b16 %v5279_v36  ;;  %v895_v2 = vunpack.c.l.b16 %v5284_v41  ;;  %v896_v6 = vunpack.c.l.b16 %v5289_v46  ;;  %v5346_v17 = vld [vmem:[%s5145_s17 + $0x70] ss:$0 sps:$4 sm:$0x22]   ;;  %v4727_v22 = vld [vmem:[%s5145_s17 + $0x78] ss:$0 sps:$4 sm:$0x22]  }
  0x41   : > { %v698_v59 = vsel %vm530_vm4, %v697_v45, %v696_v57  ;;  %4376 = vmatpush3.bf16.msra.mxu0 %v5130_v1  ;;  %v897_v7 = vunpack.c.l.b16 %v5294_v51  ;;  %v898_v8 = vunpack.c.l.b16 %v5298_v56  ;;  %v899_v13 = vunpack.c.l.b16 %v5303_v58 }
  0x42   : > { %v700_v3 = vsel %vm533_vm5, %v699_v50, %v698_v59  ;;  %4463 = vmatprep.subr.msk.bf16.mxu0 %vm592_vm0, %v5121_v0  ;;  %v900_v11 = vunpack.c.l.b16 %v5306_v60  ;;  %v901_v14 = vunpack.c.l.b16 %v5312_v61  ;;  %v902_v18 = vunpack.c.l.b16 %v5315_v62  ;;  %v5377_v62 = vld [vmem:[%s5145_s17 + $0x80] ss:$0 sps:$4 sm:$0x22]  }
  0x43   : > { %v702_v9 = vsel %vm536_vm6, %v701_v53, %v700_v3  ;;  %v903_v19 = vunpack.c.l.b16 %v5321_v4  ;;  %v904_v20 = vunpack.c.l.b16 %v5324_v5  ;;  %v905_v23 = vunpack.c.l.b16 %v5333_v10  ;;  %v5382_v5 = vld [vmem:[%s5145_s17 + $0x88] ss:$0 sps:$4 sm:$0x22]  }
  0x44   : > { %v704_v15 = vsel %vm539_vm7, %v703_v54, %v702_v9  ;;  %v906_v24 = vunpack.c.l.b16 %v5336_v12  ;;  %v926_v25 = vrot.slane %v894_v63, 2  ;;  %v907_v27 = vunpack.c.l.b16 %v5343_v16  ;;  %v5391_v16 = vld [vmem:[%s5145_s17 + $0x98] ss:$0 sps:$4 sm:$0x22]  }
  0x45   : > { %v706_v21 = vpack.c.b16 %v704_v15, %v690_v55  ;;  %v908_v28 = vunpack.c.l.b16 %v5346_v17  ;;  %v927_v29 = vrot.slane %v895_v2, 1  ;;  %v930_v26 = vrot.slane %v897_v7, 7 }
  0x46   : > { %v909_v30 = vunpack.c.l.b16 %v4727_v22  ;;  %v932_v31 = vrot.slane %v898_v8, 6  ;;  %v934_v32 = vrot.slane %v899_v13, 5  ;;  %v936_v33 = vrot.slane %v900_v11, 4 }
  0x47   : > { %4372 = vmatmul.mubr.msk.bf16.vlgmr.msra.gmra.mxu1 %vm585_vm8, %v706_v21  ;;  %v928_v34 = vsel %vm521_vm1, %v927_v29, %v926_v25  ;;  %v938_v35 = vrot.slane %v901_v14, 3  ;;  %v940_v36 = vrot.slane %v902_v18, 2  ;;  %v941_v37 = vrot.slane %v903_v19, 1  ;;  %v5399_v25 = vld [vmem:[%s5145_s17 + $0xa8] ss:$0 sps:$4 sm:$0x22]  }
  0x48   : > { %4382 = vmatpush3.bf16.msra.mxu1 %v5130_v1  ;;  %v929_v38 = vsel %vm524_vm2, %v896_v6, %v928_v34  ;;  %v944_v39 = vrot.slane %v905_v23, 7  ;;  %v946_v40 = vrot.slane %v906_v24, 6  ;;  %v948_v41 = vrot.slane %v907_v27, 5  ;;  %v5421_v34 = vld [vmem:[%s5145_s17 + $0xd0] ss:$0 sps:$4 sm:$0x22]  }
  0x49   : > { %4464 = vmatprep.subr.msk.bf16.mxu1 %vm592_vm0, %v5121_v0  ;;  %v931_v42 = vsel %vm527_vm3, %v930_v26, %v929_v38  ;;  %v942_v43 = vsel %vm521_vm1, %v941_v37, %v940_v36  ;;  %v950_v44 = vrot.slane %v908_v28, 4  ;;  %v952_v45 = vrot.slane %v909_v30, 3  ;;  %v5409_v26 = vld [vmem:[%s5145_s17 + $0xb8] ss:$0 sps:$4 sm:$0x22]  }
  0x4a   : > { %v933_v46 = vsel %vm530_vm4, %v932_v31, %v931_v42  ;;  %v943_v47 = vsel %vm524_vm2, %v904_v20, %v942_v43  ;;  %v1043_v48 = vrot.slane %v894_v63, 3  ;;  %v1044_v49 = vrot.slane %v895_v2, 2  ;;  %v5427_v37 = vld [vmem:[%s5145_s17 + $0xd8] ss:$0 sps:$4 sm:$0x22]  }
  0x4b   : > { %v935_v50 = vsel %vm533_vm5, %v934_v32, %v933_v46  ;;  %v945_v51 = vsel %vm527_vm3, %v944_v39, %v943_v47  ;;  %v1046_v52 = vrot.slane %v896_v6, 1  ;;  %v1049_v53 = vrot.slane %v898_v8, 7  ;;  %v5430_v38 = vld [vmem:[%s5145_s17 + $0xe0] ss:$0 sps:$4 sm:$0x22]  }
  0x4c   : > { %v937_v54 = vsel %vm536_vm6, %v936_v33, %v935_v50  ;;  %v947_v56 = vsel %vm530_vm4, %v946_v40, %v945_v51  ;;  %v1045_v57 = vsel %vm521_vm1, %v1044_v49, %v1043_v48  ;;  %v1051_v58 = vrot.slane %v899_v13, 6  ;;  %v5387_v13 = vld [vmem:[%s5145_s17 + $0x90] ss:$0 sps:$4 sm:$0x22]  }
  0x4d   : > { %v939_v60 = vsel %vm539_vm7, %v938_v35, %v937_v54  ;;  %v949_v55 = vsel %vm533_vm5, %v948_v41, %v947_v56  ;;  %v1047_v59 = vsel %vm524_vm2, %v1046_v52, %v1045_v57  ;;  %v1053_v61 = vrot.slane %v900_v11, 5  ;;  %v5418_v33 = vld [vmem:[%s5145_s17 + $0xc8] ss:$0 sps:$4 sm:$0x22]  }
  0x4e   : > { %v951_v63 = vsel %vm536_vm6, %v950_v44, %v949_v55  ;;  %v1048_v2 = vsel %vm527_vm3, %v897_v7, %v1047_v59  ;;  %v1055_v3 = vrot.slane %v901_v14, 4  ;;  %v1057_v4 = vrot.slane %v902_v18, 3  ;;  %v4741_v43 = vld [vmem:[%s5145_s17 + $0xe8] ss:$0 sps:$4 sm:$0x22]  }
  0x4f   : > { %v953_v6 = vsel %vm539_vm7, %v952_v45, %v951_v63  ;;  %v1050_v8 = vsel %vm530_vm4, %v1049_v53, %v1048_v2  ;;  %v1058_v9 = vrot.slane %v903_v19, 2  ;;  %v1060_v12 = vrot.slane %v904_v20, 1  ;;  %v4732_v20 = vld [vmem:[%s5145_s17 + $0xa0] ss:$0 sps:$4 sm:$0x22]  }
  0x50   : > { %v982_v11 = vpack.c.b16 %v953_v6, %v939_v60  ;;  %v1052_v15 = vsel %vm533_vm5, %v1051_v58, %v1050_v8  ;;  %v1063_v7 = vrot.slane %v906_v24, 7  ;;  %v1065_v14 = vrot.slane %v907_v27, 6  ;;  %v5402_v24 = vld [vmem:[%s5145_s17 + $0xb0] ss:$0 sps:$4 sm:$0x22]  }
  0x51   : > { %v1054_v17 = vsel %vm536_vm6, %v1053_v61, %v1052_v15  ;;  %v1059_v18 = vsel %vm521_vm1, %v1058_v9, %v1057_v4  ;;  %v1067_v19 = vrot.slane %v908_v28, 5  ;;  %v1069_v21 = vrot.slane %v909_v30, 4  ;;  %v5412_v28 = vld [vmem:[%s5145_s17 + $0xc0] ss:$0 sps:$4 sm:$0x22]  }
  0x52   : > { %4377 = vmatprep.mubr.msk.bf16.mxu0 %vm585_vm8, %v982_v11  ;;  %v1061_v22 = vsel %vm524_vm2, %v1060_v12, %v1059_v18  ;;  %v1056_v27 = vsel %vm539_vm7, %v1055_v3, %v1054_v17  ;;  %v910_v30 = vunpack.c.l.b16 %v5377_v62  ;;  %v911_v31 = vunpack.c.l.b16 %v5382_v5  ;;  %v5438_v44 = vld [vmem:[%s5145_s17 + $0xf0] ss:$0 sps:$4 sm:$0x22]   ;;  %v4743_v49 = vld [vmem:[%s5145_s17 + $0xf8] ss:$0 sps:$4 sm:$0x22]  }
  0x53   : > { %v1062_v29 = vsel %vm527_vm3, %v905_v23, %v1061_v22  ;;  %v912_v10 = vunpack.c.l.b16 %v5387_v13  ;;  %v913_v23 = vunpack.c.l.b16 %v5391_v16  ;;  %v914_v35 = vunpack.c.l.b16 %v4732_v20 }
  0x54   : > { %v1064_v32 = vsel %vm530_vm4, %v1063_v7, %v1062_v29  ;;  %v915_v39 = vunpack.c.l.b16 %v5399_v25  ;;  %v916_v40 = vunpack.c.l.b16 %v5402_v24  ;;  %v917_v41 = vunpack.c.l.b16 %v5409_v26 }
  0x55   : > { %v1066_v36 = vsel %vm533_vm5, %v1065_v14, %v1064_v32  ;;  %v918_v45 = vunpack.c.l.b16 %v5412_v28  ;;  %v919_v46 = vunpack.c.l.b16 %v5418_v33  ;;  %v920_v47 = vunpack.c.l.b16 %v5421_v34 }
  0x56   : > { %v1068_v42 = vsel %vm536_vm6, %v1067_v19, %v1066_v36  ;;  %v921_v50 = vunpack.c.l.b16 %v5427_v37  ;;  %v922_v51 = vunpack.c.l.b16 %v5430_v38  ;;  %v954_v52 = vrot.slane %v910_v30, 2  ;;  %v5469_v36 = vld [vmem:[%s5145_s17] ss:$0 sps:$4 sm:$0x44]  }
  0x57   : > { %v1070_v48 = vsel %vm539_vm7, %v1069_v21, %v1068_v42  ;;  %v923_v54 = vunpack.c.l.b16 %v4741_v43  ;;  %v924_v56 = vunpack.c.l.b16 %v5438_v44  ;;  %v955_v57 = vrot.slane %v911_v31, 1 }
  0x58   : > { %v1099_v53 = vpack.c.b16 %v1070_v48, %v1056_v27  ;;  %v925_v58 = vunpack.c.l.b16 %v4743_v49  ;;  %v958_v60 = vrot.slane %v913_v23, 7  ;;  %v960_v55 = vrot.slane %v914_v35, 6  ;;  %v5483_v49 = vld [vmem:[%s5145_s17 + $0x18] ss:$0 sps:$4 sm:$0x44]  }
  0x59   : > { %v962_v59 = vrot.slane %v915_v39, 5  ;;  %v956_v61 = vsel %vm521_vm1, %v955_v57, %v954_v52  ;;  %v964_v62 = vrot.slane %v916_v40, 4  ;;  %v966_v63 = vrot.slane %v917_v41, 3  ;;  %v5490_v52 = vld [vmem:[%s5145_s17 + $0x20] ss:$0 sps:$4 sm:$0x44]  }
  0x5a   : > { %4383 = vmatprep.mubr.msk.bf16.mxu1 %vm585_vm8, %v1099_v53  ;;  %v968_v2 = vrot.slane %v918_v45, 2  ;;  %v957_v3 = vsel %vm524_vm2, %v912_v10, %v956_v61  ;;  %v969_v4 = vrot.slane %v919_v46, 1  ;;  %v972_v5 = vrot.slane %v921_v50, 7  ;;  %v5493_v53 = vld [vmem:[%s5145_s17 + $0x28] ss:$0 sps:$4 sm:$0x44]  }
  0x5b   : > { %v974_v6 = vrot.slane %v922_v51, 6  ;;  %v959_v8 = vsel %vm527_vm3, %v958_v60, %v957_v3  ;;  %v976_v9 = vrot.slane %v923_v54, 5  ;;  %v978_v12 = vrot.slane %v924_v56, 4  ;;  %v5499_v57 = vld [vmem:[%s5145_s17 + $0x30] ss:$0 sps:$4 sm:$0x44]  }
  0x5c   : > { %v980_v13 = vrot.slane %v925_v58, 3  ;;  %v961_v11 = vsel %vm530_vm4, %v960_v55, %v959_v8  ;;  %v970_v15 = vsel %vm521_vm1, %v969_v4, %v968_v2  ;;  %v1071_v7 = vrot.slane %v910_v30, 3  ;;  %v5509_v60 = vld [vmem:[%s5145_s17 + $0x48] ss:$0 sps:$4 sm:$0x44]  }
  0x5d   : > { %v1072_v14 = vrot.slane %v911_v31, 2  ;;  %v963_v16 = vsel %vm533_vm5, %v962_v59, %v961_v11  ;;  %v971_v17 = vsel %vm524_vm2, %v920_v47, %v970_v15  ;;  %v1074_v18 = vrot.slane %v912_v10, 1  ;;  %v5521_v2 = vld [vmem:[%s5145_s17 + $0x58] ss:$0 sps:$4 sm:$0x44]  }
  0x5e   : > { %v1077_v19 = vrot.slane %v914_v35, 7  ;;  %v965_v21 = vsel %vm536_vm6, %v964_v62, %v963_v16  ;;  %v973_v20 = vsel %vm527_vm3, %v972_v5, %v971_v17  ;;  %v1079_v25 = vrot.slane %v915_v39, 6  ;;  %v5528_v8 = vld [vmem:[%s5145_s17 + $0x60] ss:$0 sps:$4 sm:$0x44]  }
  0x5f   : > { %v1073_v22 = vsel %vm521_vm1, %v1072_v14, %v1071_v7  ;;  %v967_v24 = vsel %vm539_vm7, %v966_v63, %v965_v21  ;;  %v975_v27 = vsel %vm530_vm4, %v974_v6, %v973_v20  ;;  %v1081_v26 = vrot.slane %v916_v40, 5  ;;  %v5518_v63 = vld [vmem:[%s5145_s17 + $0x50] ss:$0 sps:$4 sm:$0x44]  }
  0x60   : > { %v1075_v29 = vsel %vm524_vm2, %v1074_v18, %v1073_v22  ;;  %v977_v28 = vsel %vm533_vm5, %v976_v9, %v975_v27  ;;  %v1083_v31 = vrot.slane %v917_v41, 4  ;;  %v1085_v32 = vrot.slane %v918_v45, 3  ;;  %v5474_v41 = vld [vmem:[%s5145_s17 + $0x8] ss:$0 sps:$4 sm:$0x44]  }
  0x61   : > { %v1076_v30 = vsel %vm527_vm3, %v913_v23, %v1075_v29  ;;  %v979_v33 = vsel %vm536_vm6, %v978_v12, %v977_v28  ;;  %v1086_v10 = vrot.slane %v919_v46, 2  ;;  %v1088_v35 = vrot.slane %v920_v47, 1  ;;  %v5479_v46 = vld [vmem:[%s5145_s17 + $0x10] ss:$0 sps:$4 sm:$0x44]  }
  0x62   : > { %v1078_v34 = vsel %vm530_vm4, %v1077_v19, %v1076_v30  ;;  %v981_v38 = vsel %vm539_vm7, %v980_v13, %v979_v33  ;;  %v1091_v40 = vrot.slane %v922_v51, 7  ;;  %v1093_v23 = vrot.slane %v923_v54, 6  ;;  %v5531_v9 = vld [vmem:[%s5145_s17 + $0x68] ss:$0 sps:$4 sm:$0x44]  }
  0x63   : > { %v1080_v39 = vsel %vm533_vm5, %v1079_v25, %v1078_v34  ;;  %v983_v42 = vpack.c.b16 %v981_v38, %v967_v24  ;;  %v1087_v44 = vsel %vm521_vm1, %v1086_v10, %v1085_v32  ;;  %v1095_v45 = vrot.slane %v924_v56, 5  ;;  %v5537_v15 = vld [vmem:[%s5145_s17 + $0x70] ss:$0 sps:$4 sm:$0x44]   ;;  %v5558_v10 = vld [vmem:[%s7108_s2] sm:$0xf] }
  0x64   : > { %v1082_v43 = vsel %vm536_vm6, %v1081_v26, %v1080_v39  ;;  %v1089_v47 = vsel %vm524_vm2, %v1088_v35, %v1087_v44  ;;  %v1097_v48 = vrot.slane %v925_v58, 4  ;;  %v5502_v58 = vld [vmem:[%s5145_s17 + $0x38] ss:$0 sps:$4 sm:$0x44]   ;;  %v1288_v55 = vunpack.c.l.b16 %v5469_v36 }
  0x65   : > { %4378 = vmatmul.mubr.msk.bf16.vlgmr.msra.gmra.mxu0 %vm585_vm8, %v983_v42  ;;  %v1090_v51 = vsel %vm527_vm3, %v921_v50, %v1089_v47  ;;  %v1084_v54 = vsel %vm539_vm7, %v1083_v31, %v1082_v43  ;;  %v5506_v50 = vld [vmem:[%s5145_s17 + $0x40] ss:$0 sps:$4 sm:$0x44]   ;;  %v1289_v59 = vunpack.c.l.b16 %v5474_v41  ;;  %v1290_v61 = vunpack.c.l.b16 %v5479_v46  ;;  %v5540_v7 = vld [vmem:[%s5145_s17 + $0x78] ss:$0 sps:$4 sm:$0x44]  }
  0x66   : > { %v1092_v56 = vsel %vm530_vm4, %v1091_v40, %v1090_v51  ;;  %4388 = vmatpush3.bf16.msra.mxu0 %v5130_v1  ;;  %v1291_v3 = vunpack.c.l.b16 %v5483_v49  ;;  %v1292_v4 = vunpack.c.l.b16 %v5490_v52  ;;  %v1293_v5 = vunpack.c.l.b16 %v5493_v53 }
  0x67   : > { %v1094_v37 = vsel %vm533_vm5, %v1093_v23, %v1092_v56  ;;  %4465 = vmatprep.subr.msk.bf16.mxu0 %vm592_vm0, %v5121_v0  ;;  %v1294_v0 = vunpack.c.l.b16 %v5499_v57  ;;  %v1295_v12 = vunpack.c.l.b16 %v5502_v58  ;;  %v1296_v13 = vunpack.c.l.b16 %v5506_v50  ;;  %v5575_v58 = vld [vmem:[%s5145_s17 + $0x80] ss:$0 sps:$4 sm:$0x44]  }
  0x68   : > { %v1096_v62 = vsel %vm536_vm6, %v1095_v45, %v1094_v37  ;;  %v1297_v14 = vunpack.c.l.b16 %v5509_v60  ;;  %v1298_v16 = vunpack.c.l.b16 %v5518_v63  ;;  %v1299_v17 = vunpack.c.l.b16 %v5521_v2 }
  0x69   : > { %v1098_v6 = vsel %vm539_vm7, %v1097_v48, %v1096_v62  ;;  %v1300_v18 = vunpack.c.l.b16 %v5528_v8  ;;  %v1301_v19 = vunpack.c.l.b16 %v5531_v9  ;;  %v1320_v21 = vrot.slane %v1288_v55, 4 }
  0x6a   : > { %v1100_v11 = vpack.c.b16 %v1098_v6, %v1084_v54  ;;  %v1321_v20 = vrot.slane %v1289_v59, 3  ;;  %v1302_v22 = vunpack.c.l.b16 %v5537_v15  ;;  %v1303_v25 = vunpack.c.l.b16 %v5540_v7 }
  0x6b   : > { %v1323_v24 = vrot.slane %v1290_v61, 2  ;;  %v1325_v27 = vrot.slane %v1291_v3, 1  ;;  %v1328_v26 = vrot.slane %v1293_v5, 7  ;;  %v1330_v28 = vrot.slane %v1294_v0, 6 }
  0x6c   : > { %4384 = vmatmul.mubr.msk.bf16.vlgmr.msra.gmra.mxu1 %vm585_vm8, %v1100_v11  ;;  %v1322_v29 = vsel %vm521_vm1, %v1321_v20, %v1320_v21  ;;  %v1332_v30 = vrot.slane %v1295_v12, 5  ;;  %v1334_v32 = vrot.slane %v1296_v13, 4  ;;  %v1335_v33 = vrot.slane %v1297_v14, 3  ;;  %v5602_v21 = vld [vmem:[%s5145_s17 + $0xa8] ss:$0 sps:$4 sm:$0x44]  }
  0x6d   : > { %4394 = vmatpush3.bf16.msra.mxu1 %v5130_v1  ;;  %v1324_v31 = vsel %vm524_vm2, %v1323_v24, %v1322_v29  ;;  %v1337_v34 = vrot.slane %v1298_v16, 2  ;;  %v1339_v36 = vrot.slane %v1299_v17, 1  ;;  %v1342_v38 = vrot.slane %v1301_v19, 7  ;;  %v5610_v20 = vld [vmem:[%s5145_s17 + $0xb8] ss:$0 sps:$4 sm:$0x44]  }
  0x6e   : > { %4466 = vmatprep.subr.msk.bf16.mxu1 %vm592_vm0, %v5558_v10  ;;  %v1326_v35 = vsel %vm527_vm3, %v1325_v27, %v1324_v31  ;;  %v1344_v39 = vrot.slane %v1302_v22, 6  ;;  %v1336_v23 = vsel %vm521_vm1, %v1335_v33, %v1334_v32  ;;  %v1346_v41 = vrot.slane %v1303_v25, 5  ;;  %v5616_v29 = vld [vmem:[%s5145_s17 + $0xc0] ss:$0 sps:$4 sm:$0x44]  }
  0x6f   : > { %v1327_v40 = vsel %vm530_vm4, %v1292_v4, %v1326_v35  ;;  %v1437_v42 = vrot.slane %v1288_v55, 5  ;;  %v1338_v44 = vsel %vm524_vm2, %v1337_v34, %v1336_v23  ;;  %v1438_v45 = vrot.slane %v1289_v59, 4  ;;  %v5580_v59 = vld [vmem:[%s5145_s17 + $0x88] ss:$0 sps:$4 sm:$0x44]  }
  0x70   : > { %v1329_v43 = vsel %vm533_vm5, %v1328_v26, %v1327_v40  ;;  %v1440_v46 = vrot.slane %v1290_v61, 3  ;;  %v1340_v48 = vsel %vm527_vm3, %v1339_v36, %v1338_v44  ;;  %v1442_v49 = vrot.slane %v1291_v3, 2  ;;  %v5585_v3 = vld [vmem:[%s5145_s17 + $0x90] ss:$0 sps:$4 sm:$0x44]  }
  0x71   : > { %v1331_v47 = vsel %vm536_vm6, %v1330_v28, %v1329_v43  ;;  %v1444_v51 = vrot.slane %v1292_v4, 1  ;;  %v1341_v54 = vsel %vm530_vm4, %v1300_v18, %v1340_v48  ;;  %v1439_v56 = vsel %vm521_vm1, %v1438_v45, %v1437_v42  ;;  %v5627_v31 = vld [vmem:[%s5145_s17 + $0xd0] ss:$0 sps:$4 sm:$0x44]  }
  0x72   : > { %v1333_v52 = vsel %vm539_vm7, %v1332_v30, %v1331_v47  ;;  %v1447_v57 = vrot.slane %v1294_v0, 7  ;;  %v1343_v37 = vsel %vm533_vm5, %v1342_v38, %v1341_v54  ;;  %v1441_v50 = vsel %vm524_vm2, %v1440_v46, %v1439_v56  ;;  %v5630_v32 = vld [vmem:[%s5145_s17 + $0xd8] ss:$0 sps:$4 sm:$0x44]  }
  0x73   : > { %v1449_v60 = vrot.slane %v1295_v12, 6  ;;  %v1451_v55 = vrot.slane %v1296_v13, 5  ;;  %v1345_v61 = vsel %vm536_vm6, %v1344_v39, %v1343_v37  ;;  %v1443_v62 = vsel %vm527_vm3, %v1442_v49, %v1441_v50  ;;  %v5590_v12 = vld [vmem:[%s5145_s17 + $0x98] ss:$0 sps:$4 sm:$0x44]  }
  0x74   : > { %v1452_v63 = vrot.slane %v1297_v14, 4  ;;  %v1454_v2 = vrot.slane %v1298_v16, 3  ;;  %v1347_v4 = vsel %vm539_vm7, %v1346_v41, %v1345_v61  ;;  %v1445_v6 = vsel %vm530_vm4, %v1444_v51, %v1443_v62  ;;  %v5597_v14 = vld [vmem:[%s5145_s17 + $0xa0] ss:$0 sps:$4 sm:$0x44]  }
  0x75   : > { %v1456_v8 = vrot.slane %v1299_v17, 2  ;;  %v1458_v0 = vrot.slane %v1300_v18, 1  ;;  %v1376_v13 = vpack.c.b16 %v1347_v4, %v1333_v52  ;;  %v1446_v11 = vsel %vm533_vm5, %v1293_v5, %v1445_v6  ;;  %v5607_v5 = vld [vmem:[%s5145_s17 + $0xb0] ss:$0 sps:$4 sm:$0x44]  }
  0x76   : > { %v1453_v15 = vsel %vm521_vm1, %v1452_v63, %v1451_v55  ;;  %v1461_v7 = vrot.slane %v1302_v22, 7  ;;  %v1448_v16 = vsel %vm536_vm6, %v1447_v57, %v1446_v11  ;;  %v1463_v18 = vrot.slane %v1303_v25, 6  ;;  %v5619_v25 = vld [vmem:[%s5145_s17 + $0xc8] ss:$0 sps:$4 sm:$0x44]  }
  0x77   : > { %v1455_v17 = vsel %vm524_vm2, %v1454_v2, %v1453_v15  ;;  %4389 = vmatprep.mubr.msk.bf16.mxu0 %vm585_vm8, %v1376_v13  ;;  %v1304_v22 = vunpack.c.l.b16 %v5575_v58  ;;  %v1450_v24 = vsel %vm539_vm7, %v1449_v60, %v1448_v16  ;;  %v1305_v26 = vunpack.c.l.b16 %v5580_v59  ;;  %v5637_v38 = vld [vmem:[%s5145_s17 + $0xe0] ss:$0 sps:$4 sm:$0x44]   ;;  %v5640_v39 = vld [vmem:[%s5145_s17 + $0xe8] ss:$0 sps:$4 sm:$0x44]  }
  0x78   : > { %v1457_v53 = vsel %vm527_vm3, %v1456_v8, %v1455_v17  ;;  %v1306_v28 = vunpack.c.l.b16 %v5585_v3  ;;  %v1307_v33 = vunpack.c.l.b16 %v5590_v12  ;;  %v1308_v34 = vunpack.c.l.b16 %v5597_v14  ;;  %v5647_v41 = vld [vmem:[%s5145_s17 + $0xf0] ss:$0 sps:$4 sm:$0x44]   ;;  %v5650_v42 = vld [vmem:[%s5145_s17 + $0xf8] ss:$0 sps:$4 sm:$0x44]  }
  0x79   : > { %v1459_v27 = vsel %vm530_vm4, %v1458_v0, %v1457_v53  ;;  %v1309_v35 = vunpack.c.l.b16 %v5602_v21  ;;  %v1310_v9 = vunpack.c.l.b16 %v5607_v5  ;;  %v1312_v40 = vunpack.c.l.b16 %v5616_v29 }
  0x7a   : > { %v1460_v30 = vsel %vm533_vm5, %v1301_v19, %v1459_v27  ;;  %v1311_v19 = vunpack.c.l.b16 %v5610_v20  ;;  %v1313_v43 = vunpack.c.l.b16 %v5619_v25  ;;  %v1314_v44 = vunpack.c.l.b16 %v5627_v31  ;;  %v5679_v25 = vld [vmem:[%s5145_s17] ss:$0 sps:$4 sm:$0x88]  }
  0x7b   : > { %v1462_v36 = vsel %vm536_vm6, %v1461_v7, %v1460_v30  ;;  %v1315_v45 = vunpack.c.l.b16 %v5630_v32  ;;  %v1316_v47 = vunpack.c.l.b16 %v5637_v38  ;;  %v1317_v48 = vunpack.c.l.b16 %v5640_v39  ;;  %v5745_v39 = vld [vmem:[%s5145_s17 + $0x68] ss:$0 sps:$4 sm:$0x88]  }
  0x7c   : > { %v1464_v23 = vsel %vm539_vm7, %v1463_v18, %v1462_v36  ;;  %v1348_v49 = vrot.slane %v1304_v22, 4  ;;  %v1318_v51 = vunpack.c.l.b16 %v5647_v41  ;;  %v1319_v52 = vunpack.c.l.b16 %v5650_v42 }
  0x7d   : > { %v1493_v46 = vpack.c.b16 %v1464_v23, %v1450_v24  ;;  %v1349_v54 = vrot.slane %v1305_v26, 3  ;;  %v1351_v56 = vrot.slane %v1306_v28, 2  ;;  %v1353_v57 = vrot.slane %v1307_v33, 1 }
  0x7e   : > { %v1356_v58 = vrot.slane %v1309_v35, 7  ;;  %v1358_v37 = vrot.slane %v1310_v9, 6  ;;  %v1360_v50 = vrot.slane %v1311_v19, 5  ;;  %v1362_v55 = vrot.slane %v1312_v40, 4 }
  0x7f   : > { %4395 = vmatprep.mubr.msk.bf16.mxu1 %vm585_vm8, %v1493_v46  ;;  %v1350_v60 = vsel %vm521_vm1, %v1349_v54, %v1348_v49  ;;  %v1363_v59 = vrot.slane %v1313_v43, 3  ;;  %v1365_v61 = vrot.slane %v1314_v44, 2  ;;  %v1367_v63 = vrot.slane %v1315_v45, 1  ;;  %v5704_v54 = vld [vmem:[%s5145_s17 + $0x28] ss:$0 sps:$4 sm:$0x88]  }
  0x80   : > { %v1352_v62 = vsel %vm524_vm2, %v1351_v56, %v1350_v60  ;;  %v1370_v2 = vrot.slane %v1317_v48, 7  ;;  %v1372_v3 = vrot.slane %v1318_v51, 6  ;;  %v1374_v8 = vrot.slane %v1319_v52, 5  ;;  %v5710_v56 = vld [vmem:[%s5145_s17 + $0x30] ss:$0 sps:$4 sm:$0x88]  }
  0x81   : > { %v1354_v4 = vsel %vm527_vm3, %v1353_v57, %v1352_v62  ;;  %v1364_v6 = vsel %vm521_vm1, %v1363_v59, %v1362_v55  ;;  %v1465_v0 = vrot.slane %v1304_v22, 5  ;;  %v1466_v11 = vrot.slane %v1305_v26, 4  ;;  %v5682_v26 = vld [vmem:[%s5145_s17 + $0x8] ss:$0 sps:$4 sm:$0x88]  }
  0x82   : > { %v1355_v12 = vsel %vm530_vm4, %v1308_v34, %v1354_v4  ;;  %v1366_v13 = vsel %vm524_vm2, %v1365_v61, %v1364_v6  ;;  %v1468_v15 = vrot.slane %v1306_v28, 3  ;;  %v1470_v16 = vrot.slane %v1307_v33, 2  ;;  %v5687_v33 = vld [vmem:[%s5145_s17 + $0x10] ss:$0 sps:$4 sm:$0x88]  }
  0x83   : > { %v1357_v7 = vsel %vm533_vm5, %v1356_v58, %v1355_v12  ;;  %v1368_v14 = vsel %vm527_vm3, %v1367_v63, %v1366_v13  ;;  %v1472_v17 = vrot.slane %v1308_v34, 1  ;;  %v1467_v5 = vsel %vm521_vm1, %v1466_v11, %v1465_v0  ;;  %v5730_v55 = vld [vmem:[%s5145_s17 + $0x50] ss:$0 sps:$4 sm:$0x88]  }
  0x84   : > { %v1359_v18 = vsel %vm536_vm6, %v1358_v37, %v1357_v7  ;;  %v1369_v53 = vsel %vm530_vm4, %v1316_v47, %v1368_v14  ;;  %v1475_v20 = vrot.slane %v1310_v9, 7  ;;  %v1469_v27 = vsel %vm524_vm2, %v1468_v15, %v1467_v5  ;;  %v5733_v59 = vld [vmem:[%s5145_s17 + $0x58] ss:$0 sps:$4 sm:$0x88]  }
  0x85   : > { %v1361_v22 = vsel %vm539_vm7, %v1360_v50, %v1359_v18  ;;  %v1371_v24 = vsel %vm533_vm5, %v1370_v2, %v1369_v53  ;;  %v1477_v29 = vrot.slane %v1311_v19, 6  ;;  %v1471_v30 = vsel %vm527_vm3, %v1470_v16, %v1469_v27  ;;  %v5692_v19 = vld [vmem:[%s5145_s17 + $0x18] ss:$0 sps:$4 sm:$0x88]  }
  0x86   : > { %v1373_v28 = vsel %vm536_vm6, %v1372_v3, %v1371_v24  ;;  %v1479_v31 = vrot.slane %v1312_v40, 5  ;;  %v1480_v32 = vrot.slane %v1313_v43, 4  ;;  %v1473_v36 = vsel %vm530_vm4, %v1472_v17, %v1471_v30  ;;  %v5699_v43 = vld [vmem:[%s5145_s17 + $0x20] ss:$0 sps:$4 sm:$0x88]  }
  0x87   : > { %v1375_v34 = vsel %vm539_vm7, %v1374_v8, %v1373_v28  ;;  %v1482_v38 = vrot.slane %v1314_v44, 3  ;;  %v1484_v9 = vrot.slane %v1315_v45, 2  ;;  %v1474_v41 = vsel %vm533_vm5, %v1309_v35, %v1473_v36  ;;  %v5742_v3 = vld [vmem:[%s5145_s17 + $0x60] ss:$0 sps:$4 sm:$0x88]  }
  0x88   : > { %v1377_v23 = vpack.c.b16 %v1375_v34, %v1361_v22  ;;  %v1481_v40 = vsel %vm521_vm1, %v1480_v32, %v1479_v31  ;;  %v1486_v42 = vrot.slane %v1316_v47, 1  ;;  %v1476_v46 = vsel %vm536_vm6, %v1475_v20, %v1474_v41  ;;  %v5713_v47 = vld [vmem:[%s5145_s17 + $0x38] ss:$0 sps:$4 sm:$0x88]  }
  0x89   : > { %v1483_v44 = vsel %vm524_vm2, %v1482_v38, %v1481_v40  ;;  %v1489_v45 = vrot.slane %v1318_v51, 7  ;;  %v1491_v49 = vrot.slane %v1319_v52, 6  ;;  %v1478_v21 = vsel %vm539_vm7, %v1477_v29, %v1476_v46  ;;  %v5718_v51 = vld [vmem:[%s5145_s17 + $0x40] ss:$0 sps:$4 sm:$0x88]  }
  0x8a   : > { %4390 = vmatmul.mubr.msk.bf16.vlgmr.msra.gmra.mxu0 %vm585_vm8, %v1377_v23  ;;  %v1485_v35 = vsel %vm527_vm3, %v1484_v9, %v1483_v44  ;;  %v5721_v52 = vld [vmem:[%s5145_s17 + $0x48] ss:$0 sps:$4 sm:$0x88]   ;;  %v1682_v58 = vunpack.c.l.b16 %v5679_v25  ;;  %v1683_v37 = vunpack.c.l.b16 %v5682_v26  ;;  %v1684_v50 = vunpack.c.l.b16 %v5687_v33  ;;  %v5752_v0 = vld [vmem:[%s5145_s17 + $0x70] ss:$0 sps:$4 sm:$0x88]  }
  0x8b   : > { %v1487_v57 = vsel %vm530_vm4, %v1486_v42, %v1485_v35  ;;  %4400 = vmatpush3.bf16.msra.mxu0 %v5130_v1  ;;  %v1685_v61 = vunpack.c.l.b16 %v5692_v19  ;;  %v1686_v62 = vunpack.c.l.b16 %v5699_v43  ;;  %v1687_v63 = vunpack.c.l.b16 %v5704_v54  ;;  %v5755_v12 = vld [vmem:[%s5145_s17 + $0x78] ss:$0 sps:$4 sm:$0x88]  }
  0x8c   : > { %v1488_v60 = vsel %vm533_vm5, %v1317_v48, %v1487_v57  ;;  %4467 = vmatprep.subr.msk.bf16.mxu0 %vm592_vm0, %v5558_v10  ;;  %v1688_v48 = vunpack.c.l.b16 %v5710_v56  ;;  %v1689_v4 = vunpack.c.l.b16 %v5713_v47  ;;  %v1690_v6 = vunpack.c.l.b16 %v5718_v51 }
  0x8d   : > { %v1490_v2 = vsel %vm536_vm6, %v1489_v45, %v1488_v60  ;;  %v1691_v13 = vunpack.c.l.b16 %v5721_v52  ;;  %v1692_v11 = vunpack.c.l.b16 %v5730_v55  ;;  %v1693_v15 = vunpack.c.l.b16 %v5733_v59 }
  0x8e   : > { %v1492_v8 = vsel %vm539_vm7, %v1491_v49, %v1490_v2  ;;  %v1694_v14 = vunpack.c.l.b16 %v5742_v3  ;;  %v1695_v16 = vunpack.c.l.b16 %v5745_v39  ;;  %v1714_v17 = vrot.slane %v1682_v58, 6  ;;  %v5800_v39 = vld [vmem:[%s5145_s17 + $0x98] ss:$0 sps:$4 sm:$0x88]  }
  0x8f   : > { %v1494_v7 = vpack.c.b16 %v1492_v8, %v1478_v21  ;;  %v1696_v18 = vunpack.c.l.b16 %v5752_v0  ;;  %v1697_v53 = vunpack.c.l.b16 %v5755_v12  ;;  %v1715_v5 = vrot.slane %v1683_v37, 5 }
  0x90   : > { %v1717_v20 = vrot.slane %v1684_v50, 4  ;;  %v1719_v22 = vrot.slane %v1685_v61, 3  ;;  %v1721_v24 = vrot.slane %v1686_v62, 2  ;;  %v1723_v27 = vrot.slane %v1687_v63, 1 }
  0x91   : > { %4396 = vmatmul.mubr.msk.bf16.vlgmr.msra.gmra.mxu1 %vm585_vm8, %v1494_v7  ;;  %v1726_v29 = vrot.slane %v1689_v4, 7  ;;  %v1716_v25 = vsel %vm521_vm1, %v1715_v5, %v1714_v17  ;;  %v1728_v26 = vrot.slane %v1690_v6, 6  ;;  %v1729_v28 = vrot.slane %v1691_v13, 5  ;;  %v5810_v5 = vld [vmem:[%s5145_s17 + $0xa8] ss:$0 sps:$4 sm:$0x88]  }
  0x92   : > { %4406 = vmatpush3.bf16.msra.mxu1 %v5130_v1  ;;  %v1731_v30 = vrot.slane %v1692_v11, 4  ;;  %v1718_v31 = vsel %vm524_vm2, %v1717_v20, %v1716_v25  ;;  %v1733_v32 = vrot.slane %v1693_v15, 3  ;;  %v1735_v33 = vrot.slane %v1694_v14, 2 }
  0x93   : > { %v1737_v34 = vrot.slane %v1695_v16, 1  ;;  %4468 = vmatprep.subr.msk.bf16.mxu1 %vm592_vm0, %v5558_v10  ;;  %v1720_v36 = vsel %vm527_vm3, %v1719_v22, %v1718_v31  ;;  %v1730_v38 = vsel %vm521_vm1, %v1729_v28, %v1728_v26  ;;  %v1740_v9 = vrot.slane %v1697_v53, 7  ;;  %v5818_v22 = vld [vmem:[%s5145_s17 + $0xb0] ss:$0 sps:$4 sm:$0x88]  }
  0x94   : > { %v1831_v19 = vrot.slane %v1682_v58, 7  ;;  %v1722_v23 = vsel %vm530_vm4, %v1721_v24, %v1720_v36  ;;  %v1732_v41 = vsel %vm524_vm2, %v1731_v30, %v1730_v38  ;;  %v1832_v40 = vrot.slane %v1683_v37, 6  ;;  %v5787_v58 = vld [vmem:[%s5145_s17 + $0x80] ss:$0 sps:$4 sm:$0x88]  }
  0x95   : > { %v1834_v42 = vrot.slane %v1684_v50, 5  ;;  %v1724_v43 = vsel %vm533_vm5, %v1723_v27, %v1722_v23  ;;  %v1734_v46 = vsel %vm527_vm3, %v1733_v32, %v1732_v41  ;;  %v1836_v44 = vrot.slane %v1685_v61, 4  ;;  %v5790_v37 = vld [vmem:[%s5145_s17 + $0x88] ss:$0 sps:$4 sm:$0x88]  }
  0x96   : > { %v1838_v45 = vrot.slane %v1686_v62, 3  ;;  %v1725_v49 = vsel %vm536_vm6, %v1688_v48, %v1724_v43  ;;  %v1736_v54 = vsel %vm530_vm4, %v1735_v33, %v1734_v46  ;;  %v1833_v21 = vsel %vm521_vm1, %v1832_v40, %v1831_v19  ;;  %v5795_v61 = vld [vmem:[%s5145_s17 + $0x90] ss:$0 sps:$4 sm:$0x88]  }
  0x97   : > { %v1840_v35 = vrot.slane %v1687_v63, 2  ;;  %v1727_v56 = vsel %vm539_vm7, %v1726_v29, %v1725_v49  ;;  %v1738_v57 = vsel %vm533_vm5, %v1737_v34, %v1736_v54  ;;  %v1835_v51 = vsel %vm524_vm2, %v1834_v42, %v1833_v21  ;;  %v5821_v24 = vld [vmem:[%s5145_s17 + $0xb8] ss:$0 sps:$4 sm:$0x88]  }
  0x98   : > { %v1842_v52 = vrot.slane %v1688_v48, 1  ;;  %v1739_v50 = vsel %vm536_vm6, %v1696_v18, %v1738_v57  ;;  %v1837_v60 = vsel %vm527_vm3, %v1836_v44, %v1835_v51  ;;  %v1845_v55 = vrot.slane %v1690_v6, 7  ;;  %v5825_v27 = vld [vmem:[%s5145_s17 + $0xc0] ss:$0 sps:$4 sm:$0x88]  }
  0x99   : > { %v1846_v59 = vrot.slane %v1691_v13, 6  ;;  %v1741_v62 = vsel %vm539_vm7, %v1740_v9, %v1739_v50  ;;  %v1839_v63 = vsel %vm530_vm4, %v1838_v45, %v1837_v60  ;;  %v1848_v2 = vrot.slane %v1692_v11, 5  ;;  %v5805_v13 = vld [vmem:[%s5145_s17 + $0xa0] ss:$0 sps:$4 sm:$0x88]  }
  0x9a   : > { %v1850_v3 = vrot.slane %v1693_v15, 4  ;;  %v1770_v48 = vpack.c.b16 %v1741_v62, %v1727_v56  ;;  %v1841_v8 = vsel %vm533_vm5, %v1840_v35, %v1839_v63  ;;  %v1852_v0 = vrot.slane %v1694_v14, 3  ;;  %v5835_v26 = vld [vmem:[%s5145_s17 + $0xd0] ss:$0 sps:$4 sm:$0x88]  }
  0x9b   : > { %v1847_v6 = vsel %vm521_vm1, %v1846_v59, %v1845_v55  ;;  %v1843_v7 = vsel %vm536_vm6, %v1842_v52, %v1841_v8  ;;  %v1854_v11 = vrot.slane %v1695_v16, 2  ;;  %v1856_v15 = vrot.slane %v1696_v18, 1  ;;  %v5828_v18 = vld [vmem:[%s5145_s17 + $0xc8] ss:$0 sps:$4 sm:$0x88]  }
  0x9c   : > { %v1849_v17 = vsel %vm524_vm2, %v1848_v2, %v1847_v6  ;;  %4401 = vmatprep.mubr.msk.bf16.mxu0 %vm585_vm8, %v1770_v48  ;;  %v1844_v20 = vsel %vm539_vm7, %v1689_v4, %v1843_v7  ;;  %v1698_v29 = vunpack.c.l.b16 %v5787_v58  ;;  %v1699_v47 = vunpack.c.l.b16 %v5790_v37  ;;  %v5838_v28 = vld [vmem:[%s5145_s17 + $0xd8] ss:$0 sps:$4 sm:$0x88]   ;;  %v5845_v34 = vld [vmem:[%s5145_s17 + $0xe0] ss:$0 sps:$4 sm:$0x88]  }
  0x9d   : > { %v1851_v14 = vsel %vm527_vm3, %v1850_v3, %v1849_v17  ;;  %v1700_v4 = vunpack.c.l.b16 %v5795_v61  ;;  %v1701_v30 = vunpack.c.l.b16 %v5800_v39  ;;  %v1702_v31 = vunpack.c.l.b16 %v5805_v13  ;;  %v5848_v36 = vld [vmem:[%s5145_s17 + $0xe8] ss:$0 sps:$4 sm:$0x88]   ;;  %v5857_v41 = vld [vmem:[%s5145_s17 + $0xf0] ss:$0 sps:$4 sm:$0x88]  }
  0x9e   : > { %v1853_v16 = vsel %vm530_vm4, %v1852_v0, %v1851_v14  ;;  %v1703_v32 = vunpack.c.l.b16 %v5810_v5  ;;  %v1704_v38 = vunpack.c.l.b16 %v5818_v22  ;;  %v1705_v9 = vunpack.c.l.b16 %v5821_v24  ;;  %v5860_v40 = vld [vmem:[%s5145_s17 + $0xf8] ss:$0 sps:$4 sm:$0x88]  }
  0x9f   : > { %v1855_v25 = vsel %vm533_vm5, %v1854_v11, %v1853_v16  ;;  %v1706_v19 = vunpack.c.l.b16 %v5825_v27  ;;  %v1707_v42 = vunpack.c.l.b16 %v5828_v18  ;;  %v1708_v43 = vunpack.c.l.b16 %v5835_v26 }
  0xa0   : > { %v1857_v33 = vsel %vm536_vm6, %v1856_v15, %v1855_v25  ;;  %v1709_v46 = vunpack.c.l.b16 %v5838_v28  ;;  %v1710_v45 = vunpack.c.l.b16 %v5845_v34  ;;  %v1711_v49 = vunpack.c.l.b16 %v5848_v36  ;;  %v5902_v36 = vld [vmem:[%s5145_s17 + $0x1c] ss:$0 sps:$4 sm:$0x11]  }
  0xa1   : > { %v1858_v23 = vsel %vm539_vm7, %v1697_v53, %v1857_v33  ;;  %v1742_v54 = vrot.slane %v1698_v29, 6  ;;  %v1712_v12 = vunpack.c.l.b16 %v5857_v41  ;;  %v1713_v53 = vunpack.c.l.b16 %v5860_v40 }
  0xa2   : > { %v1887_v44 = vpack.c.b16 %v1858_v23, %v1844_v20  ;;  %v1743_v21 = vrot.slane %v1699_v47, 5  ;;  %v1745_v35 = vrot.slane %v1700_v4, 4  ;;  %v1747_v56 = vrot.slane %v1701_v30, 3 }
  0xa3   : > { %v1749_v57 = vrot.slane %v1702_v31, 2  ;;  %v1751_v51 = vrot.slane %v1703_v32, 1  ;;  %v1754_v52 = vrot.slane %v1705_v9, 7  ;;  %v1756_v37 = vrot.slane %v1706_v19, 6 }
  0xa4   : > { %4407 = vmatprep.mubr.msk.bf16.mxu1 %vm585_vm8, %v1887_v44  ;;  %v1744_v58 = vsel %vm521_vm1, %v1743_v21, %v1742_v54  ;;  %v1757_v50 = vrot.slane %v1707_v42, 5  ;;  %v1759_v60 = vrot.slane %v1708_v43, 4  ;;  %v1761_v59 = vrot.slane %v1709_v46, 3  ;;  %v5912_v21 = vld [vmem:[%s5145_s17 + $0x2c] ss:$0 sps:$4 sm:$0x11]  }
  0xa5   : > { %v1746_v55 = vsel %vm524_vm2, %v1745_v35, %v1744_v58  ;;  %v1763_v61 = vrot.slane %v1710_v45, 2  ;;  %v1765_v62 = vrot.slane %v1711_v49, 1  ;;  %v1768_v3 = vrot.slane %v1713_v53, 7 }
  0xa6   : > { %v1748_v63 = vsel %vm527_vm3, %v1747_v56, %v1746_v55  ;;  %v1758_v2 = vsel %vm521_vm1, %v1757_v50, %v1756_v37  ;;  %v1859_v39 = vrot.slane %v1698_v29, 7  ;;  %v1860_v6 = vrot.slane %v1699_v47, 6  ;;  %v5889_v29 = vld [vmem:[%s5145_s17 + $0x4] ss:$0 sps:$4 sm:$0x11]  }
  0xa7   : > { %v1750_v48 = vsel %vm530_vm4, %v1749_v57, %v1748_v63  ;;  %v1760_v8 = vsel %vm524_vm2, %v1759_v60, %v1758_v2  ;;  %v1862_v0 = vrot.slane %v1700_v4, 5  ;;  %v1864_v17 = vrot.slane %v1701_v30, 4  ;;  %v5892_v47 = vld [vmem:[%s5145_s17 + $0xc] ss:$0 sps:$4 sm:$0x11]  }
  0xa8   : > { %v1752_v13 = vsel %vm533_vm5, %v1751_v51, %v1750_v48  ;;  %v1762_v7 = vsel %vm527_vm3, %v1761_v59, %v1760_v8  ;;  %v1866_v11 = vrot.slane %v1702_v31, 3  ;;  %v1861_v20 = vsel %vm521_vm1, %v1860_v6, %v1859_v39  ;;  %v5897_v30 = vld [vmem:[%s5145_s17 + $0x14] ss:$0 sps:$4 sm:$0x11]  }
  0xa9   : > { %v1753_v15 = vsel %vm536_vm6, %v1704_v38, %v1752_v13  ;;  %v1764_v5 = vsel %vm530_vm4, %v1763_v61, %v1762_v7  ;;  %v1868_v14 = vrot.slane %v1703_v32, 2  ;;  %v1863_v27 = vsel %vm524_vm2, %v1862_v0, %v1861_v20  ;;  %v5920_v56 = vld [vmem:[%s5145_s17 + $0x34] ss:$0 sps:$4 sm:$0x11]  }
  0xaa   : > { %v1755_v22 = vsel %vm539_vm7, %v1754_v52, %v1753_v15  ;;  %v1766_v16 = vsel %vm533_vm5, %v1765_v62, %v1764_v5  ;;  %v1870_v18 = vrot.slane %v1704_v38, 1  ;;  %v1865_v25 = vsel %vm527_vm3, %v1864_v17, %v1863_v27  ;;  %v5923_v57 = vld [vmem:[%s5145_s17 + $0x3c] ss:$0 sps:$4 sm:$0x11]  }
  0xab   : > { %v1767_v4 = vsel %vm536_vm6, %v1712_v12, %v1766_v16  ;;  %v1873_v26 = vrot.slane %v1706_v19, 7  ;;  %v1874_v28 = vrot.slane %v1707_v42, 6  ;;  %v1867_v32 = vsel %vm530_vm4, %v1866_v11, %v1865_v25  ;;  %v5907_v42 = vld [vmem:[%s5145_s17 + $0x24] ss:$0 sps:$4 sm:$0x11]  }
  0xac   : > { %v1769_v31 = vsel %vm539_vm7, %v1768_v3, %v1767_v4  ;;  %v1876_v33 = vrot.slane %v1708_v43, 5  ;;  %v1878_v34 = vrot.slane %v1709_v46, 4  ;;  %v1869_v23 = vsel %vm533_vm5, %v1868_v14, %v1867_v32  ;;  %v5931_v51 = vld [vmem:[%s5145_s17 + $0x4c] ss:$0 sps:$4 sm:$0x11]  }
  0xad   : > { %v1771_v38 = vpack.c.b16 %v1769_v31, %v1755_v22  ;;  %v1875_v19 = vsel %vm521_vm1, %v1874_v28, %v1873_v26  ;;  %v1880_v41 = vrot.slane %v1710_v45, 3  ;;  %v1871_v44 = vsel %vm536_vm6, %v1870_v18, %v1869_v23  ;;  %v5938_v37 = vld [vmem:[%s5145_s17 + $0x54] ss:$0 sps:$4 sm:$0x11]  }
  0xae   : > { %v1877_v54 = vsel %vm524_vm2, %v1876_v33, %v1875_v19  ;;  %v1882_v43 = vrot.slane %v1711_v49, 2  ;;  %v1884_v46 = vrot.slane %v1712_v12, 1  ;;  %v1872_v35 = vsel %vm539_vm7, %v1705_v9, %v1871_v44  ;;  %v5928_v12 = vld [vmem:[%s5145_s17 + $0x44] ss:$0 sps:$4 sm:$0x11]  }
  0xaf   : > { %4402 = vmatmul.mubr.msk.bf16.vlgmr.msra.gmra.mxu0 %vm585_vm8, %v1771_v38  ;;  %v1879_v45 = vsel %vm527_vm3, %v1878_v34, %v1877_v54  ;;  %v2076_v24 = vunpack.c.l.b16 %v5889_v29  ;;  %v2077_v9 = vunpack.c.l.b16 %v5892_v47  ;;  %v2078_v52 = vunpack.c.l.b16 %v5897_v30  ;;  %v5941_v50 = vld [vmem:[%s5145_s17 + $0x5c] ss:$0 sps:$4 sm:$0x11]   ;;  %v5950_v62 = vld [vmem:[%s5145_s17 + $0x64] ss:$0 sps:$4 sm:$0x11]  }
  0xb0   : > { %v1881_v49 = vsel %vm530_vm4, %v1880_v41, %v1879_v45  ;;  %4412 = vmatpush3.bf16.msra.mxu0 %v5130_v1  ;;  %v2079_v60 = vunpack.c.l.b16 %v5902_v36  ;;  %v2080_v55 = vunpack.c.l.b16 %v5907_v42  ;;  %v2081_v59 = vunpack.c.l.b16 %v5912_v21  ;;  %v5953_v63 = vld [vmem:[%s5145_s17 + $0x6c] ss:$0 sps:$4 sm:$0x11]   ;;  %v5962_v8 = vld [vmem:[%s5145_s17 + $0x74] ss:$0 sps:$4 sm:$0x11]  }
  0xb1   : > { %v1883_v58 = vsel %vm533_vm5, %v1882_v43, %v1881_v49  ;;  %4469 = vmatprep.subr.msk.bf16.mxu0 %vm592_vm0, %v5558_v10  ;;  %v2082_v2 = vunpack.c.l.b16 %v5920_v56  ;;  %v2083_v3 = vunpack.c.l.b16 %v5923_v57  ;;  %v2084_v39 = vunpack.c.l.b16 %v5928_v12  ;;  %v5965_v6 = vld [vmem:[%s5145_s17 + $0x7c] ss:$0 sps:$4 sm:$0x11]   ;;  %v5993_v12 = vld [vmem:[%s5145_s17 + $0x84] ss:$0 sps:$4 sm:$0x11]  }
  0xb2   : > { %v1885_v61 = vsel %vm536_vm6, %v1884_v46, %v1883_v58  ;;  %v2085_v0 = vunpack.c.l.b16 %v5931_v51  ;;  %v2086_v13 = vunpack.c.l.b16 %v5938_v37  ;;  %v2087_v7 = vunpack.c.l.b16 %v5941_v50  ;;  %v5996_v51 = vld [vmem:[%s5145_s17 + $0x8c] ss:$0 sps:$4 sm:$0x11]  }
  0xb3   : > { %v1886_v48 = vsel %vm539_vm7, %v1713_v53, %v1885_v61  ;;  %v2088_v11 = vunpack.c.l.b16 %v5950_v62  ;;  %v2089_v15 = vunpack.c.l.b16 %v5953_v63  ;;  %v2108_v5 = vrot.slane %v2077_v9, 7  ;;  %v6006_v61 = vld [vmem:[%s5145_s17 + $0x9c] ss:$0 sps:$4 sm:$0x11]  }
  0xb4   : > { %v1888_v17 = vpack.c.b16 %v1886_v48, %v1872_v35  ;;  %v2090_v40 = vunpack.c.l.b16 %v5962_v8  ;;  %v2091_v53 = vunpack.c.l.b16 %v5965_v6  ;;  %v2110_v20 = vrot.slane %v2078_v52, 6 }
  0xb5   : > { %v2112_v14 = vrot.slane %v2079_v60, 5  ;;  %v2109_v22 = vsel %vm521_vm1, %v2108_v5, %v2076_v24  ;;  %v2114_v16 = vrot.slane %v2080_v55, 4  ;;  %v2116_v27 = vrot.slane %v2081_v59, 3 }
  0xb6   : > { %4408 = vmatmul.mubr.msk.bf16.vlgmr.msra.gmra.mxu1 %vm585_vm8, %v1888_v17  ;;  %v2118_v18 = vrot.slane %v2082_v2, 2  ;;  %v2111_v29 = vsel %vm524_vm2, %v2110_v20, %v2109_v22  ;;  %v2120_v47 = vrot.slane %v2083_v3, 1  ;;  %v2122_v4 = vrot.slane %v2085_v0, 7  ;;  %v6029_v20 = vld [vmem:[%s5145_s17 + $0xc4] ss:$0 sps:$4 sm:$0x11]  }
  0xb7   : > { %4418 = vmatpush3.bf16.msra.mxu1 %v5130_v1  ;;  %v2124_v25 = vrot.slane %v2086_v13, 6  ;;  %v2113_v26 = vsel %vm527_vm3, %v2112_v14, %v2111_v29  ;;  %v2126_v28 = vrot.slane %v2087_v7, 5  ;;  %v2128_v30 = vrot.slane %v2088_v11, 4 }
  0xb8   : > { %v2130_v31 = vrot.slane %v2089_v15, 3  ;;  %4470 = vmatprep.subr.msk.bf16.mxu1 %vm592_vm0, %v5558_v10  ;;  %v2115_v32 = vsel %vm530_vm4, %v2114_v16, %v2113_v26  ;;  %v2123_v33 = vsel %vm521_vm1, %v2122_v4, %v2084_v39  ;;  %v2132_v34 = vrot.slane %v2090_v40, 2  ;;  %v4836_v26 = vld [vmem:[%s5145_s17 + $0xe4] ss:$0 sps:$4 sm:$0x11]  }
  0xb9   : > { %v2134_v36 = vrot.slane %v2091_v53, 1  ;;  %v2117_v38 = vsel %vm533_vm5, %v2116_v27, %v2115_v32  ;;  %v2125_v23 = vsel %vm524_vm2, %v2124_v25, %v2123_v33  ;;  %v2225_v19 = vrot.slane %v2076_v24, 1  ;;  %v6039_v27 = vld [vmem:[%s5145_s17 + $0xd4] ss:$0 sps:$4 sm:$0x11]  }
  0xba   : > { %v2227_v41 = vrot.slane %v2078_v52, 7  ;;  %v2119_v42 = vsel %vm536_vm6, %v2118_v18, %v2117_v38  ;;  %v2127_v44 = vsel %vm527_vm3, %v2126_v28, %v2125_v23  ;;  %v2229_v54 = vrot.slane %v2079_v60, 6  ;;  %v6042_v18 = vld [vmem:[%s5145_s17 + $0xdc] ss:$0 sps:$4 sm:$0x11]  }
  0xbb   : > { %v2231_v10 = vrot.slane %v2080_v55, 5  ;;  %v2121_v43 = vsel %vm539_vm7, %v2120_v47, %v2119_v42  ;;  %v2129_v46 = vsel %vm530_vm4, %v2128_v30, %v2127_v44  ;;  %v2226_v21 = vsel %vm521_vm1, %v2077_v9, %v2225_v19  ;;  %v6001_v9 = vld [vmem:[%s5145_s17 + $0x94] ss:$0 sps:$4 sm:$0x11]  }
  0xbc   : > { %v2233_v35 = vrot.slane %v2081_v59, 4  ;;  %v2131_v45 = vsel %vm533_vm5, %v2130_v31, %v2129_v46  ;;  %v2228_v56 = vsel %vm524_vm2, %v2227_v41, %v2226_v21  ;;  %v2235_v57 = vrot.slane %v2082_v2, 3  ;;  %v6050_v28 = vld [vmem:[%s5145_s17 + $0xec] ss:$0 sps:$4 sm:$0x11]  }
  0xbd   : > { %v2237_v49 = vrot.slane %v2083_v3, 2  ;;  %v2133_v24 = vsel %vm536_vm6, %v2132_v34, %v2131_v45  ;;  %v2230_v52 = vsel %vm527_vm3, %v2229_v54, %v2228_v56  ;;  %v2239_v58 = vrot.slane %v2084_v39, 1  ;;  %v6011_v39 = vld [vmem:[%s5145_s17 + $0xa4] ss:$0 sps:$4 sm:$0x11]  }
  0xbe   : > { %v2241_v37 = vrot.slane %v2086_v13, 7  ;;  %v2135_v50 = vsel %vm539_vm7, %v2134_v36, %v2133_v24  ;;  %v2232_v60 = vsel %vm530_vm4, %v2231_v10, %v2230_v52  ;;  %v2243_v55 = vrot.slane %v2087_v7, 6  ;;  %v6016_v7 = vld [vmem:[%s5145_s17 + $0xac] ss:$0 sps:$4 sm:$0x11]  }
  0xbf   : > { %v2245_v59 = vrot.slane %v2088_v11, 5  ;;  %v2164_v62 = vpack.c.b16 %v2135_v50, %v2121_v43  ;;  %v2234_v63 = vsel %vm533_vm5, %v2233_v35, %v2232_v60  ;;  %v2240_v2 = vsel %vm521_vm1, %v2085_v0, %v2239_v58  ;;  %v6022_v0 = vld [vmem:[%s5145_s17 + $0xb4] ss:$0 sps:$4 sm:$0x11]  }
  0xc0   : > { %v2247_v3 = vrot.slane %v2089_v15, 4  ;;  %v2236_v48 = vsel %vm536_vm6, %v2235_v57, %v2234_v63  ;;  %v2242_v8 = vsel %vm524_vm2, %v2241_v37, %v2240_v2  ;;  %v2249_v6 = vrot.slane %v2090_v40, 3  ;;  %v6025_v15 = vld [vmem:[%s5145_s17 + $0xbc] ss:$0 sps:$4 sm:$0x11]  }
  0xc1   : > { %v2251_v13 = vrot.slane %v2091_v53, 2  ;;  %4413 = vmatprep.mubr.msk.bf16.mxu0 %vm585_vm8, %v2164_v62  ;;  %v2238_v17 = vsel %vm539_vm7, %v2237_v49, %v2236_v48  ;;  %v2244_v11 = vsel %vm527_vm3, %v2243_v55, %v2242_v8  ;;  %v6032_v40 = vld [vmem:[%s5145_s17 + $0xcc] ss:$0 sps:$4 sm:$0x11]   ;;  %v2092_v53 = vunpack.c.l.b16 %v5993_v12 }
  0xc2   : > { %v2246_v5 = vsel %vm530_vm4, %v2245_v59, %v2244_v11  ;;  %v2093_v14 = vunpack.c.l.b16 %v5996_v51  ;;  %v2094_v22 = vunpack.c.l.b16 %v6001_v9  ;;  %v2095_v29 = vunpack.c.l.b16 %v6006_v61  ;;  %v6057_v34 = vld [vmem:[%s5145_s17 + $0xf4] ss:$0 sps:$4 sm:$0x11]   ;;  %v6060_v36 = vld [vmem:[%s5145_s17 + $0xfc] ss:$0 sps:$4 sm:$0x11]  }
  0xc3   : > { %v2248_v16 = vsel %vm533_vm5, %v2247_v3, %v2246_v5  ;;  %v2096_v47 = vunpack.c.l.b16 %v6011_v39  ;;  %v2097_v4 = vunpack.c.l.b16 %v6016_v7  ;;  %v2098_v30 = vunpack.c.l.b16 %v6022_v0 }
  0xc4   : > { %v2250_v25 = vsel %vm536_vm6, %v2249_v6, %v2248_v16  ;;  %v2099_v31 = vunpack.c.l.b16 %v6025_v15  ;;  %v2100_v32 = vunpack.c.l.b16 %v6029_v20  ;;  %v2101_v38 = vunpack.c.l.b16 %v6032_v40  ;;  %v6084_v20 = vld [vmem:[%s5145_s17 + $0x4] ss:$0 sps:$4 sm:$0x22]   ;;  %v6087_v40 = vld [vmem:[%s5145_s17 + $0xc] ss:$0 sps:$4 sm:$0x22]  }
  0xc5   : > { %v2252_v33 = vsel %vm539_vm7, %v2251_v13, %v2250_v25  ;;  %v2102_v23 = vunpack.c.l.b16 %v6039_v27  ;;  %v2103_v19 = vunpack.c.l.b16 %v6042_v18  ;;  %v2104_v42 = vunpack.c.l.b16 %v4836_v26  ;;  %v6097_v25 = vld [vmem:[%s5145_s17 + $0x1c] ss:$0 sps:$4 sm:$0x22]  }
  0xc6   : > { %v2281_v41 = vpack.c.b16 %v2252_v33, %v2238_v17  ;;  %v2105_v44 = vunpack.c.l.b16 %v6050_v28  ;;  %v2136_v54 = vrot.slane %v2093_v14, 7  ;;  %v2106_v10 = vunpack.c.l.b16 %v6057_v34 }
  0xc7   : > { %v2107_v43 = vunpack.c.l.b16 %v6060_v36  ;;  %v2138_v46 = vrot.slane %v2094_v22, 6  ;;  %v2140_v21 = vrot.slane %v2095_v29, 5  ;;  %v2142_v45 = vrot.slane %v2096_v47, 4 }
  0xc8   : > { %4419 = vmatprep.mubr.msk.bf16.mxu1 %vm585_vm8, %v2281_v41  ;;  %v2137_v35 = vsel %vm521_vm1, %v2136_v54, %v2092_v53  ;;  %v2144_v56 = vrot.slane %v2097_v4, 3  ;;  %v2146_v57 = vrot.slane %v2098_v30, 2  ;;  %v2148_v12 = vrot.slane %v2099_v31, 1 }
  0xc9   : > { %v2139_v49 = vsel %vm524_vm2, %v2138_v46, %v2137_v35  ;;  %v2150_v51 = vrot.slane %v2101_v38, 7  ;;  %v2152_v24 = vrot.slane %v2102_v23, 6  ;;  %v2154_v58 = vrot.slane %v2103_v19, 5 }
  0xca   : > { %v2141_v52 = vsel %vm527_vm3, %v2140_v21, %v2139_v49  ;;  %v2156_v37 = vrot.slane %v2104_v42, 4  ;;  %v2158_v9 = vrot.slane %v2105_v44, 3  ;;  %v2160_v55 = vrot.slane %v2106_v10, 2 }
  0xcb   : > { %v2143_v50 = vsel %vm530_vm4, %v2142_v45, %v2141_v52  ;;  %v2151_v60 = vsel %vm521_vm1, %v2150_v51, %v2100_v32  ;;  %v2162_v59 = vrot.slane %v2107_v43, 1  ;;  %v2253_v63 = vrot.slane %v2092_v53, 1 }
  0xcc   : > { %v2145_v61 = vsel %vm533_vm5, %v2144_v56, %v2143_v50  ;;  %v2153_v62 = vsel %vm524_vm2, %v2152_v24, %v2151_v60  ;;  %v2255_v2 = vrot.slane %v2094_v22, 7  ;;  %v2257_v48 = vrot.slane %v2095_v29, 6  ;;  %v6131_v56 = vld [vmem:[%s5145_s17 + $0x54] ss:$0 sps:$4 sm:$0x22]  }
  0xcd   : > { %v2147_v3 = vsel %vm536_vm6, %v2146_v57, %v2145_v61  ;;  %v2155_v39 = vsel %vm527_vm3, %v2154_v58, %v2153_v62  ;;  %v2259_v8 = vrot.slane %v2096_v47, 5  ;;  %v2254_v7 = vsel %vm521_vm1, %v2093_v14, %v2253_v63  ;;  %v6092_v14 = vld [vmem:[%s5145_s17 + $0x14] ss:$0 sps:$4 sm:$0x22]   ;;  %v6142_v24 = vld [vmem:[%s7108_s2] sm:$0xf] }
  0xce   : > { %v2149_v6 = vsel %vm539_vm7, %v2148_v12, %v2147_v3  ;;  %v2157_v13 = vsel %vm530_vm4, %v2156_v37, %v2155_v39  ;;  %v2261_v17 = vrot.slane %v2097_v4, 4  ;;  %v2256_v0 = vsel %vm524_vm2, %v2255_v2, %v2254_v7  ;;  %v6134_v57 = vld [vmem:[%s5145_s17 + $0x5c] ss:$0 sps:$4 sm:$0x22]  }
  0xcf   : > { %v2159_v11 = vsel %vm533_vm5, %v2158_v9, %v2157_v13  ;;  %v2263_v15 = vrot.slane %v2098_v30, 3  ;;  %v2265_v5 = vrot.slane %v2099_v31, 2  ;;  %v2258_v22 = vsel %vm527_vm3, %v2257_v48, %v2256_v0  ;;  %v6148_v58 = vld [vmem:[%s5145_s17 + $0x64] ss:$0 sps:$4 sm:$0x22]  }
  0xd0   : > { %v2161_v53 = vsel %vm536_vm6, %v2160_v55, %v2159_v11  ;;  %v2267_v16 = vrot.slane %v2100_v32, 1  ;;  %v2269_v27 = vrot.slane %v2102_v23, 7  ;;  %v2260_v29 = vsel %vm530_vm4, %v2259_v8, %v2258_v22  ;;  %v6102_v32 = vld [vmem:[%s5145_s17 + $0x24] ss:$0 sps:$4 sm:$0x22]  }
  0xd1   : > { %v2163_v18 = vsel %vm539_vm7, %v2162_v59, %v2161_v53  ;;  %v2271_v47 = vrot.slane %v2103_v19, 6  ;;  %v2273_v4 = vrot.slane %v2104_v42, 5  ;;  %v2262_v28 = vsel %vm533_vm5, %v2261_v17, %v2260_v29  ;;  %v6107_v19 = vld [vmem:[%s5145_s17 + $0x2c] ss:$0 sps:$4 sm:$0x22]  }
  0xd2   : > { %v2165_v26 = vpack.c.b16 %v2163_v18, %v2149_v6  ;;  %v2268_v30 = vsel %vm521_vm1, %v2101_v38, %v2267_v16  ;;  %v2275_v31 = vrot.slane %v2105_v44, 4  ;;  %v2264_v33 = vsel %vm536_vm6, %v2263_v15, %v2262_v28  ;;  %v6113_v42 = vld [vmem:[%s5145_s17 + $0x34] ss:$0 sps:$4 sm:$0x22]  }
  0xd3   : > { %v2270_v34 = vsel %vm524_vm2, %v2269_v27, %v2268_v30  ;;  %v2277_v36 = vrot.slane %v2106_v10, 3  ;;  %v2279_v23 = vrot.slane %v2107_v43, 2  ;;  %v2266_v41 = vsel %vm539_vm7, %v2265_v5, %v2264_v33  ;;  %v6116_v44 = vld [vmem:[%s5145_s17 + $0x3c] ss:$0 sps:$4 sm:$0x22]  }
  0xd4   : > { %4414 = vmatmul.mubr.msk.bf16.vlgmr.msra.gmra.mxu0 %vm585_vm8, %v2165_v26  ;;  %v2272_v38 = vsel %vm527_vm3, %v2271_v47, %v2270_v34  ;;  %v6121_v10 = vld [vmem:[%s5145_s17 + $0x44] ss:$0 sps:$4 sm:$0x22]   ;;  %v6124_v43 = vld [vmem:[%s5145_s17 + $0x4c] ss:$0 sps:$4 sm:$0x22]   ;;  %v2470_v46 = vunpack.c.l.b16 %v6084_v20  ;;  %v2471_v21 = vunpack.c.l.b16 %v6087_v40  ;;  %v2472_v35 = vunpack.c.l.b16 %v6092_v14 }
  0xd5   : > { %v2274_v54 = vsel %vm530_vm4, %v2273_v4, %v2272_v38  ;;  %4424 = vmatpush3.bf16.msra.mxu0 %v5130_v1  ;;  %v2473_v49 = vunpack.c.l.b16 %v6097_v25  ;;  %v2474_v12 = vunpack.c.l.b16 %v6102_v32  ;;  %v2475_v51 = vunpack.c.l.b16 %v6107_v19  ;;  %v6151_v37 = vld [vmem:[%s5145_s17 + $0x6c] ss:$0 sps:$4 sm:$0x22]   ;;  %v6158_v59 = vld [vmem:[%s5145_s17 + $0x74] ss:$0 sps:$4 sm:$0x22]  }
  0xd6   : > { %v2276_v45 = vsel %vm533_vm5, %v2275_v31, %v2274_v54  ;;  %4471 = vmatprep.subr.msk.bf16.mxu0 %vm592_vm0, %v6142_v24  ;;  %v2476_v9 = vunpack.c.l.b16 %v6113_v42  ;;  %v2477_v50 = vunpack.c.l.b16 %v6116_v44  ;;  %v2478_v60 = vunpack.c.l.b16 %v6121_v10  ;;  %v6161_v61 = vld [vmem:[%s5145_s17 + $0x7c] ss:$0 sps:$4 sm:$0x22]  }
  0xd7   : > { %v2278_v52 = vsel %vm536_vm6, %v2277_v36, %v2276_v45  ;;  %v2479_v62 = vunpack.c.l.b16 %v6124_v43  ;;  %v2480_v63 = vunpack.c.l.b16 %v6131_v56  ;;  %v2481_v2 = vunpack.c.l.b16 %v6134_v57 }
  0xd8   : > { %v2280_v55 = vsel %vm539_vm7, %v2279_v23, %v2278_v52  ;;  %v2482_v39 = vunpack.c.l.b16 %v6148_v58  ;;  %v2483_v48 = vunpack.c.l.b16 %v6151_v37  ;;  %v2502_v8 = vrot.slane %v2470_v46, 2 }
  0xd9   : > { %v2282_v3 = vpack.c.b16 %v2280_v55, %v2266_v41  ;;  %v2484_v6 = vunpack.c.l.b16 %v6158_v59  ;;  %v2485_v13 = vunpack.c.l.b16 %v6161_v61  ;;  %v2503_v7 = vrot.slane %v2471_v21, 1  ;;  %v6210_v55 = vld [vmem:[%s5145_s17 + $0x9c] ss:$0 sps:$4 sm:$0x22]  }
  0xda   : > { %v2506_v17 = vrot.slane %v2473_v49, 7  ;;  %v2508_v11 = vrot.slane %v2474_v12, 6  ;;  %v2510_v0 = vrot.slane %v2475_v51, 5  ;;  %v2512_v15 = vrot.slane %v2476_v9, 4 }
  0xdb   : > { %4420 = vmatmul.mubr.msk.bf16.vlgmr.msra.gmra.mxu1 %vm585_vm8, %v2282_v3  ;;  %v2514_v5 = vrot.slane %v2477_v50, 3  ;;  %v2504_v20 = vsel %vm521_vm1, %v2503_v7, %v2502_v8  ;;  %v2516_v40 = vrot.slane %v2478_v60, 2  ;;  %v2517_v53 = vrot.slane %v2479_v62, 1  ;;  %v4860_v3 = vld [vmem:[%s5145_s17 + $0xa4] ss:$0 sps:$4 sm:$0x22]  }
  0xdc   : > { %4430 = vmatpush3.bf16.msra.mxu1 %v5130_v1  ;;  %v2520_v22 = vrot.slane %v2481_v2, 7  ;;  %v2505_v16 = vsel %vm524_vm2, %v2472_v35, %v2504_v20  ;;  %v2522_v27 = vrot.slane %v2482_v39, 6  ;;  %v2524_v14 = vrot.slane %v2483_v48, 5  ;;  %v6220_v8 = vld [vmem:[%s5145_s17 + $0xac] ss:$0 sps:$4 sm:$0x22]  }
  0xdd   : > { %v2526_v18 = vrot.slane %v2484_v6, 4  ;;  %4472 = vmatprep.subr.msk.bf16.mxu1 %vm592_vm0, %v6142_v24  ;;  %v2507_v29 = vsel %vm527_vm3, %v2506_v17, %v2505_v16  ;;  %v2518_v47 = vsel %vm521_vm1, %v2517_v53, %v2516_v40  ;;  %v2528_v4 = vrot.slane %v2485_v13, 3  ;;  %v6249_v16 = vld [vmem:[%s5145_s17 + $0xe4] ss:$0 sps:$4 sm:$0x22]  }
  0xde   : > { %v2619_v26 = vrot.slane %v2470_v46, 3  ;;  %v2509_v28 = vsel %vm530_vm4, %v2508_v11, %v2507_v29  ;;  %v2519_v30 = vsel %vm524_vm2, %v2480_v63, %v2518_v47  ;;  %v2620_v31 = vrot.slane %v2471_v21, 2  ;;  %v6193_v46 = vld [vmem:[%s5145_s17 + $0x84] ss:$0 sps:$4 sm:$0x22]  }
  0xdf   : > { %v2622_v32 = vrot.slane %v2472_v35, 1  ;;  %v2511_v33 = vsel %vm533_vm5, %v2510_v0, %v2509_v28  ;;  %v2521_v34 = vsel %vm527_vm3, %v2520_v22, %v2519_v30  ;;  %v2625_v36 = vrot.slane %v2474_v12, 7  ;;  %v6200_v12 = vld [vmem:[%s5145_s17 + $0x8c] ss:$0 sps:$4 sm:$0x22]  }
  0xe0   : > { %v2627_v23 = vrot.slane %v2475_v51, 6  ;;  %v2513_v19 = vsel %vm536_vm6, %v2512_v15, %v2511_v33  ;;  %v2523_v41 = vsel %vm530_vm4, %v2522_v27, %v2521_v34  ;;  %v2621_v38 = vsel %vm521_vm1, %v2620_v31, %v2619_v26  ;;  %v6228_v11 = vld [vmem:[%s5145_s17 + $0xbc] ss:$0 sps:$4 sm:$0x22]  }
  0xe1   : > { %v2629_v42 = vrot.slane %v2476_v9, 5  ;;  %v2515_v44 = vsel %vm539_vm7, %v2514_v5, %v2513_v19  ;;  %v2525_v54 = vsel %vm533_vm5, %v2524_v14, %v2523_v41  ;;  %v2623_v10 = vsel %vm524_vm2, %v2622_v32, %v2621_v38  ;;  %v6205_v9 = vld [vmem:[%s5145_s17 + $0x94] ss:$0 sps:$4 sm:$0x22]  }
  0xe2   : > { %v2631_v43 = vrot.slane %v2477_v50, 4  ;;  %v2527_v21 = vsel %vm536_vm6, %v2526_v18, %v2525_v54  ;;  %v2624_v35 = vsel %vm527_vm3, %v2473_v49, %v2623_v10  ;;  %v2633_v45 = vrot.slane %v2478_v60, 3  ;;  %v6237_v0 = vld [vmem:[%s5145_s17 + $0xcc] ss:$0 sps:$4 sm:$0x22]  }
  0xe3   : > { %v2634_v56 = vrot.slane %v2479_v62, 2  ;;  %v2529_v51 = vsel %vm539_vm7, %v2528_v4, %v2527_v21  ;;  %v2626_v52 = vsel %vm530_vm4, %v2625_v36, %v2624_v35  ;;  %v2636_v58 = vrot.slane %v2480_v63, 1  ;;  %v6240_v15 = vld [vmem:[%s5145_s17 + $0xd4] ss:$0 sps:$4 sm:$0x22]  }
  0xe4   : > { %v2639_v37 = vrot.slane %v2482_v39, 7  ;;  %v2558_v50 = vpack.c.b16 %v2529_v51, %v2515_v44  ;;  %v2628_v25 = vsel %vm533_vm5, %v2627_v23, %v2626_v52  ;;  %v2641_v60 = vrot.slane %v2483_v48, 6  ;;  %v6223_v48 = vld [vmem:[%s5145_s17 + $0xb4] ss:$0 sps:$4 sm:$0x22]  }
  0xe5   : > { %v2635_v49 = vsel %vm521_vm1, %v2634_v56, %v2633_v45  ;;  %v2630_v59 = vsel %vm536_vm6, %v2629_v42, %v2628_v25  ;;  %v2643_v62 = vrot.slane %v2484_v6, 5  ;;  %v2645_v63 = vrot.slane %v2485_v13, 4  ;;  %v6231_v6 = vld [vmem:[%s5145_s17 + $0xc4] ss:$0 sps:$4 sm:$0x22]  }
  0xe6   : > { %v2637_v61 = vsel %vm524_vm2, %v2636_v58, %v2635_v49  ;;  %4425 = vmatprep.mubr.msk.bf16.mxu0 %vm585_vm8, %v2558_v50  ;;  %v2632_v7 = vsel %vm539_vm7, %v2631_v43, %v2630_v59  ;;  %v2486_v13 = vunpack.c.l.b16 %v6193_v46  ;;  %v2487_v57 = vunpack.c.l.b16 %v6200_v12  ;;  %v6246_v22 = vld [vmem:[%s5145_s17 + $0xdc] ss:$0 sps:$4 sm:$0x22]   ;;  %v4869_v47 = vld [vmem:[%s5145_s17 + $0xec] ss:$0 sps:$4 sm:$0x22]  }
  0xe7   : > { %v2638_v39 = vsel %vm527_vm3, %v2481_v2, %v2637_v61  ;;  %v2488_v5 = vunpack.c.l.b16 %v6205_v9  ;;  %v2489_v20 = vunpack.c.l.b16 %v6210_v55  ;;  %v2490_v40 = vunpack.c.l.b16 %v4860_v3  ;;  %v6257_v4 = vld [vmem:[%s5145_s17 + $0xf4] ss:$0 sps:$4 sm:$0x22]   ;;  %v4871_v32 = vld [vmem:[%s5145_s17 + $0xfc] ss:$0 sps:$4 sm:$0x22]  }
  0xe8   : > { %v2640_v17 = vsel %vm530_vm4, %v2639_v37, %v2638_v39  ;;  %v2491_v27 = vunpack.c.l.b16 %v6220_v8  ;;  %v2492_v14 = vunpack.c.l.b16 %v6223_v48  ;;  %v2493_v18 = vunpack.c.l.b16 %v6228_v11 }
  0xe9   : > { %v2642_v2 = vsel %vm533_vm5, %v2641_v60, %v2640_v17  ;;  %v2494_v26 = vunpack.c.l.b16 %v6231_v6  ;;  %v2495_v28 = vunpack.c.l.b16 %v6237_v0  ;;  %v2496_v30 = vunpack.c.l.b16 %v6240_v15  ;;  %v6284_v6 = vld [vmem:[%s5145_s17 + $0x4] ss:$0 sps:$4 sm:$0x44]   ;;  %v6289_v15 = vld [vmem:[%s5145_s17 + $0xc] ss:$0 sps:$4 sm:$0x44]  }
  0xea   : > { %v2644_v53 = vsel %vm536_vm6, %v2643_v62, %v2642_v2  ;;  %v2497_v33 = vunpack.c.l.b16 %v6246_v22  ;;  %v2498_v34 = vunpack.c.l.b16 %v6249_v16  ;;  %v2530_v36 = vrot.slane %v2486_v13, 2  ;;  %v6331_v22 = vld [vmem:[%s5145_s17 + $0x54] ss:$0 sps:$4 sm:$0x44]  }
  0xeb   : > { %v2646_v29 = vsel %vm539_vm7, %v2645_v63, %v2644_v53  ;;  %v2499_v23 = vunpack.c.l.b16 %v4869_v47  ;;  %v2500_v19 = vunpack.c.l.b16 %v6257_v4  ;;  %v2531_v41 = vrot.slane %v2487_v57, 1  ;;  %v6298_v47 = vld [vmem:[%s5145_s17 + $0x1c] ss:$0 sps:$4 sm:$0x44]  }
  0xec   : > { %v2675_v31 = vpack.c.b16 %v2646_v29, %v2632_v7  ;;  %v2534_v38 = vrot.slane %v2489_v20, 7  ;;  %v2501_v42 = vunpack.c.l.b16 %v4871_v32  ;;  %v2536_v44 = vrot.slane %v2490_v40, 6 }
  0xed   : > { %v2538_v54 = vrot.slane %v2491_v27, 5  ;;  %v2540_v10 = vrot.slane %v2492_v14, 4  ;;  %v2532_v43 = vsel %vm521_vm1, %v2531_v41, %v2530_v36  ;;  %v2542_v46 = vrot.slane %v2493_v18, 3  ;;  %v6308_v36 = vld [vmem:[%s5145_s17 + $0x2c] ss:$0 sps:$4 sm:$0x44]  }
  0xee   : > { %4431 = vmatprep.mubr.msk.bf16.mxu1 %vm585_vm8, %v2675_v31  ;;  %v2544_v21 = vrot.slane %v2494_v26, 2  ;;  %v2545_v35 = vrot.slane %v2495_v28, 1  ;;  %v2533_v45 = vsel %vm524_vm2, %v2488_v5, %v2532_v43  ;;  %v2548_v56 = vrot.slane %v2497_v33, 7  ;;  %v6319_v41 = vld [vmem:[%s5145_s17 + $0x3c] ss:$0 sps:$4 sm:$0x44]  }
  0xef   : > { %v2550_v12 = vrot.slane %v2498_v34, 6  ;;  %v2552_v51 = vrot.slane %v2499_v23, 5  ;;  %v2535_v52 = vsel %vm527_vm3, %v2534_v38, %v2533_v45  ;;  %v2554_v37 = vrot.slane %v2500_v19, 4  ;;  %v6322_v38 = vld [vmem:[%s5145_s17 + $0x44] ss:$0 sps:$4 sm:$0x44]  }
  0xf0   : > { %v2546_v58 = vsel %vm521_vm1, %v2545_v35, %v2544_v21  ;;  %v2556_v9 = vrot.slane %v2501_v42, 3  ;;  %v2537_v50 = vsel %vm530_vm4, %v2536_v44, %v2535_v52  ;;  %v2647_v49 = vrot.slane %v2486_v13, 3  ;;  %v6340_v35 = vld [vmem:[%s5145_s17 + $0x5c] ss:$0 sps:$4 sm:$0x44]  }
  0xf1   : > { %v2547_v25 = vsel %vm524_vm2, %v2496_v30, %v2546_v58  ;;  %v2648_v60 = vrot.slane %v2487_v57, 2  ;;  %v2539_v55 = vsel %vm533_vm5, %v2538_v54, %v2537_v50  ;;  %v2650_v61 = vrot.slane %v2488_v5, 1  ;;  %v6343_v45 = vld [vmem:[%s5145_s17 + $0x64] ss:$0 sps:$4 sm:$0x44]  }
  0xf2   : > { %v2549_v59 = vsel %vm527_vm3, %v2548_v56, %v2547_v25  ;;  %v2653_v62 = vrot.slane %v2490_v40, 7  ;;  %v2541_v63 = vsel %vm536_vm6, %v2540_v10, %v2539_v55  ;;  %v2655_v8 = vrot.slane %v2491_v27, 6  ;;  %v6294_v27 = vld [vmem:[%s5145_s17 + $0x14] ss:$0 sps:$4 sm:$0x44]  }
  0xf3   : > { %v2551_v3 = vsel %vm530_vm4, %v2550_v12, %v2549_v59  ;;  %v2649_v39 = vsel %vm521_vm1, %v2648_v60, %v2647_v49  ;;  %v2543_v48 = vsel %vm539_vm7, %v2542_v46, %v2541_v63  ;;  %v2657_v11 = vrot.slane %v2492_v14, 5  ;;  %v6328_v10 = vld [vmem:[%s5145_s17 + $0x4c] ss:$0 sps:$4 sm:$0x44]  }
  0xf4   : > { %v2553_v7 = vsel %vm533_vm5, %v2552_v51, %v2551_v3  ;;  %v2651_v17 = vsel %vm524_vm2, %v2650_v61, %v2649_v39  ;;  %v2659_v2 = vrot.slane %v2493_v18, 4  ;;  %v2661_v0 = vrot.slane %v2494_v26, 3  ;;  %v6350_v58 = vld [vmem:[%s5145_s17 + $0x6c] ss:$0 sps:$4 sm:$0x44]  }
  0xf5   : > { %v2555_v13 = vsel %vm536_vm6, %v2554_v37, %v2553_v7  ;;  %v2652_v57 = vsel %vm527_vm3, %v2489_v20, %v2651_v17  ;;  %v2662_v53 = vrot.slane %v2495_v28, 2  ;;  %v2664_v16 = vrot.slane %v2496_v30, 1  ;;  %v6303_v30 = vld [vmem:[%s5145_s17 + $0x24] ss:$0 sps:$4 sm:$0x44]  }
  0xf6   : > { %v2557_v5 = vsel %vm539_vm7, %v2556_v9, %v2555_v13  ;;  %v2654_v40 = vsel %vm530_vm4, %v2653_v62, %v2652_v57  ;;  %v2667_v20 = vrot.slane %v2498_v34, 7  ;;  %v2669_v18 = vrot.slane %v2499_v23, 6  ;;  %v6311_v34 = vld [vmem:[%s5145_s17 + $0x34] ss:$0 sps:$4 sm:$0x44]  }
  0xf7   : > { %v2559_v14 = vpack.c.b16 %v2557_v5, %v2543_v48  ;;  %v2656_v29 = vsel %vm533_vm5, %v2655_v8, %v2654_v40  ;;  %v2663_v26 = vsel %vm521_vm1, %v2662_v53, %v2661_v0  ;;  %v2671_v31 = vrot.slane %v2500_v19, 5  ;;  %v6353_v37 = vld [vmem:[%s5145_s17 + $0x74] ss:$0 sps:$4 sm:$0x44]  }
  0xf8   : > { %v2658_v4 = vsel %vm536_vm6, %v2657_v11, %v2656_v29  ;;  %v2673_v28 = vrot.slane %v2501_v42, 4  ;;  %v2665_v32 = vsel %vm524_vm2, %v2664_v16, %v2663_v26  ;;  %v2864_v42 = vunpack.c.l.b16 %v6284_v6  ;;  %v6360_v60 = vld [vmem:[%s5145_s17 + $0x7c] ss:$0 sps:$4 sm:$0x44]  }
  0xf9   : > { %4426 = vmatmul.mubr.msk.bf16.vlgmr.msra.gmra.mxu0 %vm585_vm8, %v2559_v14  ;;  %v2660_v23 = vsel %vm539_vm7, %v2659_v2, %v2658_v4  ;;  %v2666_v19 = vsel %vm527_vm3, %v2497_v33, %v2665_v32  ;;  %v2865_v44 = vunpack.c.l.b16 %v6289_v15  ;;  %v2866_v33 = vunpack.c.l.b16 %v6294_v27 }
  0xfa   : > { %4436 = vmatpush3.bf16.msra.mxu0 %v5130_v1  ;;  %v2668_v54 = vsel %vm530_vm4, %v2667_v20, %v2666_v19  ;;  %v2867_v43 = vunpack.c.l.b16 %v6298_v47  ;;  %v2868_v46 = vunpack.c.l.b16 %v6303_v30  ;;  %v2869_v56 = vunpack.c.l.b16 %v6308_v36 }
  0xfb   : > { %4473 = vmatprep.subr.msk.bf16.mxu0 %vm592_vm0, %v6142_v24  ;;  %v2670_v21 = vsel %vm533_vm5, %v2669_v18, %v2668_v54  ;;  %v2870_v12 = vunpack.c.l.b16 %v6311_v34  ;;  %v2871_v51 = vunpack.c.l.b16 %v6319_v41  ;;  %v2872_v9 = vunpack.c.l.b16 %v6322_v38 }
  0xfc   : > { %v2672_v52 = vsel %vm536_vm6, %v2671_v31, %v2670_v21  ;;  %v2873_v50 = vunpack.c.l.b16 %v6328_v10  ;;  %v2874_v25 = vunpack.c.l.b16 %v6331_v22  ;;  %v2875_v55 = vunpack.c.l.b16 %v6340_v35  ;;  %v6391_v10 = vld [vmem:[%s5145_s17 + $0x84] ss:$0 sps:$4 sm:$0x44]   ;;  %v6396_v21 = vld [vmem:[%s5145_s17 + $0x8c] ss:$0 sps:$4 sm:$0x44]  }
  0xfd   : > { %v2674_v49 = vsel %vm539_vm7, %v2673_v28, %v2672_v52  ;;  %v2876_v59 = vunpack.c.l.b16 %v6343_v45  ;;  %v2896_v61 = vrot.slane %v2864_v42, 4  ;;  %v2877_v63 = vunpack.c.l.b16 %v6350_v58  ;;  %v6403_v52 = vld [vmem:[%s5145_s17 + $0x94] ss:$0 sps:$4 sm:$0x44]  }
  0xfe   : > { %v2676_v62 = vpack.c.b16 %v2674_v49, %v2660_v23  ;;  %v2878_v3 = vunpack.c.l.b16 %v6353_v37  ;;  %v2897_v39 = vrot.slane %v2865_v44, 3  ;;  %v2879_v8 = vunpack.c.l.b16 %v6360_v60  ;;  %v6408_v49 = vld [vmem:[%s5145_s17 + $0x9c] ss:$0 sps:$4 sm:$0x44]  }
  0xff   : > { %v2899_v48 = vrot.slane %v2866_v33, 2  ;;  %v2901_v7 = vrot.slane %v2867_v43, 1  ;;  %v2904_v17 = vrot.slane %v2869_v56, 7  ;;  %v2906_v6 = vrot.slane %v2870_v12, 6 }
 0x100   : > { %4432 = vmatmul.mubr.msk.bf16.vlgmr.msra.gmra.mxu1 %vm585_vm8, %v2676_v62  ;;  %v2898_v11 = vsel %vm521_vm1, %v2897_v39, %v2896_v61  ;;  %v2908_v13 = vrot.slane %v2871_v51, 5  ;;  %v2910_v57 = vrot.slane %v2872_v9, 4  ;;  %v2911_v0 = vrot.slane %v2873_v50, 3  ;;  %v6420_v61 = vld [vmem:[%s5145_s17 + $0xb4] ss:$0 sps:$4 sm:$0x44]  }
 0x101   : > { %4442 = vmatpush3.bf16.msra.mxu1 %v5130_v1  ;;  %v2900_v2 = vsel %vm524_vm2, %v2899_v48, %v2898_v11  ;;  %v2913_v15 = vrot.slane %v2874_v25, 2  ;;  %v2915_v5 = vrot.slane %v2875_v55, 1  ;;  %v2918_v53 = vrot.slane %v2877_v63, 7  ;;  %v6425_v39 = vld [vmem:[%s5145_s17 + $0xbc] ss:$0 sps:$4 sm:$0x44]  }
 0x102   : > { %v2902_v40 = vsel %vm527_vm3, %v2901_v7, %v2900_v2  ;;  %v2920_v16 = vrot.slane %v2878_v3, 6  ;;  %v2922_v27 = vrot.slane %v2879_v8, 5  ;;  %4474 = vmatprep.subr.msk.bf16.mxu1 %vm592_vm0, %v6142_v24  ;;  %v2912_v29 = vsel %vm521_vm1, %v2911_v0, %v2910_v57  ;;  %v6428_v48 = vld [vmem:[%s5145_s17 + $0xc4] ss:$0 sps:$4 sm:$0x44]  }
 0x103   : > { %v2903_v14 = vsel %vm530_vm4, %v2868_v46, %v2902_v40  ;;  %v3013_v20 = vrot.slane %v2864_v42, 5  ;;  %v3014_v18 = vrot.slane %v2865_v44, 4  ;;  %v2914_v4 = vsel %vm524_vm2, %v2913_v15, %v2912_v29  ;;  %v6436_v11 = vld [vmem:[%s5145_s17 + $0xcc] ss:$0 sps:$4 sm:$0x44]  }
 0x104   : > { %v2905_v47 = vsel %vm533_vm5, %v2904_v17, %v2903_v14  ;;  %v3016_v26 = vrot.slane %v2866_v33, 3  ;;  %v3018_v31 = vrot.slane %v2867_v43, 2  ;;  %v2916_v30 = vsel %vm527_vm3, %v2915_v5, %v2914_v4  ;;  %v6446_v15 = vld [vmem:[%s5145_s17 + $0xdc] ss:$0 sps:$4 sm:$0x44]  }
 0x105   : > { %v2907_v28 = vsel %vm536_vm6, %v2906_v6, %v2905_v47  ;;  %v3015_v24 = vsel %vm521_vm1, %v3014_v18, %v3013_v20  ;;  %v3020_v32 = vrot.slane %v2868_v46, 1  ;;  %v2917_v23 = vsel %vm530_vm4, %v2876_v59, %v2916_v30  ;;  %v6439_v6 = vld [vmem:[%s5145_s17 + $0xd4] ss:$0 sps:$4 sm:$0x44]  }
 0x106   : > { %v2909_v34 = vsel %vm539_vm7, %v2908_v13, %v2907_v28  ;;  %v3017_v19 = vsel %vm524_vm2, %v3016_v26, %v3015_v24  ;;  %v3023_v41 = vrot.slane %v2870_v12, 7  ;;  %v2919_v38 = vsel %vm533_vm5, %v2918_v53, %v2917_v23  ;;  %v6449_v5 = vld [vmem:[%s5145_s17 + $0xe4] ss:$0 sps:$4 sm:$0x44]  }
 0x107   : > { %v3019_v42 = vsel %vm527_vm3, %v3018_v31, %v3017_v19  ;;  %v3025_v44 = vrot.slane %v2871_v51, 6  ;;  %v3027_v54 = vrot.slane %v2872_v9, 5  ;;  %v2921_v22 = vsel %vm536_vm6, %v2920_v16, %v2919_v38  ;;  %v6456_v16 = vld [vmem:[%s5145_s17 + $0xec] ss:$0 sps:$4 sm:$0x44]  }
 0x108   : > { %v3021_v33 = vsel %vm530_vm4, %v3020_v32, %v3019_v42  ;;  %v3028_v43 = vrot.slane %v2873_v50, 4  ;;  %v3030_v46 = vrot.slane %v2874_v25, 3  ;;  %v2923_v35 = vsel %vm539_vm7, %v2922_v27, %v2921_v22  ;;  %v6459_v27 = vld [vmem:[%s5145_s17 + $0xf4] ss:$0 sps:$4 sm:$0x44]  }
 0x109   : > { %v3022_v45 = vsel %vm533_vm5, %v2869_v56, %v3021_v33  ;;  %v3032_v12 = vrot.slane %v2875_v55, 2  ;;  %v3034_v51 = vrot.slane %v2876_v59, 1  ;;  %v2952_v37 = vpack.c.b16 %v2923_v35, %v2909_v34  ;;  %v6412_v56 = vld [vmem:[%s5145_s17 + $0xa4] ss:$0 sps:$4 sm:$0x44]  }
 0x10a   : > { %v3024_v9 = vsel %vm536_vm6, %v3023_v41, %v3022_v45  ;;  %v3029_v50 = vsel %vm521_vm1, %v3028_v43, %v3027_v54  ;;  %v3037_v25 = vrot.slane %v2878_v3, 7  ;;  %v3039_v60 = vrot.slane %v2879_v8, 6  ;;  %v6417_v59 = vld [vmem:[%s5145_s17 + $0xac] ss:$0 sps:$4 sm:$0x44]  }
 0x10b   : > { %v3031_v36 = vsel %vm524_vm2, %v3030_v46, %v3029_v50  ;;  %4437 = vmatprep.mubr.msk.bf16.mxu0 %vm585_vm8, %v2952_v37  ;;  %v3026_v62 = vsel %vm539_vm7, %v3025_v44, %v3024_v9  ;;  %v2880_v8 = vunpack.c.l.b16 %v6391_v10  ;;  %v2881_v7 = vunpack.c.l.b16 %v6396_v21  ;;  %v4903_v47 = vld [vmem:[%s5145_s17 + $0xfc] ss:$0 sps:$4 sm:$0x44]  }
 0x10c   : > { %v3033_v55 = vsel %vm527_vm3, %v3032_v12, %v3031_v36  ;;  %v2882_v13 = vunpack.c.l.b16 %v6403_v52  ;;  %v2883_v57 = vunpack.c.l.b16 %v6408_v49  ;;  %v2884_v2 = vunpack.c.l.b16 %v6412_v56 }
 0x10d   : > { %v3035_v3 = vsel %vm530_vm4, %v3034_v51, %v3033_v55  ;;  %v2885_v58 = vunpack.c.l.b16 %v6417_v59  ;;  %v2887_v40 = vunpack.c.l.b16 %v6425_v39  ;;  %v2888_v14 = vunpack.c.l.b16 %v6428_v48  ;;  %v6489_v48 = vld [vmem:[%s5145_s17 + $0x4] ss:$0 sps:$4 sm:$0x88]  }
 0x10e   : > { %v3036_v17 = vsel %vm533_vm5, %v2877_v63, %v3035_v3  ;;  %v2886_v63 = vunpack.c.l.b16 %v6420_v61  ;;  %v2889_v29 = vunpack.c.l.b16 %v6436_v11  ;;  %v2890_v20 = vunpack.c.l.b16 %v6439_v6  ;;  %v6494_v6 = vld [vmem:[%s5145_s17 + $0xc] ss:$0 sps:$4 sm:$0x88]  }
 0x10f   : > { %v3038_v0 = vsel %vm536_vm6, %v3037_v25, %v3036_v17  ;;  %v2891_v4 = vunpack.c.l.b16 %v6446_v15  ;;  %v2892_v26 = vunpack.c.l.b16 %v6449_v5  ;;  %v2924_v31 = vrot.slane %v2880_v8, 4  ;;  %v6499_v15 = vld [vmem:[%s5145_s17 + $0x14] ss:$0 sps:$4 sm:$0x88]  }
 0x110   : > { %v3040_v53 = vsel %vm539_vm7, %v3039_v60, %v3038_v0  ;;  %v2893_v28 = vunpack.c.l.b16 %v6456_v16  ;;  %v2894_v30 = vunpack.c.l.b16 %v6459_v27  ;;  %v2925_v24 = vrot.slane %v2881_v7, 3  ;;  %v6505_v27 = vld [vmem:[%s5145_s17 + $0x1c] ss:$0 sps:$4 sm:$0x88]  }
 0x111   : > { %v3069_v18 = vpack.c.b16 %v3040_v53, %v3026_v62  ;;  %v2927_v32 = vrot.slane %v2882_v13, 2  ;;  %v2895_v34 = vunpack.c.l.b16 %v4903_v47  ;;  %v2929_v23 = vrot.slane %v2883_v57, 1  ;;  %v6510_v47 = vld [vmem:[%s5145_s17 + $0x24] ss:$0 sps:$4 sm:$0x88]  }
 0x112   : > { %v2932_v19 = vrot.slane %v2885_v58, 7  ;;  %v2934_v41 = vrot.slane %v2886_v63, 6  ;;  %v2926_v38 = vsel %vm521_vm1, %v2925_v24, %v2924_v31  ;;  %v2936_v42 = vrot.slane %v2887_v40, 5  ;;  %v6527_v24 = vld [vmem:[%s5145_s17 + $0x44] ss:$0 sps:$4 sm:$0x88]  }
 0x113   : > { %4443 = vmatprep.mubr.msk.bf16.mxu1 %vm585_vm8, %v3069_v18  ;;  %v2938_v44 = vrot.slane %v2888_v14, 4  ;;  %v2939_v54 = vrot.slane %v2889_v29, 3  ;;  %v2928_v10 = vsel %vm524_vm2, %v2927_v32, %v2926_v38  ;;  %v2941_v22 = vrot.slane %v2890_v20, 2 }
 0x114   : > { %v2943_v33 = vrot.slane %v2891_v4, 1  ;;  %v2946_v43 = vrot.slane %v2893_v28, 7  ;;  %v2930_v46 = vsel %vm527_vm3, %v2929_v23, %v2928_v10  ;;  %v2948_v35 = vrot.slane %v2894_v30, 6  ;;  %v6545_v10 = vld [vmem:[%s5145_s17 + $0x5c] ss:$0 sps:$4 sm:$0x88]  }
 0x115   : > { %v2940_v21 = vsel %vm521_vm1, %v2939_v54, %v2938_v44  ;;  %v2950_v45 = vrot.slane %v2895_v34, 5  ;;  %v2931_v12 = vsel %vm530_vm4, %v2884_v2, %v2930_v46  ;;  %v3041_v52 = vrot.slane %v2880_v8, 5 }
 0x116   : > { %v2942_v51 = vsel %vm524_vm2, %v2941_v22, %v2940_v21  ;;  %v3042_v37 = vrot.slane %v2881_v7, 4  ;;  %v2933_v9 = vsel %vm533_vm5, %v2932_v19, %v2931_v12  ;;  %v3044_v25 = vrot.slane %v2882_v13, 3  ;;  %v6533_v19 = vld [vmem:[%s5145_s17 + $0x4c] ss:$0 sps:$4 sm:$0x88]  }
 0x117   : > { %v2944_v50 = vsel %vm527_vm3, %v2943_v33, %v2942_v51  ;;  %v3046_v49 = vrot.slane %v2883_v57, 2  ;;  %v2935_v36 = vsel %vm536_vm6, %v2934_v41, %v2933_v9  ;;  %v3048_v55 = vrot.slane %v2884_v2, 1  ;;  %v6536_v41 = vld [vmem:[%s5145_s17 + $0x54] ss:$0 sps:$4 sm:$0x88]  }
 0x118   : > { %v2945_v60 = vsel %vm530_vm4, %v2892_v26, %v2944_v50  ;;  %v3043_v56 = vsel %vm521_vm1, %v3042_v37, %v3041_v52  ;;  %v2937_v61 = vsel %vm539_vm7, %v2936_v42, %v2935_v36  ;;  %v3051_v39 = vrot.slane %v2886_v63, 7  ;;  %v6548_v22 = vld [vmem:[%s5145_s17 + $0x64] ss:$0 sps:$4 sm:$0x88]  }
 0x119   : > { %v2947_v62 = vsel %vm533_vm5, %v2946_v43, %v2945_v60  ;;  %v3045_v3 = vsel %vm524_vm2, %v3044_v25, %v3043_v56  ;;  %v3053_v17 = vrot.slane %v2887_v40, 6  ;;  %v3055_v11 = vrot.slane %v2888_v14, 5  ;;  %v6565_v52 = vld [vmem:[%s5145_s17 + $0x7c] ss:$0 sps:$4 sm:$0x88]  }
 0x11a   : > { %v2949_v8 = vsel %vm536_vm6, %v2948_v35, %v2947_v62  ;;  %v3047_v7 = vsel %vm527_vm3, %v3046_v49, %v3045_v3  ;;  %v3056_v2 = vrot.slane %v2889_v29, 4  ;;  %v3058_v0 = vrot.slane %v2890_v20, 3  ;;  %v6555_v35 = vld [vmem:[%s5145_s17 + $0x6c] ss:$0 sps:$4 sm:$0x88]  }
 0x11b   : > { %v2951_v13 = vsel %vm539_vm7, %v2950_v45, %v2949_v8  ;;  %v3049_v57 = vsel %vm530_vm4, %v3048_v55, %v3047_v7  ;;  %v3060_v40 = vrot.slane %v2891_v4, 2  ;;  %v3062_v53 = vrot.slane %v2892_v26, 1  ;;  %v6518_v4 = vld [vmem:[%s5145_s17 + $0x34] ss:$0 sps:$4 sm:$0x88]  }
 0x11c   : > { %v2953_v5 = vpack.c.b16 %v2951_v13, %v2937_v61  ;;  %v3050_v63 = vsel %vm533_vm5, %v2885_v58, %v3049_v57  ;;  %v3057_v18 = vsel %vm521_vm1, %v3056_v2, %v3055_v11  ;;  %v3065_v29 = vrot.slane %v2894_v30, 7  ;;  %v6515_v58 = vld [vmem:[%s5145_s17 + $0x2c] ss:$0 sps:$4 sm:$0x88]  }
 0x11d   : > { %v3052_v14 = vsel %vm536_vm6, %v3051_v39, %v3050_v63  ;;  %v3067_v20 = vrot.slane %v2895_v34, 6  ;;  %v3059_v59 = vsel %vm524_vm2, %v3058_v0, %v3057_v18  ;;  %v6524_v30 = vld [vmem:[%s5145_s17 + $0x3c] ss:$0 sps:$4 sm:$0x88]   ;;  %v3258_v32 = vunpack.c.l.b16 %v6489_v48 }
 0x11e   : > { %4438 = vmatmul.mubr.msk.bf16.vlgmr.msra.gmra.mxu0 %vm585_vm8, %v2953_v5  ;;  %v3054_v26 = vsel %vm539_vm7, %v3053_v17, %v3052_v14  ;;  %v3061_v31 = vsel %vm527_vm3, %v3060_v40, %v3059_v59  ;;  %v3259_v34 = vunpack.c.l.b16 %v6494_v6  ;;  %v3260_v38 = vunpack.c.l.b16 %v6499_v15  ;;  %v6558_v45 = vld [vmem:[%s5145_s17 + $0x74] ss:$0 sps:$4 sm:$0x88]  }
 0x11f   : > { %4448 = vmatpush3.bf16.msra.mxu0 %v5130_v1  ;;  %v3063_v23 = vsel %vm530_vm4, %v3062_v53, %v3061_v31  ;;  %v3261_v42 = vunpack.c.l.b16 %v6505_v27  ;;  %v3262_v44 = vunpack.c.l.b16 %v6510_v47  ;;  %v3263_v33 = vunpack.c.l.b16 %v6515_v58 }
 0x120   : > { %v3064_v54 = vsel %vm533_vm5, %v2893_v28, %v3063_v23  ;;  %v3264_v43 = vunpack.c.l.b16 %v6518_v4  ;;  %v3265_v46 = vunpack.c.l.b16 %v6524_v30  ;;  %v3266_v16 = vunpack.c.l.b16 %v6527_v24  ;;  %v6594_v23 = vld [vmem:[%s5145_s17 + $0x84] ss:$0 sps:$4 sm:$0x88]  }
 0x121   : > { %v3066_v21 = vsel %vm536_vm6, %v3065_v29, %v3064_v54  ;;  %v3267_v28 = vunpack.c.l.b16 %v6533_v19  ;;  %v3268_v12 = vunpack.c.l.b16 %v6536_v41  ;;  %v3269_v37 = vunpack.c.l.b16 %v6545_v10 }
 0x122   : > { %v3068_v51 = vsel %vm539_vm7, %v3067_v20, %v3066_v21  ;;  %v3270_v9 = vunpack.c.l.b16 %v6548_v22  ;;  %v3290_v50 = vrot.slane %v3258_v32, 6  ;;  %v3271_v49 = vunpack.c.l.b16 %v6555_v35 }
 0x123   : > { %v3070_v25 = vpack.c.b16 %v3068_v51, %v3054_v26  ;;  %v3272_v36 = vunpack.c.l.b16 %v6558_v45  ;;  %v3291_v60 = vrot.slane %v3259_v34, 5  ;;  %v3273_v56 = vunpack.c.l.b16 %v6565_v52 }
 0x124   : > { %v3293_v55 = vrot.slane %v3260_v38, 4  ;;  %v3295_v61 = vrot.slane %v3261_v42, 3  ;;  %v3297_v62 = vrot.slane %v3262_v44, 2  ;;  %v3299_v39 = vrot.slane %v3263_v33, 1 }
 0x125   : > { %4444 = vmatmul.mubr.msk.bf16.vlgmr.msra.gmra.mxu1 %vm585_vm8, %v3070_v25  ;;  %v3292_v3 = vsel %vm521_vm1, %v3291_v60, %v3290_v50  ;;  %v3302_v48 = vrot.slane %v3265_v46, 7  ;;  %v3304_v8 = vrot.slane %v3266_v16, 6  ;;  %v3305_v17 = vrot.slane %v3267_v28, 5  ;;  %v6613_v50 = vld [vmem:[%s5145_s17 + $0xa4] ss:$0 sps:$4 sm:$0x88]  }
 0x126   : > { %4454 = vmatpush3.bf16.msra.mxu1 %v5130_v1  ;;  %v3294_v7 = vsel %vm524_vm2, %v3293_v55, %v3292_v3  ;;  %v3307_v11 = vrot.slane %v3268_v12, 4  ;;  %v3309_v6 = vrot.slane %v3269_v37, 3  ;;  %v3311_v57 = vrot.slane %v3270_v9, 2  ;;  %v6621_v25 = vld [vmem:[%s5145_s17 + $0xb4] ss:$0 sps:$4 sm:$0x88]  }
 0x127   : > { %v3296_v13 = vsel %vm527_vm3, %v3295_v61, %v3294_v7  ;;  %v3313_v2 = vrot.slane %v3271_v49, 1  ;;  %v3316_v0 = vrot.slane %v3273_v56, 7  ;;  %v3306_v5 = vsel %vm521_vm1, %v3305_v17, %v3304_v8  ;;  %v6628_v55 = vld [vmem:[%s5145_s17 + $0xbc] ss:$0 sps:$4 sm:$0x88]  }
 0x128   : > { %v3298_v15 = vsel %vm530_vm4, %v3297_v62, %v3296_v13  ;;  %v3407_v63 = vrot.slane %v3258_v32, 7  ;;  %v3408_v40 = vrot.slane %v3259_v34, 6  ;;  %v3308_v53 = vsel %vm524_vm2, %v3307_v11, %v3306_v5  ;;  %v6647_v17 = vld [vmem:[%s5145_s17 + $0xdc] ss:$0 sps:$4 sm:$0x88]  }
 0x129   : > { %v3300_v1 = vsel %vm533_vm5, %v3299_v39, %v3298_v15  ;;  %v3410_v27 = vrot.slane %v3260_v38, 5  ;;  %v3412_v14 = vrot.slane %v3261_v42, 4  ;;  %v3310_v29 = vsel %vm527_vm3, %v3309_v6, %v3308_v53  ;;  %v6637_v39 = vld [vmem:[%s5145_s17 + $0xcc] ss:$0 sps:$4 sm:$0x88]  }
 0x12a   : > { %v3301_v18 = vsel %vm536_vm6, %v3264_v43, %v3300_v1  ;;  %v3409_v20 = vsel %vm521_vm1, %v3408_v40, %v3407_v63  ;;  %v3414_v47 = vrot.slane %v3262_v44, 3  ;;  %v3312_v58 = vsel %vm530_vm4, %v3311_v57, %v3310_v29  ;;  %v6599_v44 = vld [vmem:[%s5145_s17 + $0x8c] ss:$0 sps:$4 sm:$0x88]  }
 0x12b   : > { %v3303_v59 = vsel %vm539_vm7, %v3302_v48, %v3301_v18  ;;  %v3411_v4 = vsel %vm524_vm2, %v3410_v27, %v3409_v20  ;;  %v3416_v26 = vrot.slane %v3263_v33, 2  ;;  %v3314_v31 = vsel %vm533_vm5, %v3313_v2, %v3312_v58  ;;  %v6640_v48 = vld [vmem:[%s5145_s17 + $0xd4] ss:$0 sps:$4 sm:$0x88]  }
 0x12c   : > { %v3413_v24 = vsel %vm527_vm3, %v3412_v14, %v3411_v4  ;;  %v3418_v32 = vrot.slane %v3264_v43, 1  ;;  %v3421_v34 = vrot.slane %v3266_v16, 7  ;;  %v3315_v19 = vsel %vm536_vm6, %v3272_v36, %v3314_v31  ;;  %v6604_v43 = vld [vmem:[%s5145_s17 + $0x94] ss:$0 sps:$4 sm:$0x88]  }
 0x12d   : > { %v3415_v41 = vsel %vm530_vm4, %v3414_v47, %v3413_v24  ;;  %v3422_v38 = vrot.slane %v3267_v28, 6  ;;  %v3424_v42 = vrot.slane %v3268_v12, 5  ;;  %v3317_v54 = vsel %vm539_vm7, %v3316_v0, %v3315_v19  ;;  %v6609_v28 = vld [vmem:[%s5145_s17 + $0x9c] ss:$0 sps:$4 sm:$0x88]  }
 0x12e   : > { %v3417_v10 = vsel %vm533_vm5, %v3416_v26, %v3415_v41  ;;  %v3426_v22 = vrot.slane %v3269_v37, 4  ;;  %v3428_v33 = vrot.slane %v3270_v9, 3  ;;  %v3346_v21 = vpack.c.b16 %v3317_v54, %v3303_v59  ;;  %v6618_v9 = vld [vmem:[%s5145_s17 + $0xac] ss:$0 sps:$4 sm:$0x88]  }
 0x12f   : > { %v3419_v35 = vsel %vm536_vm6, %v3418_v32, %v3417_v10  ;;  %v3423_v45 = vsel %vm521_vm1, %v3422_v38, %v3421_v34  ;;  %v3430_v16 = vrot.slane %v3271_v49, 2  ;;  %v3432_v51 = vrot.slane %v3272_v36, 1  ;;  %v6631_v36 = vld [vmem:[%s5145_s17 + $0xc4] ss:$0 sps:$4 sm:$0x88]  }
 0x130   : > { %v3425_v12 = vsel %vm524_vm2, %v3424_v42, %v3423_v45  ;;  %4449 = vmatprep.mubr.msk.bf16.mxu0 %vm585_vm8, %v3346_v21  ;;  %v3420_v49 = vsel %vm539_vm7, %v3265_v46, %v3419_v35  ;;  %v3274_v61 = vunpack.c.l.b16 %v6594_v23  ;;  %v3275_v62 = vunpack.c.l.b16 %v6599_v44  ;;  %v6650_v11 = vld [vmem:[%s5145_s17 + $0xe4] ss:$0 sps:$4 sm:$0x88]   ;;  %v4933_v0 = vld [vmem:[%s5145_s17 + $0xec] ss:$0 sps:$4 sm:$0x88]  }
 0x131   : > { %v3427_v37 = vsel %vm527_vm3, %v3426_v22, %v3425_v12  ;;  %v3276_v30 = vunpack.c.l.b16 %v6604_v43  ;;  %v3277_v46 = vunpack.c.l.b16 %v6609_v28  ;;  %v3278_v8 = vunpack.c.l.b16 %v6613_v50  ;;  %v6660_v15 = vld [vmem:[%s5145_s17 + $0xf4] ss:$0 sps:$4 sm:$0x88]   ;;  %v6666_v53 = vld [vmem:[%s5145_s17 + $0xfc] ss:$0 sps:$4 sm:$0x88]  }
 0x132   : > { %v3429_v60 = vsel %vm530_vm4, %v3428_v33, %v3427_v37  ;;  %v3279_v6 = vunpack.c.l.b16 %v6618_v9  ;;  %v3280_v13 = vunpack.c.l.b16 %v6621_v25  ;;  %v3281_v57 = vunpack.c.l.b16 %v6628_v55  ;;  %s5020_s17 = smov 16  }
 0x133   : > { %v3431_v3 = vsel %vm533_vm5, %v3430_v16, %v3429_v60  ;;  %v3282_v5 = vunpack.c.l.b16 %v6631_v36  ;;  %v3283_v63 = vunpack.c.l.b16 %v6637_v39  ;;  %v3284_v40 = vunpack.c.l.b16 %v6640_v48 }
 0x134   : > { %v3433_v7 = vsel %vm536_vm6, %v3432_v51, %v3431_v3  ;;  %v3285_v27 = vunpack.c.l.b16 %v6647_v17  ;;  %v3286_v14 = vunpack.c.l.b16 %v6650_v11  ;;  %v3318_v18 = vrot.slane %v3274_v61, 6 }
 0x135   : > { %v3434_v2 = vsel %vm539_vm7, %v3273_v56, %v3433_v7  ;;  %v3287_v52 = vunpack.c.l.b16 %v4933_v0  ;;  %v3288_v56 = vunpack.c.l.b16 %v6660_v15  ;;  %v3319_v29 = vrot.slane %v3275_v62, 5 }
 0x136   : > { %v3463_v1 = vpack.c.b16 %v3434_v2, %v3420_v49  ;;  %v3321_v20 = vrot.slane %v3276_v30, 4  ;;  %v3289_v47 = vunpack.c.l.b16 %v6666_v53  ;;  %v3323_v59 = vrot.slane %v3277_v46, 3  ;;  %v338_v2 = vld [vmem:[%s7109_s3 + $0x10] sm:$0xff] }
 0x137   : > { %v3325_v58 = vrot.slane %v3278_v8, 2  ;;  %v3327_v4 = vrot.slane %v3279_v6, 1  ;;  %v3320_v26 = vsel %vm521_vm1, %v3319_v29, %v3318_v18  ;;  %v3330_v31 = vrot.slane %v3281_v57, 7  ;;  %v339_v18 = vld [vmem:[%s7109_s3 + $0x18] sm:$0xff] }
 0x138   : > { %4455 = vmatprep.mubr.msk.bf16.mxu1 %vm585_vm8, %v3463_v1  ;;  %v3332_v24 = vrot.slane %v3282_v5, 6  ;;  %v3333_v32 = vrot.slane %v3283_v63, 5  ;;  %v3322_v34 = vsel %vm524_vm2, %v3321_v20, %v3320_v26  ;;  %v3335_v23 = vrot.slane %v3284_v40, 4  ;;  %v4373_v20 = vpop.f32.mrf.mxu1 }
 0x139   : > { %v3337_v19 = vrot.slane %v3285_v27, 3  ;;  %v3339_v41 = vrot.slane %v3286_v14, 2  ;;  %v3324_v38 = vsel %vm527_vm3, %v3323_v59, %v3322_v34  ;;  %v3341_v44 = vrot.slane %v3287_v52, 1 }
 0x13a   : > { %v3334_v42 = vsel %vm521_vm1, %v3333_v32, %v3332_v24  ;;  %v3344_v54 = vrot.slane %v3289_v47, 7  ;;  %v3326_v10 = vsel %vm530_vm4, %v3325_v58, %v3324_v38  ;;  %v3435_v33 = vrot.slane %v3274_v61, 7  ;;  %v747_v58 = vpop.f32.mrf.mxu1 }
 0x13b   : > { %v3336_v22 = vsel %vm524_vm2, %v3335_v23, %v3334_v42  ;;  %v3436_v43 = vrot.slane %v3275_v62, 6  ;;  %v3328_v21 = vsel %vm533_vm5, %v3327_v4, %v3326_v10  ;;  %v3438_v45 = vrot.slane %v3276_v30, 5 }
 0x13c   : > { %v3338_v35 = vsel %vm527_vm3, %v3337_v19, %v3336_v22  ;;  %v3440_v16 = vrot.slane %v3277_v46, 4  ;;  %v3329_v28 = vsel %vm536_vm6, %v3280_v13, %v3328_v21  ;;  %v3442_v50 = vrot.slane %v3278_v8, 3  ;;  %v4374_v26 = vpop.f32.mrf.mxu1 }
 0x13d   : > { %v3340_v12 = vsel %vm530_vm4, %v3339_v41, %v3338_v35  ;;  %v3437_v51 = vsel %vm521_vm1, %v3436_v43, %v3435_v33  ;;  %v3331_v37 = vsel %vm539_vm7, %v3330_v31, %v3329_v28  ;;  %v3444_v49 = vrot.slane %v3279_v6, 2 }
 0x13e   : > { %v3342_v9 = vsel %vm533_vm5, %v3341_v44, %v3340_v12  ;;  %v3439_v25 = vsel %vm524_vm2, %v3438_v45, %v3437_v51  ;;  %v3446_v61 = vrot.slane %v3280_v13, 1  ;;  %v3449_v62 = vrot.slane %v3282_v5, 7  ;;  %v336_v13 = vld [vmem:[%s7109_s3] sm:$0xff]  ;;  %v750_v24 = vpop.f32.mrf.mxu1 }
 0x13f   : > { %v3343_v60 = vsel %vm536_vm6, %v3288_v56, %v3342_v9  ;;  %v3441_v36 = vsel %vm527_vm3, %v3440_v16, %v3439_v25  ;;  %v3450_v48 = vrot.slane %v3283_v63, 6  ;;  %v3452_v30 = vrot.slane %v3284_v40, 5 }
 0x140   : > { %v3345_v3 = vsel %vm539_vm7, %v3344_v54, %v3343_v60  ;;  %v3443_v39 = vsel %vm530_vm4, %v3442_v50, %v3441_v36  ;;  %v3454_v7 = vrot.slane %v3285_v27, 4  ;;  %v3456_v17 = vrot.slane %v3286_v14, 3  ;;  %v4385_v32 = vpop.f32.mrf.mxu1 }
 0x141   : > { %v3347_v46 = vpack.c.b16 %v3345_v3, %v3331_v37  ;;  %v3445_v8 = vsel %vm533_vm5, %v3444_v49, %v3443_v39  ;;  %v3451_v11 = vsel %vm521_vm1, %v3450_v48, %v3449_v62  ;;  %v3458_v6 = vrot.slane %v3287_v52, 2  ;;  %v337_v52 = vld [vmem:[%s7109_s3 + $0x8] sm:$0xff] }
 0x142   : > { %v3447_v0 = vsel %vm536_vm6, %v3446_v61, %v3445_v8  ;;  %v3453_v15 = vsel %vm524_vm2, %v3452_v30, %v3451_v11  ;;  %v3460_v5 = vrot.slane %v3288_v56, 1  ;;  %v5019_v40 = vmov 0   ;;  %v1141_v34 = vpop.f32.mrf.mxu1 }
 0x143   : > { %4450 = vmatmul.mubr.msk.bf16.vlgmr.msra.gmra.mxu0 %vm585_vm8, %v3347_v46  ;;  %v3455_v63 = vsel %vm527_vm3, %v3454_v7, %v3453_v15  ;;  %4538 = vset.pattern.permute.xlu0 %v5019_v40  ;;  %v3448_v27 = vsel %vm539_vm7, %v3281_v57, %v3447_v0  ;;  %v6723_v57 = vpop.f32.mrf.mxu0  ;;  %vm3773_vm14 = vcmask 785408   ;;  %vm3778_vm15 = vcmask 916480  }
 0x144   : > { %4539 = vset.pattern.permute.xlu1 %v5019_v40  ;;  %v3457_v1 = vsel %vm530_vm4, %v3456_v17, %v3455_v63  ;;  %384 = vperm.xlu0 %4538, %v338_v2   ;;  %v4386_v19 = vpop.f32.mrf.mxu1 }
 0x145   : > { %374 = vperm.xlu1 %4539, %v336_v13   ;;  %v3459_v14 = vsel %vm533_vm5, %v3458_v6, %v3457_v1  ;;  %3875 = vmatprep.mubr.bf16.mxu0 %v5019_v40  ;;  %v6725_v59 = vpop.f32.mrf.mxu0 }
 0x146   : > { %v3461_v56 = vsel %vm536_vm6, %v3460_v5, %v3459_v14  ;;  %v1144_v38 = vpop.f32.mrf.mxu1 }
 0x147   : > { %v3462_v29 = vsel %vm539_vm7, %v3289_v47, %v3461_v56  ;;  %v6727_v4 = vpop.f32.mrf.mxu0 }
 0x148   : > { %v3464_v55 = vpack.c.b16 %v3462_v29, %v3448_v27  ;;  %389 = vperm.xlu0 %4538, %v339_v18  }
 0x149   : > { %379 = vperm.xlu1 %4539, %v337_v52   ;;  %v6729_v31 = vpop.f32.mrf.mxu0 }
 0x14a   : > { %4456 = vmatmul.mubr.msk.bf16.vlgmr.msra.gmra.mxu1 %vm585_vm8, %v3464_v55 }
 0x14b   : > { %v4379_v53 = vpop.f32.mrf.mxu0 }
 0x14d   : > { %v1024_v47 = vpop.f32.mrf.mxu0 }
 0x14f   : > { %v4380_v23 = vpop.f32.mrf.mxu0 }
 0x151   : > { %v1027_v41 = vpop.f32.mrf.mxu0  ;;  %v6731_v44 = vpop.f32.mrf.mxu1 }
 0x153   : > { %v4391_v42 = vpop.f32.mrf.mxu0  ;;  %v6735_v10 = vpop.f32.mrf.mxu1 }
 0x155   : > { %v6733_v54 = vpop.f32.mrf.mxu0  ;;  %v6737_v33 = vpop.f32.mrf.mxu1 }
 0x157   : > { %v4392_v22 = vpop.f32.mrf.mxu0  ;;  %v6741_v21 = vpop.f32.mrf.mxu1 }
 0x159   : > { %v6739_v43 = vpop.f32.mrf.mxu0 }
 0x16f   : > { %v6743_v35 = vpop.f32.mrf.mxu0 }
 0x171   : > { %v6747_v16 = vpop.f32.mrf.mxu0 }
 0x173   : > { %v6751_v12 = vpop.f32.mrf.mxu0 }
 0x175   : > { %v6755_v50 = vpop.f32.mrf.mxu0 }
 0x176   : > { %v6745_v45 = vpop.f32.mrf.mxu1 }
 0x178   : > { %v6749_v28 = vpop.f32.mrf.mxu1 }
 0x17a   : > { %v6753_v51 = vpop.f32.mrf.mxu1 }
 0x17c   : > { %v6757_v37 = vpop.f32.mrf.mxu1 }
 0x194   : > { %v6759_v9 = vpop.f32.mrf.mxu0 }
 0x196   : > { %v6767_v62 = vpop.f32.mrf.mxu0 }
 0x198   : > { %v6779_v15 = vpop.f32.mrf.mxu0 }
 0x19b   : > { %v4421_v61 = vpop.f32.mrf.mxu1 }
 0x19d   : > { %v2323_v0 = vpop.f32.mrf.mxu1 }
 0x1bf   : > { %v6761_v25 = vpop.permute.xlu0 %384 }
 0x1c0   : > { %v6763_v49 = vpop.permute.xlu1 %374  ;;  %v756_v60 = vadd.f32 %v4373_v20, %v6761_v25  ;;  %v1033_v48 = vadd.f32 %v4379_v53, %v6761_v25  ;;  %v1150_v56 = vadd.f32 %v4385_v32, %v6761_v25 }
 0x1c1   : > { %v748_v36 = vadd.f32 %v747_v58, %v6763_v49  ;;  %v1025_v30 = vadd.f32 %v1024_v47, %v6763_v49  ;;  %v1142_v29 = vadd.f32 %v1141_v34, %v6763_v49  ;;  %v4422_v58 = vpop.f32.mrf.mxu1 }
 0x1c2   : > { %v764_v11 = vmax.f32 %v756_v60, 0.0  ;;  %v1041_v5 = vmax.f32 %v1033_v48, 0.0 }
 0x1c3   : > { %v6769_v3 = vpop.permute.xlu0 %389  ;;  %v762_v6 = vmax.f32 %v748_v36, 0.0  ;;  %v1039_v63 = vmax.f32 %v1025_v30, 0.0  ;;  %v1156_v32 = vmax.f32 %v1142_v29, 0.0  ;;  %v1544_v30 = vadd.f32 %v6731_v44, %v6761_v25 }
 0x1c4   : > { %v6771_v39 = vpop.permute.xlu1 %379  ;;  %v759_v46 = vadd.f32 %v4374_v26, %v6769_v3  ;;  %v1036_v7 = vadd.f32 %v4380_v23, %v6769_v3  ;;  %v1153_v18 = vadd.f32 %v4386_v19, %v6769_v3  ;;  %v6787_v26 = vpop.f32.mrf.mxu0  ;;  %v1427_v23 = vadd.f32 %v4391_v42, %v6761_v25 }
 0x1c5   : > { %v751_v8 = vadd.f32 %v750_v24, %v6771_v39  ;;  %v1028_v17 = vadd.f32 %v1027_v41, %v6771_v39  ;;  %v1145_v52 = vadd.f32 %v1144_v38, %v6771_v39  ;;  %v1430_v24 = vadd.f32 %v4392_v22, %v6769_v3  ;;  %v2326_v41 = vpop.f32.mrf.mxu1 }
 0x1c6   : > { %v765_v2 = vmax.f32 %v759_v46, 0.0  ;;  %v1042_v40 = vmax.f32 %v1036_v7, 0.0  ;;  %v1159_v53 = vmax.f32 %v1153_v18, 0.0  ;;  %v1158_v19 = vmax.f32 %v1150_v56, 0.0  ;;  %v4427_v38 = vpop.f32.mrf.mxu0 }
 0x1c7   : > { %v763_v13 = vmax.f32 %v751_v8, 0.0  ;;  %v1040_v1 = vmax.f32 %v1028_v17, 0.0  ;;  %v1157_v47 = vmax.f32 %v1145_v52, 0.0  ;;  %v1436_v34 = vmax.f32 %v1430_v24, 0.0  ;;  %v4433_v46 = vpop.f32.mrf.mxu1 }
 0x1c8   : > { %v4540_v27 = vpack.i.bf16 %v765_v2, %v764_v11  ;;  %v4550_v55 = vpack.i.bf16 %v1042_v40, %v1041_v5  ;;  %v4555_v60 = vpack.i.bf16 %v1159_v53, %v1158_v19  ;;  %v1435_v48 = vmax.f32 %v1427_v23, 0.0  ;;  %v2600_v8 = vpop.f32.mrf.mxu0 }
 0x1c9   : > { %v4545_v14 = vpack.i.bf16 %v763_v13, %v762_v6  ;;  %v4560_v20 = vpack.i.bf16 %v1040_v1, %v1039_v63  ;;  %v4565_v36 = vpack.i.bf16 %v1157_v47, %v1156_v32  ;;  %v1547_v22 = vadd.f32 %v6737_v33, %v6769_v3  ;;  %v2717_v13 = vpop.f32.mrf.mxu1 }
 0x1ca   : > { %4541 = vrot.lane.b32.xlu1 %v4540_v27, %s5020_s17  ;;  %v4570_v42 = vpack.i.bf16 %v1436_v34, %v1435_v48  ;;  %v2332_v7 = vadd.f32 %v4421_v61, %v6761_v25  ;;  %v1422_v11 = vadd.f32 %v6739_v43, %v6771_v39  ;;  %v2335_v6 = vadd.f32 %v4422_v58, %v6769_v3  ;;  %v4428_v5 = vpop.f32.mrf.mxu0 }
 0x1cb   : > { %4546 = vrot.lane.b32.xlu0 %v4545_v14, %s5020_s17  ;;  %v1553_v17 = vmax.f32 %v1547_v22, 0.0  ;;  %v1552_v33 = vmax.f32 %v1544_v30, 0.0  ;;  %v1419_v44 = vadd.f32 %v6733_v54, %v6763_v49  ;;  %v2327_v2 = vadd.f32 %v2326_v41, %v6771_v39 }
 0x1cc   : > { %v2340_v63 = vmax.f32 %v2332_v7, 0.0  ;;  %v2324_v61 = vadd.f32 %v2323_v0, %v6763_v49  ;;  %v2341_v40 = vmax.f32 %v2335_v6, 0.0  ;;  %v1434_v27 = vmax.f32 %v1422_v11, 0.0  ;;  %v4434_v0 = vpop.f32.mrf.mxu1 }
 0x1cd   : > { %v4575_v1 = vpack.i.bf16 %v1553_v17, %v1552_v33  ;;  %v1539_v43 = vadd.f32 %v6741_v21, %v6771_v39  ;;  %v2339_v18 = vmax.f32 %v2327_v2, 0.0  ;;  %v2609_v54 = vadd.f32 %v4427_v38, %v6761_v25 }
 0x1ce   : > { %4551 = vrot.lane.b32.xlu1 %v4550_v55, %s5021_s18  ;;  %v4600_v14 = vpack.i.bf16 %v2341_v40, %v2340_v63  ;;  %v2612_v52 = vadd.f32 %v4428_v5, %v6769_v3  ;;  %v1433_v56 = vmax.f32 %v1419_v44, 0.0  ;;  %v1536_v29 = vadd.f32 %v6735_v10, %v6763_v49  ;;  %v2603_v55 = vpop.f32.mrf.mxu0 }
 0x1cf   : > { %4561 = vrot.lane.b32.xlu0 %v4560_v20, %s5021_s18  ;;  %v2338_v20 = vmax.f32 %v2324_v61, 0.0  ;;  %v1551_v24 = vmax.f32 %v1539_v43, 0.0  ;;  %v1824_v53 = vadd.f32 %v6751_v12, %v6769_v3  ;;  %v2617_v23 = vmax.f32 %v2609_v54, 0.0 }
 0x1d0   : > { %v2618_v58 = vmax.f32 %v2612_v52, 0.0  ;;  %v4580_v21 = vpack.i.bf16 %v1434_v27, %v1433_v56  ;;  %v2729_v19 = vadd.f32 %v4434_v0, %v6769_v3  ;;  %v1550_v32 = vmax.f32 %v1536_v29, 0.0 }
 0x1d1   : > { %v4605_v47 = vpack.i.bf16 %v2339_v18, %v2338_v20  ;;  %v1821_v10 = vadd.f32 %v6743_v35, %v6761_v25  ;;  %v2726_v41 = vadd.f32 %v4433_v46, %v6761_v25  ;;  %v1830_v48 = vmax.f32 %v1824_v53, 0.0 }
 0x1d2   : > { %4556 = vrot.lane.b32.xlu1 %v4555_v60, %s5022_s19  ;;  %v4610_v38 = vpack.i.bf16 %v2618_v58, %v2617_v23  ;;  %v2720_v60 = vpop.f32.mrf.mxu1  ;;  %v1941_v12 = vadd.f32 %v6753_v51, %v6769_v3  ;;  %v2735_v22 = vmax.f32 %v2729_v19, 0.0  ;;  %v2604_v30 = vadd.f32 %v2603_v55, %v6771_v39 }
 0x1d3   : > { %4566 = vrot.lane.b32.xlu0 %v4565_v36, %s5022_s19  ;;  %v4585_v36 = vpack.i.bf16 %v1551_v24, %v1550_v32  ;;  %v1938_v35 = vadd.f32 %v6745_v45, %v6761_v25  ;;  %v2734_v46 = vmax.f32 %v2726_v41, 0.0  ;;  %v2601_v17 = vadd.f32 %v2600_v8, %v6763_v49 }
 0x1d4   : > { %v1947_v33 = vmax.f32 %v1941_v12, 0.0  ;;  %v2616_v51 = vmax.f32 %v2604_v30, 0.0  ;;  %v2721_v2 = vadd.f32 %v2720_v60, %v6771_v39  ;;  %v2718_v8 = vadd.f32 %v2717_v13, %v6763_v49 }
 0x1d5   : > { %v4615_v44 = vpack.i.bf16 %v2735_v22, %v2734_v46  ;;  %v1946_v63 = vmax.f32 %v1938_v35, 0.0  ;;  %v2615_v40 = vmax.f32 %v2601_v17, 0.0 }
 0x1d6   : > { %4571 = vrot.lane.b32.xlu1 %v4570_v42, %s5023_s20  ;;  %v1829_v42 = vmax.f32 %v1821_v10, 0.0  ;;  %v2733_v18 = vmax.f32 %v2721_v2, 0.0  ;;  %v2732_v0 = vmax.f32 %v2718_v8, 0.0 }
 0x1d7   : > { %4601 = vrot.lane.b32.xlu0 %v4600_v14, %s5020_s17  ;;  %v4595_v27 = vpack.i.bf16 %v1947_v33, %v1946_v63  ;;  %v4620_v14 = vpack.i.bf16 %v2616_v51, %v2615_v40 }
 0x1d8   : > { %v4590_v6 = vpack.i.bf16 %v1830_v48, %v1829_v42  ;;  %v4625_v20 = vpack.i.bf16 %v2733_v18, %v2732_v0 }
 0x1da   : > { %4576 = vrot.lane.b32.xlu1 %v4575_v1, %s5024_s27 }
 0x1db   : > { %4606 = vrot.lane.b32.xlu0 %v4605_v47, %s5020_s17 }
 0x1de   : > { %4581 = vrot.lane.b32.xlu1 %v4580_v21, %s5023_s20  ;;  %v4439_v34 = vpop.f32.mrf.mxu0 }
 0x1df   : > { %4611 = vrot.lane.b32.xlu0 %v4610_v38, %s5021_s18  ;;  %v3003_v55 = vadd.f32 %v4439_v34, %v6761_v25 }
 0x1e0   : > { %v2994_v7 = vpop.f32.mrf.mxu0 }
 0x1e1   : > { %v3011_v53 = vmax.f32 %v3003_v55, 0.0  ;;  %v2995_v47 = vadd.f32 %v2994_v7, %v6763_v49  ;;  %v1930_v55 = vadd.f32 %v6749_v28, %v6763_v49  ;;  %v6879_v28 = vld [vmem:[%s304_s14 + $0x8] sm:$0xff] }
 0x1e2   : > { %4586 = vrot.lane.b32.xlu1 %v4585_v36, %s5024_s27  ;;  %v4440_v61 = vpop.f32.mrf.mxu0 }
 0x1e3   : > { %4616 = vrot.lane.b32.xlu0 %v4615_v44, %s5022_s19  ;;  %v3006_v54 = vadd.f32 %v4440_v61, %v6769_v3  ;;  %v3009_v10 = vmax.f32 %v2995_v47, 0.0  ;;  %v1816_v61 = vadd.f32 %v6755_v50, %v6771_v39  ;;  %v325_v47 = vmul.f32 %v6879_v28, %v6879_v28 }
 0x1e4   : > { %v2997_v29 = vpop.f32.mrf.mxu0 }
 0x1e5   : > { %v4445_v11 = vpop.f32.mrf.mxu1  ;;  %v3012_v58 = vmax.f32 %v3006_v54, 0.0  ;;  %v2998_v21 = vadd.f32 %v2997_v29, %v6771_v39  ;;  %v1933_v54 = vadd.f32 %v6757_v37, %v6771_v39 }
 0x1e6   : > { %4591 = vrot.lane.b32.xlu1 %v4590_v6, %s5025_s28  ;;  %v3120_v45 = vadd.f32 %v4445_v11, %v6761_v25 }
 0x1e7   : > { %v3111_v5 = vpop.f32.mrf.mxu1  ;;  %4621 = vrot.lane.b32.xlu0 %v4620_v14, %s5021_s18  ;;  %v4630_v23 = vpack.i.bf16 %v3012_v58, %v3011_v53  ;;  %v3010_v19 = vmax.f32 %v2998_v21, 0.0  ;;  %v1944_v58 = vmax.f32 %v1930_v55, 0.0  ;;  %v6877_v21 = vld [vmem:[%s304_s14] sm:$0xff] }
 0x1e8   : > { %v3128_v52 = vmax.f32 %v3120_v45, 0.0  ;;  %v3112_v34 = vadd.f32 %v3111_v5, %v6763_v49  ;;  %v324_v53 = vmul.f32 %v6877_v21, %v6877_v21 }
 0x1e9   : > { %v4446_v1 = vpop.f32.mrf.mxu1  ;;  %v4640_v41 = vpack.i.bf16 %v3010_v19, %v3009_v10  ;;  %v3823_v10 = vld [vmem:[%s7111_s5] sm:$0xff] }
 0x1ea   : > { %v3123_v43 = vadd.f32 %v4446_v1, %v6769_v3  ;;  %4596 = vrot.lane.b32.xlu1 %v4595_v27, %s5026_s30  ;;  %v3126_v60 = vmax.f32 %v3112_v34, 0.0  ;;  %v1813_v27 = vadd.f32 %v6747_v16, %v6763_v49 }
 0x1eb   : > { %v3114_v24 = vpop.f32.mrf.mxu1  ;;  %4626 = vrot.lane.b32.xlu0 %v4625_v20, %s5022_s19  ;;  %v1945_v20 = vmax.f32 %v1933_v54, 0.0 }
 0x1ec   : > { %v3129_v56 = vmax.f32 %v3123_v43, 0.0  ;;  %v3115_v32 = vadd.f32 %v3114_v24, %v6771_v39  ;;  %v1827_v0 = vmax.f32 %v1813_v27, 0.0  ;;  %v320_v24 = vadd.f32 %v6879_v28, %v6877_v21 }
 0x1ed   : > { %v4675_v37 = vpack.i.bf16 %v1945_v20, %v1944_v58 }
 0x1ee   : > { %v4635_v13 = vpack.i.bf16 %v3129_v56, %v3128_v52  ;;  %v3127_v38 = vmax.f32 %v3115_v32, 0.0  ;;  %v1828_v52 = vmax.f32 %v1816_v61, 0.0 }
 0x1ef   : > { %4631 = vrot.lane.b32.xlu0 %v4630_v23, %s5023_s20  ;;  %v326_v23 = vadd.f32 %v325_v47, %v324_v53 }
 0x1f0   : > { %4636 = vrot.lane.b32.xlu1 %v4635_v13, %s5024_s27  ;;  %v4645_v36 = vpack.i.bf16 %v3127_v38, %v3126_v60  ;;  %v4660_v16 = vpack.i.bf16 %v1828_v52, %v1827_v0  ;;  %v3824_v60 = vld [vmem:[%s7111_s5 + $0x8] sm:$0xff] }
 0x1f3   : > { %4641 = vrot.lane.b32.xlu0 %v4640_v41, %s5023_s20  ;;  %s293_s20 = sand.u32 1, %s5001_s22  }
 0x1f4   : > { %s3897_s13 = scalar_lea.sflag [#allocation3], %s293_s20 }
 0x1f7   : > { %4646 = vrot.lane.b32.xlu0 %v4645_v36, %s5024_s27  ;;  %s4012_s27 = sshll.u32 %s293_s20, 4 }
 0x203   : > { %v4451_v48 = vpop.f32.mrf.mxu0 }
 0x204   : > { %v3397_v22 = vadd.f32 %v4451_v48, %v6761_v25 }
 0x205   : > { %v3388_v12 = vpop.f32.mrf.mxu0 }
 0x206   : > { %v3389_v42 = vadd.f32 %v3388_v12, %v6763_v49  ;;  %v3405_v46 = vmax.f32 %v3397_v22, 0.0 }
 0x207   : > { %v4452_v30 = vpop.f32.mrf.mxu0 }
 0x208   : > { %v3400_v35 = vadd.f32 %v4452_v30, %v6769_v3  ;;  %v3403_v33 = vmax.f32 %v3389_v42, 0.0 }
 0x209   : > { %v3391_v7 = vpop.f32.mrf.mxu0 }
 0x20a   : > { %v3406_v17 = vmax.f32 %v3400_v35, 0.0  ;;  %v3392_v11 = vadd.f32 %v3391_v7, %v6771_v39  ;;  %v4457_v6 = vpop.f32.mrf.mxu1 }
 0x20b   : > { %v3514_v5 = vadd.f32 %v4457_v6, %v6761_v25  ;;  %v631_v6 = vadd.f32 %v6725_v59, %v6763_v49  ;;  %v6937_v59 = vadd.f32 %v6787_v26, %v6771_v39 }
 0x20c   : > { %v4650_v44 = vpack.i.bf16 %v3406_v17, %v3405_v46  ;;  %v3404_v51 = vmax.f32 %v3392_v11, 0.0  ;;  %v3505_v2 = vpop.f32.mrf.mxu1  ;;  %v639_v11 = vadd.f32 %v6723_v57, %v6761_v25  ;;  %v6933_v57 = vadd.f32 %v6779_v15, %v6769_v3 }
 0x20d   : > { %v3506_v40 = vadd.f32 %v3505_v2, %v6763_v49  ;;  %v3522_v43 = vmax.f32 %v3514_v5, 0.0  ;;  %v6925_v2 = vadd.f32 %v6759_v9, %v6761_v25  ;;  %v6929_v5 = vadd.f32 %v6767_v62, %v6763_v49 }
 0x20e   : > { %v4665_v63 = vpack.i.bf16 %v3404_v51, %v3403_v33  ;;  %4651 = vrot.lane.b32.xlu1 %v4650_v44, %s5025_s28  ;;  %v4458_v45 = vpop.f32.mrf.mxu1  ;;  %v642_v33 = vadd.f32 %v6727_v4, %v6769_v3  ;;  %v634_v44 = vadd.f32 %v6729_v31, %v6771_v39  ;;  %v647_v4 = vmax.f32 %v639_v11, 0.0 }
 0x20f   : > { %v3517_v8 = vadd.f32 %v4458_v45, %v6769_v3  ;;  %v3520_v50 = vmax.f32 %v3506_v40, 0.0  ;;  %v645_v31 = vmax.f32 %v631_v6, 0.0  ;;  %v2223_v9 = vmax.f32 %v6925_v2, 0.0 }
 0x210   : > { %4666 = vrot.lane.b32.xlu0 %v4665_v63, %s5025_s28  ;;  %v3508_v1 = vpop.f32.mrf.mxu1  ;;  %v648_v63 = vmax.f32 %v642_v33, 0.0  ;;  %v646_v45 = vmax.f32 %v634_v44, 0.0  ;;  %v2221_v25 = vmax.f32 %v6929_v5, 0.0  ;;  %v2224_v40 = vmax.f32 %v6933_v57, 0.0 }
 0x211   : > { %v3523_v14 = vmax.f32 %v3517_v8, 0.0  ;;  %v3509_v18 = vadd.f32 %v3508_v1, %v6771_v39  ;;  %v2222_v39 = vmax.f32 %v6937_v59, 0.0 }
 0x213   : > { %v4655_v56 = vpack.i.bf16 %v3523_v14, %v3522_v43  ;;  %v3521_v29 = vmax.f32 %v3509_v18, 0.0 }
 0x215   : > { %v4670_v13 = vpack.i.bf16 %v3521_v29, %v3520_v50  ;;  %4656 = vrot.lane.b32.xlu1 %v4655_v56, %s5026_s30 }
 0x217   : > { %4671 = vrot.lane.b32.xlu0 %v4670_v13, %s5026_s30 }
 0x219   : > { %4661 = vrot.lane.b32.xlu1 %v4660_v16, %s5025_s28  ;;  %s4314_s28 = sshll.u32 %s5009_s24, 8  ;;  %s5027_s24 = smov [#allocation2]  }
 0x21a   : > { %s3911_s14 = scalar_lea.hbm %s7112_s6, %s4314_s28  ;;  %s4945_s16 = sshll.u32 %s5027_s24, 4  ;;  %s4946_s16 = int_to_ptr.vmem [resolvable:$false] %s4945_s16 }
 0x21b   : > { %s4947_s17 = scalar_lea.vmem %s4946_s16, 512 }
 0x21d   : > { %4676 = vrot.lane.b32.xlu1 %v4675_v37, %s5026_s30  ;;  %s295_s30 = scalar_lea.vmem [#allocation2], %s4012_s27 }
 0x21e   : > { %s3913_s8 = sshll.u32 %s295_s30, 4  ;;  %s3914_s8 = int_to_ptr.vmem [resolvable:$true] %s3913_s8 }
 0x21f   : > { %s4941_s15 = scalar_lea.vmem %s3914_s8, 256  ;;  %p4948_p1 = scmp.lt.s32.totalorder %s3914_s8, %s4946_s16 }
 0x220   : > { %p4942_p12 = scmp.ne.s32.totalorder %s3914_s8, %s4941_s15  ;;  %p4949_p2 = scmp.lt.s32.totalorder %s4947_s17, %s4941_s15 }
 0x222   : > { %p4943_p13 = pnand %p4942_p12, %p5103_p4  ;;  %p4950_p3 = por %p4949_p2, %p4948_p1 }
 0x224   : > { %p4944_p0 = pneg %p4943_p13 }
 0x226   : > { %p4951_p5 = pnand %p4950_p3, %p4944_p0 }
 0x236   : > { %321 = vadd.xlane.f32.xlu0 %v320_v24 }
 0x23c   : > { %v4542_v41 = vpop.permute.xlu1 %4541 }
 0x23d   : > { %v4547_v19 = vpop.permute.xlu0 %4546  ;;  %v4544_v49 = vunpack.i.h.bf16 %v4542_v41  ;;  %v4543_v62 = vunpack.i.l.bf16 %v4542_v41 }
 0x23e   : > { %v4549_v3 = vunpack.i.h.bf16 %v4547_v19  ;;  %v4548_v15 = vunpack.i.l.bf16 %v4547_v19 }
 0x23f   : > { %v3751_v43 = vsel %vm3748_vm9, %v647_v4, %v4543_v62  ;;  %v3752_v14 = vsel %vm3748_vm9, %v648_v63, %v4544_v49 }
 0x240   : > { %v4552_v36 = vpop.permute.xlu1 %4551  ;;  %v3749_v52 = vsel %vm3748_vm9, %v645_v31, %v4548_v15  ;;  %v6952_v50 = vsel %vm3748_vm9, %v646_v45, %v4549_v3 }
 0x241   : > { %327 = vadd.xlane.f32.xlu1 %v326_v23  ;;  %v6887_v32 = vpop.permute.xlu0 %4561  ;;  %v4554_v26 = vunpack.i.h.bf16 %v4552_v36  ;;  %v4553_v1 = vunpack.i.l.bf16 %v4552_v36 }
 0x242   : > { %v4563_v27 = vunpack.i.l.bf16 %v6887_v32  ;;  %v4564_v16 = vunpack.i.h.bf16 %v6887_v32 }
 0x243   : > { %v3757_v55 = vsel %vm3753_vm10, %v3752_v14, %v4554_v26  ;;  %v3756_v13 = vsel %vm3753_vm10, %v3751_v43, %v4553_v1 }
 0x244   : > { %v4557_v12 = vpop.permute.xlu1 %4556  ;;  %v6960_v20 = vsel %vm3753_vm10, %v3749_v52, %v4563_v27 }
 0x245   : > { %v6892_v34 = vpop.permute.xlu0 %4566  ;;  %v4559_v18 = vunpack.i.h.bf16 %v4557_v12  ;;  %v4558_v54 = vunpack.i.l.bf16 %v4557_v12 }
 0x246   : > { %v4569_v58 = vunpack.i.h.bf16 %v6892_v34  ;;  %v4568_v37 = vunpack.i.l.bf16 %v6892_v34 }
 0x247   : > { %v3761_v23 = vsel %vm3758_vm11, %v3756_v13, %v4558_v54  ;;  %v3762_v19 = vsel %vm3758_vm11, %v3757_v55, %v4559_v18 }
 0x248   : > { %v4572_v30 = vpop.permute.xlu1 %4571 }
 0x249   : > { %v6894_v38 = vpop.permute.xlu0 %4601  ;;  %v4574_v56 = vunpack.i.h.bf16 %v4572_v30  ;;  %v4573_v29 = vunpack.i.l.bf16 %v4572_v30 }
 0x24a   : > { %v4603_v41 = vunpack.i.l.bf16 %v6894_v38 }
 0x24b   : > { %v3766_v36 = vsel %vm3763_vm12, %v3761_v23, %v4573_v29 }
 0x24c   : > { %3827 = vperm.xlu0 %4538, %v3823_v10   ;;  %v6905_v35 = vpop.permute.xlu1 %4576  ;;  %v4604_v10 = vunpack.i.h.bf16 %v6894_v38  ;;  %v3785_v63 = vsel %vm3748_vm9, %v2223_v9, %v4603_v41 }
 0x24d   : > { %v6899_v48 = vpop.permute.xlu0 %4606  ;;  %v4579_v24 = vunpack.i.h.bf16 %v6905_v35  ;;  %v4578_v53 = vunpack.i.l.bf16 %v6905_v35 }
 0x24e   : > { %v4609_v35 = vunpack.i.h.bf16 %v6899_v48  ;;  %v4608_v11 = vunpack.i.l.bf16 %v6899_v48  ;;  %v3786_v48 = vsel %vm3748_vm9, %v2224_v40, %v4604_v10 }
 0x24f   : > { %v3771_v44 = vsel %vm3768_vm13, %v3766_v36, %v4578_v53 }
 0x250   : > { %v6909_v46 = vpop.permute.xlu1 %4581  ;;  %v3783_v3 = vsel %vm3748_vm9, %v2221_v25, %v4608_v11 }
 0x251   : > { %v6901_v22 = vpop.permute.xlu0 %4611  ;;  %v4583_v31 = vunpack.i.l.bf16 %v6909_v46 }
 0x252   : > { %3832 = vperm.xlu1 %4539, %v3824_v60   ;;  %v3767_v60 = vsel %vm3763_vm12, %v3762_v19, %v4574_v56  ;;  %v4614_v12 = vunpack.i.h.bf16 %v6901_v22  ;;  %v4613_v30 = vunpack.i.l.bf16 %v6901_v22  ;;  %v4584_v22 = vunpack.i.h.bf16 %v6909_v46  ;;  %v4936_v46 = vld [vmem:[%s7110_s4] sm:$0xff]  }
 0x253   : > { %v3772_v38 = vsel %vm3768_vm13, %v3767_v60, %v4579_v24 }
 0x254   : > { %v6921_v51 = vpop.permute.xlu1 %4586  ;;  %v3790_v45 = vsel %vm3753_vm10, %v3786_v48, %v4614_v12 }
 0x255   : > { %v6903_v42 = vpop.permute.xlu0 %4616 }
 0x256   : > { %v4619_v6 = vunpack.i.h.bf16 %v6903_v42  ;;  %v4618_v33 = vunpack.i.l.bf16 %v6903_v42  ;;  %v3789_v42 = vsel %vm3753_vm10, %v3785_v63, %v4613_v30 }
 0x258   : > { %v6944_v8 = vpop.permute.xlu1 %4591  ;;  %v3793_v15 = vsel %vm3758_vm11, %v3789_v42, %v4618_v33  ;;  %v3794_v40 = vsel %vm3758_vm11, %v3790_v45, %v4619_v6  ;;  %v4589_v45 = vunpack.i.h.bf16 %v6921_v51 }
 0x259   : > { %v6907_v7 = vpop.permute.xlu0 %4621  ;;  %v4594_v9 = vunpack.i.h.bf16 %v6944_v8  ;;  %v4593_v26 = vunpack.i.l.bf16 %v6944_v8 }
 0x25a   : > { %v4624_v49 = vunpack.i.h.bf16 %v6907_v7  ;;  %v4623_v62 = vunpack.i.l.bf16 %v6907_v7 }
 0x25b   : > { %v3777_v19 = vsel %vm3773_vm14, %v3772_v38, %v4594_v9 }
 0x25c   : > { %v6966_v47 = vpop.permute.xlu1 %4596  ;;  %v3787_v54 = vsel %vm3753_vm10, %v3783_v3, %v4623_v62 }
 0x25d   : > { %v6911_v17 = vpop.permute.xlu0 %4626  ;;  %v4599_v25 = vunpack.i.h.bf16 %v6966_v47  ;;  %v4598_v18 = vunpack.i.l.bf16 %v6966_v47  ;;  %v3776_v47 = vsel %vm3773_vm14, %v3771_v44, %v4593_v26 }
 0x25e   : > { %v4628_v5 = vunpack.i.l.bf16 %v6911_v17 }
 0x25f   : > { %v3781_v38 = vsel %vm3778_vm15, %v3776_v47, %v4598_v18  ;;  %v3782_v44 = vsel %vm3778_vm15, %v3777_v19, %v4599_v25 }
 0x260   : > { %v3791_v10 = vsel %vm3758_vm11, %v3787_v54, %v4628_v5 }
 0x261   : > { %v6939_v61 = vpop.permute.xlu0 %4631 }
 0x262   : > { %v4637_v2 = vpop.permute.xlu1 %4636  ;;  %v4634_v57 = vunpack.i.h.bf16 %v6939_v61  ;;  %v4633_v59 = vunpack.i.l.bf16 %v6939_v61  ;;  %v3784_v61 = vsel %vm3748_vm9, %v2222_v39, %v4609_v35  ;;  %v4629_v39 = vunpack.i.h.bf16 %v6911_v17 }
 0x263   : > { %v4639_v7 = vunpack.i.h.bf16 %v4637_v2  ;;  %v4638_v14 = vunpack.i.l.bf16 %v4637_v2  ;;  %v3788_v52 = vsel %vm3753_vm10, %v3784_v61, %v4624_v49 }
 0x264   : > { %v3797_v27 = vsel %vm3763_vm12, %v3793_v15, %v4633_v59  ;;  %v3798_v43 = vsel %vm3763_vm12, %v3794_v40, %v4634_v57  ;;  %v3792_v41 = vsel %vm3758_vm11, %v3788_v52, %v4629_v39  ;;  %v4588_v15 = vunpack.i.l.bf16 %v6921_v51 }
 0x265   : > { %v6954_v0 = vpop.permute.xlu0 %4641  ;;  %v3801_v56 = vsel %vm3768_vm13, %v3797_v27, %v4638_v14  ;;  %v3802_v29 = vsel %vm3768_vm13, %v3798_v43, %v4639_v7  ;;  %v3813_v40 = vpack.c.bf16 %v3782_v44, %v3781_v38  ;;  %v3759_v14 = vsel %vm3758_vm11, %v6960_v20, %v4568_v37 }
 0x266   : > { %v4644_v55 = vunpack.i.h.bf16 %v6954_v0  ;;  %v4643_v13 = vunpack.i.l.bf16 %v6954_v0  ;;  %v3764_v32 = vsel %vm3763_vm12, %v3759_v14, %v4583_v31 }
 0x267   : > { %v3769_v39 = vsel %vm3768_vm13, %v3764_v32, %v4588_v15 }
 0x268   : > { %v3795_v6 = vsel %vm3763_vm12, %v3791_v10, %v4643_v13  ;;  %v3796_v33 = vsel %vm3763_vm12, %v3792_v41, %v4644_v55 }
 0x269   : > { %v4647_v4 = vpop.permute.xlu0 %4646 }
 0x26a   : > { %v4649_v17 = vunpack.i.h.bf16 %v4647_v4  ;;  %v4648_v23 = vunpack.i.l.bf16 %v4647_v4 }
 0x26c   : > { %v3799_v2 = vsel %vm3768_vm13, %v3795_v6, %v4648_v23  ;;  %v3800_v57 = vsel %vm3768_vm13, %v3796_v33, %v4649_v17  ;;  %v3890_v33 = vmul.f32 0.1, %v6877_v21 }
 0x280   : > { %v4652_v1 = vpop.permute.xlu1 %4651 }
 0x281   : > { %v4654_v24 = vunpack.i.h.bf16 %v4652_v1  ;;  %v4653_v53 = vunpack.i.l.bf16 %v4652_v1  ;;  %v3755_v1 = vsel %vm3753_vm10, %v6952_v50, %v4564_v16 }
 0x282   : > { %v4667_v8 = vpop.permute.xlu0 %4666  ;;  %v3760_v51 = vsel %vm3758_vm11, %v3755_v1, %v4569_v58 }
 0x283   : > { %v3805_v36 = vsel %vm3773_vm14, %v3801_v56, %v4653_v53  ;;  %v3806_v12 = vsel %vm3773_vm14, %v3802_v29, %v4654_v24  ;;  %v4669_v30 = vunpack.i.h.bf16 %v4667_v8  ;;  %v4668_v35 = vunpack.i.l.bf16 %v4667_v8 }
 0x284   : > { %v3765_v50 = vsel %vm3763_vm12, %v3760_v51, %v4584_v22 }
 0x285   : > { %v3803_v61 = vsel %vm3773_vm14, %v3799_v2, %v4668_v35  ;;  %v3804_v3 = vsel %vm3773_vm14, %v3800_v57, %v4669_v30  ;;  %v3770_v5 = vsel %vm3768_vm13, %v3765_v50, %v4589_v45 }
 0x287   : > { %v4657_v60 = vpop.permute.xlu1 %4656 }
 0x288   : > { %v4659_v0 = vunpack.i.h.bf16 %v4657_v60  ;;  %v4658_v11 = vunpack.i.l.bf16 %v4657_v60 }
 0x289   : > { %v4672_v59 = vpop.permute.xlu0 %4671 }
 0x28a   : > { %v3809_v4 = vsel %vm3778_vm15, %v3805_v36, %v4658_v11  ;;  %v3810_v48 = vsel %vm3778_vm15, %v3806_v12, %v4659_v0  ;;  %v4674_v63 = vunpack.i.h.bf16 %v4672_v59  ;;  %v4673_v42 = vunpack.i.l.bf16 %v4672_v59 }
 0x28b   : > { %v4662_v49 = vpop.permute.xlu1 %4661  ;;  %v3814_v62 = vpack.c.bf16 %v3810_v48, %v3809_v4  ;;  %v3891_v59 = vmul.f32 0.1, %v6879_v28 }
 0x28c   : > { %v3807_v9 = vsel %vm3778_vm15, %v3803_v61, %v4673_v42  ;;  %v3808_v26 = vsel %vm3778_vm15, %v3804_v3, %v4674_v63  ;;  %v4664_v27 = vunpack.i.h.bf16 %v4662_v49  ;;  %v4663_v43 = vunpack.i.l.bf16 %v4662_v49 }
 0x28d   : > { %3855 = vmatprep.subr.bf16.mxu0 %v3814_v62  ;;  %v3812_v7 = vpack.c.bf16 %v3808_v26, %v3807_v9 }
 0x28e   : > { %3856 = vmatpush1.bf16.msra.mxu0 %v3813_v40  ;;  %v3774_v34 = vsel %vm3773_vm14, %v3769_v39, %v4663_v43  ;;  %v3775_v58 = vsel %vm3773_vm14, %v3770_v5, %v4664_v27 }
 0x28f   : > { %v4677_v16 = vpop.permute.xlu1 %4676  ;;  %3857 = vmatprep.subr.bf16.mxu0 %v3812_v7 }
 0x290   : > { %v4679_v20 = vunpack.i.h.bf16 %v4677_v16  ;;  %v4678_v37 = vunpack.i.l.bf16 %v4677_v16 }
 0x292   : > { %v3779_v25 = vsel %vm3778_vm15, %v3774_v34, %v4678_v37  ;;  %v3780_v31 = vsel %vm3778_vm15, %v3775_v58, %v4679_v20 }
 0x293   : > { %v3811_v18 = vpack.c.bf16 %v3780_v31, %v3779_v25 }
 0x295   : > { %3858 = vmatpush1.bf16.msra.mxu0 %v3811_v18 }
 0x298   : > { %4306 = vmatmul.mubr.msk.bf16.vlgmr.msra.gmra.mxu0 %vm3753_vm10, %v4936_v46 }
 0x2bf   : > { %v322_v22 = vpop.xlane.xlu0 %321 }
 0x2c0   : > { %v323_v54 = vmul.f32 0.00390625, %v322_v22 }
 0x2c2   : > { %v330_v56 = vmul.f32 %v323_v54, %v323_v54  ;;  %v3815_v24 = vsub.f32 0.0, %v323_v54 }
 0x2c7   : > { %v3828_v19 = vpop.permute.xlu0 %3827 }
 0x2ca   : > { %v328_v52 = vpop.xlane.xlu1 %327 }
 0x2cb   : > { %v329_v8 = vmul.f32 0.00390625, %v328_v52 }
 0x2cd   : > { %v331_v29 = vsub.f32 %v329_v8, %v330_v56 }
 0x2ce   : > { %v3833_v30 = vpop.permute.xlu1 %3832 }
 0x2cf   : > { %v332_v55 = vmax.f32 %v331_v29, 0.0 }
 0x2d1   : > { %v333_v13 = vadd.f32 1e-05, %v332_v55 }
 0x2d3   : > { %4937 = vrsqrt.f32 %v333_v13 }
 0x2e0   : > { %v4938_v53 = vpop.eup %4937 }
 0x2e1   : > { %v3816_v17 = vmul.f32 %v4938_v53, %v3815_v24  ;;  %v3817_v23 = vmul.f32 %v4938_v53, %v6877_v21  ;;  %v3818_v41 = vmul.f32 %v4938_v53, %v6879_v28 }
 0x2e3   : > { %v3819_v36 = vadd.f32 %v3817_v23, %v3816_v17  ;;  %v3820_v11 = vadd.f32 %v3818_v41, %v3816_v17 }
 0x358   : > { %v3877_v47 = vpop.f32.mrf.mxu0 }
 0x359   : > { %v3878_v10 = vadd.f32 %v3877_v47, %v3828_v19 }
 0x35a   : > { %v3879_v60 = vpop.f32.mrf.mxu0 }
 0x35b   : > { %v3880_v12 = vadd.f32 %v3879_v60, %v3828_v19  ;;  %v3886_v0 = vmul.f32 %v3878_v10, %v3819_v36 }
 0x35c   : > { %v3881_v35 = vpop.f32.mrf.mxu0 }
 0x35d   : > { %v3882_v6 = vadd.f32 %v3881_v35, %v3833_v30  ;;  %v3887_v44 = vmul.f32 %v3880_v12, %v3820_v11 }
 0x35e   : > { %v3883_v38 = vpop.f32.mrf.mxu0 }
 0x35f   : > { %v3888_v2 = vadd.f32 %v3886_v0, %v3882_v6  ;;  %v3884_v57 = vadd.f32 %v3883_v38, %v3833_v30 }
 0x361   : > { %v3892_v4 = vadd.f32 %v3890_v33, %v3888_v2  ;;  %v3889_v48 = vadd.f32 %v3887_v44, %v3884_v57 }
 0x363   : > { %v3893_v63 = vadd.f32 %v3891_v59, %v3889_v48  ;;  %3894 = vst [vmem:[%s295_s30] sm:$0xff] %v3892_v4 }
 0x365   : > { %3895 = vst [vmem:[%s295_s30 + $0x8] sm:$0xff] %v3893_v63 }
 0x366   : > { %4954 = shalt.err (!%p4951_p5)
}
 0x367   : > { %s4955_s18 = scalar_lea.hbm %s3911_s14, 256  ;;  %s4959_s27 = scalar_lea.hbm %s7112_s6, 512 }
 0x368   : > { %p4956_p6 = scmp.ne.s32.totalorder %s3911_s14, %s4955_s18  ;;  %p4960_p10 = scmp.lt.s32.totalorder %s3911_s14, %s7112_s6 }
 0x369   : > { %p4961_p11 = scmp.lt.s32.totalorder %s4959_s27, %s4955_s18 }
 0x36a   : > { %p4957_p7 = pnand %p4956_p6, %p5103_p4 }
 0x36b   : > { %p4962_p12 = por %p4961_p11, %p4960_p10 }
 0x36c   : > { %p4958_p9 = pneg %p4957_p7 }
 0x36e   : > { %p4963_p13 = pnand %p4962_p12, %p4958_p9 }
 0x370   : > { %4966 = shalt.err (!%p4963_p13)
}
 0x371   : > { %4475 = dma.vmem_to_hbm [thread:$0]  (%p5103_p4), %s3914_s8, 256, %s3911_s14, %s3897_s13  }
 0x372 PF: > { %p4481_p0 = scmp.ge.s32.totalorder %s5017_s26, 2  ;;  %s3925_s11 = sand.u32 1, %s4997_s21  }
 0x373   : > { %s3926_s12 = scalar_lea.sflag [#allocation3], %s3925_s11 }
 0x374   : > { %p4478_p1 = pnand %p4481_p0, %p5110_p8 }
 0x376   : > { %p4479_p2 = pneg %p4478_p1 }
 0x378   : > { %4992 = dma.done.wait (%p4479_p2), %s3926_s12, 256  }
 0x379   : > { %4994 = vsyncadd (%p4479_p2), %s3926_s12, 4294967040  ;;  %s19_s26 = sadd.s32 1, %s5017_s26   ;;  %s7115_s21 = smov %s5001_s22 }
 0x37a   : > { %p16_p3 = scmp.ge.s32.totalorder %s19_s26, 4   ;;  %s7116_s22 = smov %s5005_s23 }
 0x37b   : > { %s7117_s23 = smov %s5116_s10  ;;  %s7118_s24 = smov %s5013_s25 }
 0x37c   : > { %s7119_s25 = smov %s7121_s29  ;;  %18 = sbr.rel (!%p16_p3) target bundleno = 4 (0x4), region = 82 }
 0x381   :  { %3931 = vsyncpa [#allocation3], 1 }
 0x382   :  { %3933 = vsyncpa [#allocation3 + $0x1], 1 }

</bundles_post_ra>
